<compile_context>
chip_gen: v6e
topology: v6e:2x2x1
jax: 0.10.0
libtpu: 0.0.40
codegen_flags: <defaults>
</compile_context>

<pallas_src>
import functools

import jax
import jax.numpy as jnp
from jax.experimental import pallas as pl
from jax.experimental.pallas import tpu as pltpu

# ----------------------------------------------------------------------------
# module constants (from the PyTorch file)
# ----------------------------------------------------------------------------
num_single_transformer_blocks = 38
num_transformer_blocks = 19

# model hyper-params for the synthetic blocks (small demo sizes)
DIM = 64
NUM_HEADS = 2
HEAD_DIM = DIM // NUM_HEADS
MLP_DIM = 4 * DIM
PARAM_DTYPE = jnp.bfloat16


# ----------------------------------------------------------------------------
# tiling helper: largest tile <= pref that divides dim and is a multiple of
# `align`, otherwise fall back to the full dimension (always legal on TPU).
# ----------------------------------------------------------------------------
def _pick(dim, pref, align):
    if dim <= pref:
        return dim
    t = (pref // align) * align
    while t >= align:
        if dim % t == 0:
            return t
        t -= align
    return dim


# ----------------------------------------------------------------------------
# Pallas kernel: tiled GEMM with fused bias / GELU / gate / residual epilogue
# ----------------------------------------------------------------------------
def _gemm_kernel(*refs, activation, has_gate, has_res):
    x_ref, w_ref, b_ref = refs[0], refs[1], refs[2]
    i = 3
    gate_ref = None
    res_ref = None
    if has_gate:
        gate_ref = refs[i]
        i += 1
    if has_res:
        res_ref = refs[i]
        i += 1
    o_ref, acc_ref = refs[i], refs[i + 1]

    k = pl.program_id(3)

    @pl.when(k == 0)
    def _():
        acc_ref[...] = jnp.zeros_like(acc_ref)

    # bf16 operands straight into the MXU, fp32 accumulation.
    acc_ref[...] += jnp.dot(x_ref[0], w_ref[...],
                            preferred_element_type=jnp.float32)

    @pl.when(k == pl.num_programs(3) - 1)
    def _():
        out = acc_ref[...] + b_ref[...].astype(jnp.float32)
        if activation == "gelu":
            # TODO(synk): tanh-approx GELU; switch to exact erf if the
            # reference nunchaku blocks use exact GELU.
            out = jax.nn.gelu(out, approximate=True)
        if has_gate:
            out = out * gate_ref[0].astype(jnp.float32)
        if has_res:
            out = out + res_ref[0].astype(jnp.float32)
        o_ref[0] = out.astype(o_ref.dtype)


def fused_linear(x, w, b, *, activation="none", gate=None, residual=None,
                 ts_pref=256, tn_pref=512, tk_pref=512):
    """x: (B,S,K) @ w: (K,N) + b, optionally * gate(B,N) + residual(B,S,N)."""
    B, S, K = x.shape
    N = w.shape[1]
    ts = _pick(S, ts_pref, 8)
    tn = _pick(N, tn_pref, 128)
    tk = _pick(K, tk_pref, 128)
    grid = (B, S // ts, N // tn, K // tk)

    in_specs = [
        pl.BlockSpec((1, ts, tk), lambda b_, i, j, k: (b_, i, k)),
        pl.BlockSpec((tk, tn), lambda b_, i, j, k: (k, j)),
        pl.BlockSpec((1, tn), lambda b_, i, j, k: (0, j)),
    ]
    inputs = [x, w, b.reshape(1, N)]
    has_gate = gate is not None
    has_res = residual is not None
    if has_gate:
        in_specs.append(pl.BlockSpec((1, 1, tn), lambda b_, i, j, k: (b_, 0, j)))
        inputs.append(gate.reshape(B, 1, N))
    if has_res:
        in_specs.append(pl.BlockSpec((1, ts, tn), lambda b_, i, j, k: (b_, i, j)))
        inputs.append(residual)

    kernel = functools.partial(_gemm_kernel, activation=activation,
                               has_gate=has_gate, has_res=has_res)
    return pl.pallas_call(
        kernel,
        out_shape=jax.ShapeDtypeStruct((B, S, N), x.dtype),
        grid=grid,
        in_specs=in_specs,
        out_specs=pl.BlockSpec((1, ts, tn), lambda b_, i, j, k: (b_, i, j)),
        scratch_shapes=[pltpu.VMEM((ts, tn), jnp.float32)],
        compiler_params=pltpu.CompilerParams(
            dimension_semantics=("parallel", "parallel", "parallel", "arbitrary")),
    )(*inputs)


# ----------------------------------------------------------------------------
# Pallas kernel: fused MLP (ff1 + GELU + ff2) with gated residual.
# The (B,S,4D) intermediate lives only in VMEM tiles.
# ----------------------------------------------------------------------------
def _mlp_kernel(x_ref, w1_ref, b1_ref, w2_ref, b2_ref, gate_ref, res_ref,
                o_ref, acc_ref):
    h = pl.program_id(2)

    @pl.when(h == 0)
    def _():
        acc_ref[...] = jnp.zeros_like(acc_ref)

    u = jnp.dot(x_ref[0], w1_ref[...], preferred_element_type=jnp.float32)
    u = u + b1_ref[...].astype(jnp.float32)
    u = jax.nn.gelu(u, approximate=True)
    acc_ref[...] += jnp.dot(u.astype(x_ref.dtype), w2_ref[...],
                            preferred_element_type=jnp.float32)

    @pl.when(h == pl.num_programs(2) - 1)
    def _():
        out = acc_ref[...] + b2_ref[...].astype(jnp.float32)
        out = out * gate_ref[0].astype(jnp.float32) + res_ref[0].astype(jnp.float32)
        o_ref[0] = out.astype(o_ref.dtype)


def fused_mlp(x, w1, b1, w2, b2, *, gate, residual, ts_pref=256, th_pref=512):
    B, S, D = x.shape
    Hm = w1.shape[1]
    ts = _pick(S, ts_pref, 8)
    th = _pick(Hm, th_pref, 128)
    grid = (B, S // ts, Hm // th)
    return pl.pallas_call(
        _mlp_kernel,
        out_shape=jax.ShapeDtypeStruct((B, S, D), x.dtype),
        grid=grid,
        in_specs=[
            pl.BlockSpec((1, ts, D), lambda b_, i, h: (b_, i, 0)),
            pl.BlockSpec((D, th), lambda b_, i, h: (0, h)),
            pl.BlockSpec((1, th), lambda b_, i, h: (0, h)),
            pl.BlockSpec((th, D), lambda b_, i, h: (h, 0)),
            pl.BlockSpec((1, D), lambda b_, i, h: (0, 0)),
            pl.BlockSpec((1, 1, D), lambda b_, i, h: (b_, 0, 0)),
            pl.BlockSpec((1, ts, D), lambda b_, i, h: (b_, i, 0)),
        ],
        out_specs=pl.BlockSpec((1, ts, D), lambda b_, i, h: (b_, i, 0)),
        scratch_shapes=[pltpu.VMEM((ts, D), jnp.float32)],
        compiler_params=pltpu.CompilerParams(
            dimension_semantics=("parallel", "parallel", "arbitrary")),
    )(x, w1, b1.reshape(1, Hm), w2, b2.reshape(1, D),
      gate.reshape(B, 1, D), residual)


# ----------------------------------------------------------------------------
# Pallas kernel: LayerNorm (no affine) + AdaLN modulation, broadcast in-kernel
# ----------------------------------------------------------------------------
def _ln_mod_kernel(x_ref, shift_ref, scale_ref, o_ref, *, eps):
    x = x_ref[0].astype(jnp.float32)
    mean = jnp.mean(x, axis=-1, keepdims=True)
    xc = x - mean
    var = jnp.mean(xc * xc, axis=-1, keepdims=True)
    xn = xc * jax.lax.rsqrt(var + eps)
    y = xn * (1.0 + scale_ref[0].astype(jnp.float32)) + shift_ref[0].astype(jnp.float32)
    o_ref[0] = y.astype(o_ref.dtype)


def ln_modulate(x, shift, scale, eps=1e-6, ts_pref=512):
    B, S, D = x.shape
    ts = _pick(S, ts_pref, 8)
    grid = (B, S // ts)
    return pl.pallas_call(
        functools.partial(_ln_mod_kernel, eps=eps),
        out_shape=jax.ShapeDtypeStruct((B, S, D), x.dtype),
        grid=grid,
        in_specs=[
            pl.BlockSpec((1, ts, D), lambda b_, i: (b_, i, 0)),
            pl.BlockSpec((1, 1, D), lambda b_, i: (b_, 0, 0)),
            pl.BlockSpec((1, 1, D), lambda b_, i: (b_, 0, 0)),
        ],
        out_specs=pl.BlockSpec((1, ts, D), lambda b_, i: (b_, i, 0)),
        compiler_params=pltpu.CompilerParams(
            dimension_semantics=("parallel", "parallel")),
    )(x, shift.reshape(B, 1, D), scale.reshape(B, 1, D))


# ----------------------------------------------------------------------------
# Pallas kernel: per-head RMSNorm + interleaved-pair RoPE (pltpu.roll on XLU)
# ----------------------------------------------------------------------------
def _rmsnorm_rope_kernel(x_ref, w_ref, cos_ref, sin_ref, o_ref, *, eps):
    x = x_ref[0, 0].astype(jnp.float32)                 # (ts, Dh)
    var = jnp.mean(x * x, axis=-1, keepdims=True)
    xn = x * jax.lax.rsqrt(var + eps) * w_ref[...].astype(jnp.float32)

    c = cos_ref[0].astype(jnp.float32)
    s = sin_ref[0].astype(jnp.float32)
    dh = xn.shape[-1]
    nxt = pltpu.roll(xn, dh - 1, 1)                     # nxt[j] = xn[j+1]
    prv = pltpu.roll(xn, 1, 1)                          # prv[j] = xn[j-1]
    lane = jax.lax.broadcasted_iota(jnp.int32, xn.shape, dimension=1)
    rot = jnp.where(lane % 2 == 0, -nxt, prv)           # pair swap with sign
    o_ref[0, 0] = (xn * c + rot * s).astype(o_ref.dtype)


def rmsnorm_rope(x, w, cos_full, sin_full, eps=1e-6, ts_pref=512):
    """x: (B,H,S,Dh); w: (Dh,); cos/sin_full: (B,S,Dh) with each freq repeated twice."""
    B, H, S, Dh = x.shape
    ts = _pick(S, ts_pref, 8)
    grid = (B, H, S // ts)
    return pl.pallas_call(
        functools.partial(_rmsnorm_rope_kernel, eps=eps),
        out_shape=jax.ShapeDtypeStruct((B, H, S, Dh), x.dtype),
        grid=grid,
        in_specs=[
            pl.BlockSpec((1, 1, ts, Dh), lambda b_, h, i: (b_, h, i, 0)),
            pl.BlockSpec((1, Dh), lambda b_, h, i: (0, 0)),
            pl.BlockSpec((1, ts, Dh), lambda b_, h, i: (b_, i, 0)),
            pl.BlockSpec((1, ts, Dh), lambda b_, h, i: (b_, i, 0)),
        ],
        out_specs=pl.BlockSpec((1, 1, ts, Dh), lambda b_, h, i: (b_, h, i, 0)),
        compiler_params=pltpu.CompilerParams(
            dimension_semantics=("parallel", "parallel", "parallel")),
    )(x, w.reshape(1, Dh), cos_full, sin_full)


# ----------------------------------------------------------------------------
# Pallas kernel: flash-style attention (online softmax, streamed KV)
# ----------------------------------------------------------------------------
def _flash_kernel(q_ref, k_ref, v_ref, o_ref, m_sc, l_sc, acc_sc, *, scale):
    ki = pl.program_id(2)

    @pl.when(ki == 0)
    def _():
        m_sc[...] = jnp.full_like(m_sc, -jnp.inf)
        l_sc[...] = jnp.zeros_like(l_sc)
        acc_sc[...] = jnp.zeros_like(acc_sc)

    q = q_ref[0]                                         # (tq, Dh) bf16
    k = k_ref[0]                                         # (tk, Dh) bf16
    v = v_ref[0]
    s = jax.lax.dot_general(q, k, (((1,), (1,)), ((), ())),
                            preferred_element_type=jnp.float32) * scale

    m_prev = m_sc[...]
    m_new = jnp.maximum(m_prev, jnp.max(s, axis=-1, keepdims=True))
    alpha = jnp.exp(m_prev - m_new)
    p = jnp.exp(s - m_new)
    l_sc[...] = alpha * l_sc[...] + jnp.sum(p, axis=-1, keepdims=True)
    acc_sc[...] = alpha * acc_sc[...] + jnp.dot(p.astype(v.dtype), v,
                                                preferred_element_type=jnp.float32)
    m_sc[...] = m_new

    @pl.when(ki == pl.num_programs(2) - 1)
    def _():
        inv = pl.reciprocal(l_sc[...], approx=True)
        o_ref[0] = (acc_sc[...] * inv).astype(o_ref.dtype)


def flash_attention(q, k, v, tq_pref=256, tk_pref=256):
    """q,k,v: (B,H,S,Dh) -> softmax(qk^T/sqrt(Dh)) v with streamed KV."""
    B, H, S, Dh = q.shape
    scale = 1.0 / float(Dh) ** 0.5
    qf, kf, vf = (t.reshape(B * H, S, Dh) for t in (q, k, v))
    tq = _pick(S, tq_pref, 8)
    tk = _pick(S, tk_pref, 8)
    grid = (B * H, S // tq, S // tk)
    q_spec = pl.BlockSpec((1, tq, Dh), lambda bh, qi, ki: (bh, qi, 0))
    kv_spec = pl.BlockSpec((1, tk, Dh), lambda bh, qi, ki: (bh, ki, 0))
    out = pl.pallas_call(
        functools.partial(_flash_kernel, scale=scale),
        out_shape=jax.ShapeDtypeStruct((B * H, S, Dh), q.dtype),
        grid=grid,
        in_specs=[q_spec, kv_spec, kv_spec],
        out_specs=q_spec,
        scratch_shapes=[pltpu.VMEM((tq, 1), jnp.float32),
                        pltpu.VMEM((tq, 1), jnp.float32),
                        pltpu.VMEM((tq, Dh), jnp.float32)],
        compiler_params=pltpu.CompilerParams(
            dimension_semantics=("parallel", "parallel", "arbitrary")),
    )(qf, kf, vf)
    return out.reshape(B, H, S, Dh)


# ----------------------------------------------------------------------------
# plain-JAX glue
# ----------------------------------------------------------------------------
def pad_tensor(x, multiple, dim=1):
    size = x.shape[dim]
    pad = (-size) % multiple
    if pad == 0:
        return x
    pads = [(0, 0)] * x.ndim
    pads[dim] = (0, pad)
    return jnp.pad(x, pads)


def _rope_tables(rot, S, dtype=jnp.bfloat16):
    """rot: (B, S_pad, Dh/2, 2) -> cos/sin expanded to (B, S, Dh) interleaved."""
    cos = rot[:, :S, :, 0]
    sin = rot[:, :S, :, 1]
    return (jnp.repeat(cos, 2, axis=-1).astype(dtype),
            jnp.repeat(sin, 2, axis=-1).astype(dtype))


def _split_heads(qkv, B, H, Dh):
    q, k, v = jnp.split(qkv, 3, axis=-1)
    to_h = lambda t: t.reshape(B, -1, H, Dh).transpose(0, 2, 1, 3)
    return to_h(q), to_h(k), to_h(v)


# ----------------------------------------------------------------------------
# synthetic FLUX blocks (replacing self.m.forward_layer / forward_single_layer)
# ----------------------------------------------------------------------------
@jax.jit
def forward_layer(p, hidden, enc, temb, rot_img, rot_txt):
    B, S_img, D = hidden.shape
    S_txt = enc.shape[1]
    H, Dh = NUM_HEADS, HEAD_DIM

    # tiny temb GEMMs (M = batch): let XLA handle these, no Pallas overhead.
    t = jax.nn.silu(temb.astype(jnp.float32))
    mod_i = (t @ p["adaln_img_w"].astype(jnp.float32)
             + p["adaln_img_b"].astype(jnp.float32)).astype(hidden.dtype)
    mod_t = (t @ p["adaln_txt_w"].astype(jnp.float32)
             + p["adaln_txt_b"].astype(jnp.float32)).astype(hidden.dtype)
    shift_msa, scale_msa, gate_msa, shift_mlp, scale_mlp, gate_mlp = jnp.split(mod_i, 6, -1)
    c_shift_msa, c_scale_msa, c_gate_msa, c_shift_mlp, c_scale_mlp, c_gate_mlp = jnp.split(mod_t, 6, -1)

    norm_h = ln_modulate(hidden, shift_msa, scale_msa)
    norm_e = ln_modulate(enc, c_shift_msa, c_scale_msa)

    # fused QKV projections (one GEMM per stream)
    qkv_i = fused_linear(norm_h, p["wqkv"], p["bqkv"])
    qkv_t = fused_linear(norm_e, p["wqkv_t"], p["bqkv_t"])
    q_i, k_i, v_i = _split_heads(qkv_i, B, H, Dh)
    q_t, k_t, v_t = _split_heads(qkv_t, B, H, Dh)

    cos_i, sin_i = _rope_tables(rot_img, S_img)
    cos_t, sin_t = _rope_tables(rot_txt, S_txt)
    q_i = rmsnorm_rope(q_i, p["q_norm"], cos_i, sin_i)
    k_i = rmsnorm_rope(k_i, p["k_norm"], cos_i, sin_i)
    q_t = rmsnorm_rope(q_t, p["q_norm_t"], cos_t, sin_t)
    k_t = rmsnorm_rope(k_t, p["k_norm_t"], cos_t, sin_t)

    # joint attention, txt tokens first
    q = jnp.concatenate([q_t, q_i], axis=2)
    k = jnp.concatenate([k_t, k_i], axis=2)
    v = jnp.concatenate([v_t, v_i], axis=2)
    attn = flash_attention(q, k, v).transpose(0, 2, 1, 3).reshape(B, S_txt + S_img, D)
    attn_t, attn_i = attn[:, :S_txt], attn[:, S_txt:]

    # output projection with fused gate + residual add
    hidden = fused_linear(attn_i, p["wo"], p["bo"], gate=gate_msa, residual=hidden)
    enc = fused_linear(attn_t, p["wo_t"], p["bo_t"], gate=c_gate_msa, residual=enc)

    # fused MLP (ff1+GELU+ff2) with gated residual, no 4D intermediate in HBM
    norm_h2 = ln_modulate(hidden, shift_mlp, scale_mlp)
    hidden = fused_mlp(norm_h2, p["ff1_w"], p["ff1_b"], p["ff2_w"], p["ff2_b"],
                       gate=gate_mlp, residual=hidden)
    norm_e2 = ln_modulate(enc, c_shift_mlp, c_scale_mlp)
    enc = fused_mlp(norm_e2, p["ff1_w_t"], p["ff1_b_t"], p["ff2_w_t"], p["ff2_b_t"],
                    gate=c_gate_mlp, residual=enc)
    return hidden, enc


@jax.jit
def forward_single_layer(p, x, temb, rot):
    B, S, D = x.shape
    H, Dh = NUM_HEADS, HEAD_DIM

    t = jax.nn.silu(temb.astype(jnp.float32))
    mod = (t @ p["adaln_w"].astype(jnp.float32)
           + p["adaln_b"].astype(jnp.float32)).astype(x.dtype)
    shift, scale, gate = jnp.split(mod, 3, -1)

    norm_x = ln_modulate(x, shift, scale)

    qkv = fused_linear(norm_x, p["wqkv"], p["bqkv"])                      # (B,S,3D)
    mlp = fused_linear(norm_x, p["mlp_w"], p["mlp_b"], activation="gelu")  # (B,S,4D)

    q, k, v = _split_heads(qkv, B, H, Dh)
    cos, sin = _rope_tables(rot, S)
    q = rmsnorm_rope(q, p["q_norm"], cos, sin)
    k = rmsnorm_rope(k, p["k_norm"], cos, sin)
    attn = flash_attention(q, k, v).transpose(0, 2, 1, 3).reshape(B, S, D)

    # TODO(synk): the [attn | mlp] concat is one extra HBM copy; could be split
    # into two accumulating GEMMs sharing the same fp32 accumulator.
    cat = jnp.concatenate([attn, mlp], axis=-1)
    return fused_linear(cat, p["po_w"], p["po_b"], gate=gate, residual=x)


# ----------------------------------------------------------------------------
# deterministic parameter init
# ----------------------------------------------------------------------------
def _w(key, shape, scale=0.02, dtype=PARAM_DTYPE):
    return (scale * jax.random.normal(key, shape, jnp.float32)).astype(dtype)


def init_dual_block(key):
    ks = iter(jax.random.split(key, 24))
    nk = lambda: next(ks)
    d, hd, m = DIM, HEAD_DIM, MLP_DIM
    ones = jnp.ones((hd,), PARAM_DTYPE)
    return {
        "adaln_img_w": _w(nk(), (d, 6 * d)), "adaln_img_b": _w(nk(), (6 * d,)),
        "adaln_txt_w": _w(nk(), (d, 6 * d)), "adaln_txt_b": _w(nk(), (6 * d,)),
        "wqkv": _w(nk(), (d, 3 * d)), "bqkv": _w(nk(), (3 * d,)),
        "wqkv_t": _w(nk(), (d, 3 * d)), "bqkv_t": _w(nk(), (3 * d,)),
        "wo": _w(nk(), (d, d)), "bo": _w(nk(), (d,)),
        "wo_t": _w(nk(), (d, d)), "bo_t": _w(nk(), (d,)),
        "ff1_w": _w(nk(), (d, m)), "ff1_b": _w(nk(), (m,)),
        "ff2_w": _w(nk(), (m, d)), "ff2_b": _w(nk(), (d,)),
        "ff1_w_t": _w(nk(), (d, m)), "ff1_b_t": _w(nk(), (m,)),
        "ff2_w_t": _w(nk(), (m, d)), "ff2_b_t": _w(nk(), (d,)),
        "q_norm": ones, "k_norm": ones, "q_norm_t": ones, "k_norm_t": ones,
    }


def init_single_block(key):
    ks = iter(jax.random.split(key, 12))
    nk = lambda: next(ks)
    d, hd, m = DIM, HEAD_DIM, MLP_DIM
    ones = jnp.ones((hd,), PARAM_DTYPE)
    return {
        "adaln_w": _w(nk(), (d, 3 * d)), "adaln_b": _w(nk(), (3 * d,)),
        "wqkv": _w(nk(), (d, 3 * d)), "bqkv": _w(nk(), (3 * d,)),
        "mlp_w": _w(nk(), (d, m)), "mlp_b": _w(nk(), (m,)),
        "po_w": _w(nk(), (d + m, d)), "po_b": _w(nk(), (d,)),
        "q_norm": ones, "k_norm": ones,
    }


def init_params(key):
    k_multi, k_single = jax.random.split(key)
    multi = [init_dual_block(k) for k in jax.random.split(k_multi, num_transformer_blocks)]
    single = [init_single_block(k) for k in jax.random.split(k_single, num_single_transformer_blocks)]
    return {"multi": multi, "single": single}


@jax.jit
def _rel_l1(residual, prev):
    r = residual.astype(jnp.float32)
    p = prev.astype(jnp.float32)
    return jnp.mean(jnp.abs(r - p)) / (jnp.mean(jnp.abs(p)) + 1e-8)


# ----------------------------------------------------------------------------
# the wrapper module (caching logic + orchestration)
# ----------------------------------------------------------------------------
class NunchakuFluxTransformerBlocks:
    def __init__(self, params,
                 residual_diff_threshold_multi: float = 0.06,
                 residual_diff_threshold_single: float = 0.06,
                 return_hidden_states_first: bool = False,
                 return_hidden_states_only: bool = False):
        self.params = params
        self.dtype = jnp.bfloat16
        self.residual_diff_threshold_multi = residual_diff_threshold_multi
        self.residual_diff_threshold_single = residual_diff_threshold_single
        self.return_hidden_states_first = return_hidden_states_first
        self.return_hidden_states_only = return_hidden_states_only
        self.cache = {}

    # cache helpers -----------------------------------------------------------
    def _set_buffer(self, name, t):
        self.cache[name] = t

    def _can_use_cache(self, residual, prev_name, threshold):
        prev = self.cache.get(prev_name)
        if prev is None or prev.shape != residual.shape:
            return False
        # TODO(synk): host sync (bool on device value) mirrors the PyTorch
        # graph-break / Python-if structure; a fully device-side lax.cond over
        # the remaining blocks would avoid draining the dispatch pipeline.
        return bool(_rel_l1(residual, prev) < threshold)

    # block loops -------------------------------------------------------------
    def _remaining_multi(self, start_idx, hidden, enc, temb, rot_img, rot_txt):
        orig_h, orig_e = hidden, enc
        for idx in range(start_idx, num_transformer_blocks):
            hidden, enc = forward_layer(self.params["multi"][idx], hidden, enc,
                                        temb, rot_img, rot_txt)
        return hidden, enc, hidden - orig_h, enc - orig_e

    def _remaining_single(self, start_idx, cat, temb, rot):
        orig = cat
        for idx in range(start_idx, num_single_transformer_blocks):
            cat = forward_single_layer(self.params["single"][idx], cat, temb, rot)
        return cat, cat - orig

    # forward -----------------------------------------------------------------
    def forward(self, hidden_states, temb, encoder_hidden_states, image_rotary_emb,
                joint_attention_kwargs=None):
        batch_size = hidden_states.shape[0]
        txt_tokens = encoder_hidden_states.shape[1]
        img_tokens = hidden_states.shape[1]
        original_dtype = hidden_states.dtype

        hidden_states = hidden_states.astype(self.dtype)
        encoder_hidden_states = encoder_hidden_states.astype(self.dtype)
        temb = temb.astype(self.dtype)

        image_rotary_emb = image_rotary_emb.reshape(
            (batch_size, txt_tokens + img_tokens) + tuple(image_rotary_emb.shape[3:]))
        rotary_emb_txt = image_rotary_emb[:, :txt_tokens]
        rotary_emb_img = image_rotary_emb[:, txt_tokens:]
        rotary_emb_single = image_rotary_emb
        rotary_emb_txt = pad_tensor(rotary_emb_txt, 256, dim=1)
        rotary_emb_img = pad_tensor(rotary_emb_img, 256, dim=1)
        rotary_emb_single = pad_tensor(rotary_emb_single, 256, dim=1)

        if self.residual_diff_threshold_multi <= 0.0 and self.residual_diff_threshold_single <= 0.0:
            for idx in range(num_transformer_blocks):
                hidden_states, encoder_hidden_states = forward_layer(
                    self.params["multi"][idx], hidden_states, encoder_hidden_states,
                    temb, rotary_emb_img, rotary_emb_txt)
            cat = jnp.concatenate([encoder_hidden_states, hidden_states], axis=1)
            for idx in range(num_single_transformer_blocks):
                cat = forward_single_layer(self.params["single"][idx], cat, temb, rotary_emb_single)
            final_enc, final_h = cat[:, :txt_tokens], cat[:, txt_tokens:]
        else:
            original_hs = hidden_states
            hidden_states, encoder_hidden_states = forward_layer(
                self.params["multi"][0], hidden_states, encoder_hidden_states,
                temb, rotary_emb_img, rotary_emb_txt)
            first_residual_multi = hidden_states - original_hs

            can_use_cache_multi = False
            if self.residual_diff_threshold_multi > 0:
                can_use_cache_multi = self._can_use_cache(
                    first_residual_multi, "first_hidden_states_residual_multi",
                    self.residual_diff_threshold_multi)

            if can_use_cache_multi:
                hidden_states = hidden_states + self.cache["hidden_states_residual_multi"]
                encoder_hidden_states = encoder_hidden_states + self.cache["encoder_hidden_states_residual_multi"]
            else:
                self._set_buffer("first_hidden_states_residual_multi", first_residual_multi)
                hidden_states, encoder_hidden_states, hs_res, enc_res = self._remaining_multi(
                    1, hidden_states, encoder_hidden_states, temb, rotary_emb_img, rotary_emb_txt)
                self._set_buffer("hidden_states_residual_multi", hs_res)
                self._set_buffer("encoder_hidden_states_residual_multi", enc_res)

            cat = jnp.concatenate([encoder_hidden_states, hidden_states], axis=1)
            original_cat = cat
            cat = forward_single_layer(self.params["single"][0], cat, temb, rotary_emb_single)
            first_cat_residual = cat - original_cat

            can_use_cache_single = False
            if self.residual_diff_threshold_single > 0:
                can_use_cache_single = self._can_use_cache(
                    first_cat_residual, "first_cat_hidden_states_residual_single",
                    self.residual_diff_threshold_single)

            if can_use_cache_single:
                cat = cat + self.cache["cat_hidden_states_residual_single"]
            else:
                self._set_buffer("first_cat_hidden_states_residual_single", first_cat_residual)
                cat, cat_res = self._remaining_single(1, cat, temb, rotary_emb_single)
                self._set_buffer("cat_hidden_states_residual_single", cat_res)

            final_enc, final_h = cat[:, :txt_tokens], cat[:, txt_tokens:]

        final_enc = final_enc.astype(original_dtype)
        final_h = final_h.astype(original_dtype)
        if self.return_hidden_states_only:
            return final_h
        elif self.return_hidden_states_first:
            return final_h, final_enc
        else:
            return final_enc, final_h


# ----------------------------------------------------------------------------
# main
# ----------------------------------------------------------------------------
if __name__ == "__main__":
    B, TXT, IMG = 2, 16, 32
    key = jax.random.PRNGKey(0)
    k1, k2, k3 = jax.random.split(key, 3)

    hidden = jax.random.normal(k1, (B, IMG, DIM), jnp.float32)
    enc = jax.random.normal(k2, (B, TXT, DIM), jnp.float32)
    temb = jax.random.normal(k3, (B, DIM), jnp.float32)

    # rotary embedding: (cos, sin) per frequency, shape [B, 1, TXT+IMG, Dh//2, 2]
    pos = jnp.arange(TXT + IMG, dtype=jnp.float32)
    freqs = 1.0 / (10000.0 ** (jnp.arange(HEAD_DIM // 2, dtype=jnp.float32) / (HEAD_DIM // 2)))
    ang = pos[:, None] * freqs[None, :]
    rot = jnp.stack([jnp.cos(ang), jnp.sin(ang)], axis=-1)           # [T, Dh/2, 2]
    image_rotary_emb = jnp.broadcast_to(rot[None, None], (B, 1, TXT + IMG, HEAD_DIM // 2, 2))

    params = init_params(jax.random.PRNGKey(42))
    model = NunchakuFluxTransformerBlocks(params)

    enc_out, hid_out = model.forward(hidden, temb, enc, image_rotary_emb)
    jax.block_until_ready(enc_out)
    jax.block_until_ready(hid_out)
    assert enc_out.shape == (B, TXT, DIM) and hid_out.shape == (B, IMG, DIM)
    assert bool(jnp.all(jnp.isfinite(enc_out))) and bool(jnp.all(jnp.isfinite(hid_out)))
    print("KERNEL_OK")
</pallas_src>

<mosaic_0001>
module attributes {stable_mosaic.version = 11 : i64} {
  func.func @_gemm_kernel(%arg0: i32, %arg1: i32, %arg2: i32, %arg3: i32, %arg4: memref<1x16x64xbf16, #tpu.memory_space<vmem>>, %arg5: memref<64x192xbf16, #tpu.memory_space<vmem>>, %arg6: memref<1x192xbf16, #tpu.memory_space<vmem>>, %arg7: memref<1x16x192xbf16, #tpu.memory_space<vmem>>, %arg8: memref<16x192xf32, #tpu.memory_space<vmem>>) attributes {dimension_semantics = [#tpu.dimension_semantics<parallel>, #tpu.dimension_semantics<parallel>, #tpu.dimension_semantics<parallel>, #tpu.dimension_semantics<arbitrary>], iteration_bounds = array<i64: 2, 1, 1, 1>, scalar_prefetch = 0 : i64, scratch_operands = 1 : i64, tpu.core_type = #tpu.core_type<tc>, window_params = [{transform_indices = @transform_0, window_bounds = array<i64: 1, 16, 64>}, {transform_indices = @transform_1, window_bounds = array<i64: 64, 192>}, {transform_indices = @transform_2, window_bounds = array<i64: 1, 192>}, {transform_indices = @transform_3, window_bounds = array<i64: 1, 16, 192>}]} {
    %c0_i32 = arith.constant 0 : i32
    %0 = arith.cmpi eq, %arg3, %c0_i32 : i32
    %1 = arith.extui %0 : i1 to i32
    %c0_i32_0 = arith.constant 0 : i32
    %2 = arith.cmpi ne, %1, %c0_i32_0 : i32
    scf.if %2 {
      %cst_11 = arith.constant 0.000000e+00 : f32
      %13 = vector.broadcast %cst_11 : f32 to vector<16x192xf32>
      %c0_12 = arith.constant 0 : index
      %c0_13 = arith.constant 0 : index
      %14 = vector.load %arg8[%c0_12, %c0_13] : memref<16x192xf32, #tpu.memory_space<vmem>>, vector<16x192xf32>
      tpu.vector_store %arg8[%c0_12, %c0_13], %13 {strides = array<i32>} : memref<16x192xf32, #tpu.memory_space<vmem>>, vector<16x192xf32>,
    } else {
    }
    %c0 = arith.constant 0 : index
    %c0_1 = arith.constant 0 : index
    %3 = vector.load %arg8[%c0, %c0_1] : memref<16x192xf32, #tpu.memory_space<vmem>>, vector<16x192xf32>
    %c0_2 = arith.constant 0 : index
    %c0_3 = arith.constant 0 : index
    %c0_4 = arith.constant 0 : index
    %4 = vector.load %arg4[%c0_2, %c0_3, %c0_4] : memref<1x16x64xbf16, #tpu.memory_space<vmem>>, vector<1x16x64xbf16>
    %5 = vector.shape_cast %4 : vector<1x16x64xbf16> to vector<16x64xbf16>
    %c0_5 = arith.constant 0 : index
    %c0_6 = arith.constant 0 : index
    %6 = vector.load %arg5[%c0_5, %c0_6] : memref<64x192xbf16, #tpu.memory_space<vmem>>, vector<64x192xbf16>
    %cst = arith.constant dense<0.000000e+00> : vector<16x192xf32>
    %7 = tpu.matmul %5, %6, %cst {dimension_numbers = #tpu.dot_dimension_numbers<[1], [0], [0], [1], [0, 0, 1, 1], [], []>} : vector<16x64xbf16>, vector<64x192xbf16>, vector<16x192xf32> -> vector<16x192xf32>
    %8 = arith.addf %3, %7 : vector<16x192xf32>
    %c0_7 = arith.constant 0 : index
    %c0_8 = arith.constant 0 : index
    %9 = vector.load %arg8[%c0_7, %c0_8] : memref<16x192xf32, #tpu.memory_space<vmem>>, vector<16x192xf32>
    tpu.vector_store %arg8[%c0_7, %c0_8], %8 {strides = array<i32>} : memref<16x192xf32, #tpu.memory_space<vmem>>, vector<16x192xf32>,
    %c0_i32_9 = arith.constant 0 : i32
    %10 = arith.cmpi eq, %arg3, %c0_i32_9 : i32
    %11 = arith.extui %10 : i1 to i32
    %c0_i32_10 = arith.constant 0 : i32
    %12 = arith.cmpi ne, %11, %c0_i32_10 : i32
    scf.if %12 {
      %c0_11 = arith.constant 0 : index
      %c0_12 = arith.constant 0 : index
      %13 = vector.load %arg8[%c0_11, %c0_12] : memref<16x192xf32, #tpu.memory_space<vmem>>, vector<16x192xf32>
      %c0_13 = arith.constant 0 : index
      %c0_14 = arith.constant 0 : index
      %14 = vector.load %arg6[%c0_13, %c0_14] : memref<1x192xbf16, #tpu.memory_space<vmem>>, vector<1x192xbf16>
      %15 = arith.extf %14 : vector<1x192xbf16> to vector<1x192xf32>
      %16 = vector.broadcast %15 : vector<1x192xf32> to vector<16x192xf32>
      %17 = arith.addf %13, %16 : vector<16x192xf32>
      %18 = arith.truncf %17 : vector<16x192xf32> to vector<16x192xbf16>
      %c0_15 = arith.constant 0 : index
      %c0_16 = arith.constant 0 : index
      %c0_17 = arith.constant 0 : index
      %19 = vector.load %arg7[%c0_15, %c0_16, %c0_17] : memref<1x16x192xbf16, #tpu.memory_space<vmem>>, vector<1x16x192xbf16>
      %20 = vector.shape_cast %19 : vector<1x16x192xbf16> to vector<16x192xbf16>
      %21 = vector.shape_cast %18 : vector<16x192xbf16> to vector<1x16x192xbf16>
      tpu.vector_store %arg7[%c0_15, %c0_16, %c0_17], %21 {strides = array<i32>} : memref<1x16x192xbf16, #tpu.memory_space<vmem>>, vector<1x16x192xbf16>,
    } else {
    }
    return
  }
  func.func @transform_0(%arg0: i32, %arg1: i32, %arg2: i32, %arg3: i32) -> (i32, i32, i32) {
    %c0_i32 = arith.constant 0 : i32
    return %arg0, %arg1, %arg3 : i32, i32, i32
  }
  func.func @transform_1(%arg0: i32, %arg1: i32, %arg2: i32, %arg3: i32) -> (i32, i32) {
    %c0_i32 = arith.constant 0 : i32
    return %arg3, %arg2 : i32, i32
  }
  func.func @transform_2(%arg0: i32, %arg1: i32, %arg2: i32, %arg3: i32) -> (i32, i32) {
    %c0_i32 = arith.constant 0 : i32
    %c0_i32_0 = arith.constant 0 : i32
    return %c0_i32, %arg2 : i32, i32
  }
  func.func @transform_3(%arg0: i32, %arg1: i32, %arg2: i32, %arg3: i32) -> (i32, i32, i32) {
    %c0_i32 = arith.constant 0 : i32
    return %arg0, %arg1, %arg2 : i32, i32, i32
  }
}

module attributes {stable_mosaic.version = 11 : i64} {
  func.func @_ln_mod_kernel(%arg0: i32, %arg1: i32, %arg2: memref<1x16x64xbf16, #tpu.memory_space<vmem>>, %arg3: memref<1x1x64xbf16, #tpu.memory_space<vmem>>, %arg4: memref<1x1x64xbf16, #tpu.memory_space<vmem>>, %arg5: memref<1x16x64xbf16, #tpu.memory_space<vmem>>) attributes {dimension_semantics = [#tpu.dimension_semantics<parallel>, #tpu.dimension_semantics<parallel>], iteration_bounds = array<i64: 2, 1>, scalar_prefetch = 0 : i64, scratch_operands = 0 : i64, tpu.core_type = #tpu.core_type<tc>, window_params = [{transform_indices = @transform_0, window_bounds = array<i64: 1, 16, 64>}, {transform_indices = @transform_1, window_bounds = array<i64: 1, 1, 64>}, {transform_indices = @transform_2, window_bounds = array<i64: 1, 1, 64>}, {transform_indices = @transform_3, window_bounds = array<i64: 1, 16, 64>}]} {
    %c0 = arith.constant 0 : index
    %c0_0 = arith.constant 0 : index
    %c0_1 = arith.constant 0 : index
    %0 = vector.load %arg2[%c0, %c0_0, %c0_1] : memref<1x16x64xbf16, #tpu.memory_space<vmem>>, vector<1x16x64xbf16>
    %1 = vector.shape_cast %0 : vector<1x16x64xbf16> to vector<16x64xbf16>
    %2 = arith.extf %1 : vector<16x64xbf16> to vector<16x64xf32>
    %cst = arith.constant dense<0.000000e+00> : vector<16xf32>
    %3 = vector.multi_reduction <add>, %2, %cst [1] : vector<16x64xf32> to vector<16xf32>
    %4 = vector.shape_cast %3 : vector<16xf32> to vector<16x1xf32>
    %cst_2 = arith.constant 6.400000e+01 : f32
    %5 = vector.broadcast %cst_2 : f32 to vector<16x1xf32>
    %6 = arith.divf %4, %5 : vector<16x1xf32>
    %7 = vector.broadcast %6 : vector<16x1xf32> to vector<16x64xf32>
    %8 = arith.subf %2, %7 : vector<16x64xf32>
    %9 = arith.mulf %8, %8 : vector<16x64xf32>
    %cst_3 = arith.constant dense<0.000000e+00> : vector<16xf32>
    %10 = vector.multi_reduction <add>, %9, %cst_3 [1] : vector<16x64xf32> to vector<16xf32>
    %11 = vector.shape_cast %10 : vector<16xf32> to vector<16x1xf32>
    %cst_4 = arith.constant 6.400000e+01 : f32
    %12 = vector.broadcast %cst_4 : f32 to vector<16x1xf32>
    %13 = arith.divf %11, %12 : vector<16x1xf32>
    %cst_5 = arith.constant 9.99999997E-7 : f32
    %14 = vector.broadcast %cst_5 : f32 to vector<16x1xf32>
    %15 = arith.addf %13, %14 : vector<16x1xf32>
    %16 = math.rsqrt %15 : vector<16x1xf32>
    %17 = vector.broadcast %16 : vector<16x1xf32> to vector<16x64xf32>
    %18 = arith.mulf %8, %17 : vector<16x64xf32>
    %c0_6 = arith.constant 0 : index
    %c0_7 = arith.constant 0 : index
    %c0_8 = arith.constant 0 : index
    %19 = vector.load %arg4[%c0_6, %c0_7, %c0_8] : memref<1x1x64xbf16, #tpu.memory_space<vmem>>, vector<1x1x64xbf16>
    %20 = vector.shape_cast %19 : vector<1x1x64xbf16> to vector<1x64xbf16>
    %21 = arith.extf %20 : vector<1x64xbf16> to vector<1x64xf32>
    %cst_9 = arith.constant 1.000000e+00 : f32
    %22 = vector.broadcast %cst_9 : f32 to vector<1x64xf32>
    %23 = arith.addf %22, %21 : vector<1x64xf32>
    %24 = vector.broadcast %23 : vector<1x64xf32> to vector<16x64xf32>
    %25 = arith.mulf %18, %24 : vector<16x64xf32>
    %c0_10 = arith.constant 0 : index
    %c0_11 = arith.constant 0 : index
    %c0_12 = arith.constant 0 : index
    %26 = vector.load %arg3[%c0_10, %c0_11, %c0_12] : memref<1x1x64xbf16, #tpu.memory_space<vmem>>, vector<1x1x64xbf16>
    %27 = vector.shape_cast %26 : vector<1x1x64xbf16> to vector<1x64xbf16>
    %28 = arith.extf %27 : vector<1x64xbf16> to vector<1x64xf32>
    %29 = vector.broadcast %28 : vector<1x64xf32> to vector<16x64xf32>
    %30 = arith.addf %25, %29 : vector<16x64xf32>
    %31 = arith.truncf %30 : vector<16x64xf32> to vector<16x64xbf16>
    %c0_13 = arith.constant 0 : index
    %c0_14 = arith.constant 0 : index
    %c0_15 = arith.constant 0 : index
    %32 = vector.load %arg5[%c0_13, %c0_14, %c0_15] : memref<1x16x64xbf16, #tpu.memory_space<vmem>>, vector<1x16x64xbf16>
    %33 = vector.shape_cast %32 : vector<1x16x64xbf16> to vector<16x64xbf16>
    %34 = vector.shape_cast %31 : vector<16x64xbf16> to vector<1x16x64xbf16>
    tpu.vector_store %arg5[%c0_13, %c0_14, %c0_15], %34 {strides = array<i32>} : memref<1x16x64xbf16, #tpu.memory_space<vmem>>, vector<1x16x64xbf16>,
    return
  }
  func.func @transform_0(%arg0: i32, %arg1: i32) -> (i32, i32, i32) {
    %c0_i32 = arith.constant 0 : i32
    %c0_i32_0 = arith.constant 0 : i32
    return %arg0, %arg1, %c0_i32 : i32, i32, i32
  }
  func.func @transform_1(%arg0: i32, %arg1: i32) -> (i32, i32, i32) {
    %c0_i32 = arith.constant 0 : i32
    %c0_i32_0 = arith.constant 0 : i32
    %c0_i32_1 = arith.constant 0 : i32
    return %arg0, %c0_i32, %c0_i32_0 : i32, i32, i32
  }
  func.func @transform_2(%arg0: i32, %arg1: i32) -> (i32, i32, i32) {
    %c0_i32 = arith.constant 0 : i32
    %c0_i32_0 = arith.constant 0 : i32
    %c0_i32_1 = arith.constant 0 : i32
    return %arg0, %c0_i32, %c0_i32_0 : i32, i32, i32
  }
  func.func @transform_3(%arg0: i32, %arg1: i32) -> (i32, i32, i32) {
    %c0_i32 = arith.constant 0 : i32
    %c0_i32_0 = arith.constant 0 : i32
    return %arg0, %arg1, %c0_i32 : i32, i32, i32
  }
}

module attributes {stable_mosaic.version = 11 : i64} {
  func.func @_rmsnorm_rope_kernel(%arg0: i32, %arg1: i32, %arg2: i32, %arg3: memref<1x1x16x32xbf16, #tpu.memory_space<vmem>>, %arg4: memref<1x32xbf16, #tpu.memory_space<vmem>>, %arg5: memref<1x16x32xbf16, #tpu.memory_space<vmem>>, %arg6: memref<1x16x32xbf16, #tpu.memory_space<vmem>>, %arg7: memref<1x1x16x32xbf16, #tpu.memory_space<vmem>>) attributes {dimension_semantics = [#tpu.dimension_semantics<parallel>, #tpu.dimension_semantics<parallel>, #tpu.dimension_semantics<parallel>], iteration_bounds = array<i64: 2, 2, 1>, scalar_prefetch = 0 : i64, scratch_operands = 0 : i64, tpu.core_type = #tpu.core_type<tc>, window_params = [{transform_indices = @transform_0, window_bounds = array<i64: 1, 1, 16, 32>}, {pipeline_mode = #tpu.pipeline_mode<synchronous>, transform_indices = @transform_1, window_bounds = array<i64: 1, 32>}, {transform_indices = @transform_2, window_bounds = array<i64: 1, 16, 32>}, {transform_indices = @transform_3, window_bounds = array<i64: 1, 16, 32>}, {transform_indices = @transform_4, window_bounds = array<i64: 1, 1, 16, 32>}]} {
    %c0 = arith.constant 0 : index
    %c0_0 = arith.constant 0 : index
    %c0_1 = arith.constant 0 : index
    %c0_2 = arith.constant 0 : index
    %0 = vector.load %arg3[%c0, %c0_0, %c0_1, %c0_2] : memref<1x1x16x32xbf16, #tpu.memory_space<vmem>>, vector<1x1x16x32xbf16>
    %1 = vector.shape_cast %0 : vector<1x1x16x32xbf16> to vector<16x32xbf16>
    %2 = arith.extf %1 : vector<16x32xbf16> to vector<16x32xf32>
    %3 = arith.mulf %2, %2 : vector<16x32xf32>
    %cst = arith.constant dense<0.000000e+00> : vector<16xf32>
    %4 = vector.multi_reduction <add>, %3, %cst [1] : vector<16x32xf32> to vector<16xf32>
    %5 = vector.shape_cast %4 : vector<16xf32> to vector<16x1xf32>
    %cst_3 = arith.constant 3.200000e+01 : f32
    %6 = vector.broadcast %cst_3 : f32 to vector<16x1xf32>
    %7 = arith.divf %5, %6 : vector<16x1xf32>
    %cst_4 = arith.constant 9.99999997E-7 : f32
    %8 = vector.broadcast %cst_4 : f32 to vector<16x1xf32>
    %9 = arith.addf %7, %8 : vector<16x1xf32>
    %10 = math.rsqrt %9 : vector<16x1xf32>
    %11 = vector.broadcast %10 : vector<16x1xf32> to vector<16x32xf32>
    %12 = arith.mulf %2, %11 : vector<16x32xf32>
    %c0_5 = arith.constant 0 : index
    %c0_6 = arith.constant 0 : index
    %13 = vector.load %arg4[%c0_5, %c0_6] : memref<1x32xbf16, #tpu.memory_space<vmem>>, vector<1x32xbf16>
    %14 = arith.extf %13 : vector<1x32xbf16> to vector<1x32xf32>
    %15 = vector.broadcast %14 : vector<1x32xf32> to vector<16x32xf32>
    %16 = arith.mulf %12, %15 : vector<16x32xf32>
    %c0_7 = arith.constant 0 : index
    %c0_8 = arith.constant 0 : index
    %c0_9 = arith.constant 0 : index
    %17 = vector.load %arg5[%c0_7, %c0_8, %c0_9] : memref<1x16x32xbf16, #tpu.memory_space<vmem>>, vector<1x16x32xbf16>
    %18 = vector.shape_cast %17 : vector<1x16x32xbf16> to vector<16x32xbf16>
    %19 = arith.extf %18 : vector<16x32xbf16> to vector<16x32xf32>
    %c0_10 = arith.constant 0 : index
    %c0_11 = arith.constant 0 : index
    %c0_12 = arith.constant 0 : index
    %20 = vector.load %arg6[%c0_10, %c0_11, %c0_12] : memref<1x16x32xbf16, #tpu.memory_space<vmem>>, vector<1x16x32xbf16>
    %21 = vector.shape_cast %20 : vector<1x16x32xbf16> to vector<16x32xbf16>
    %22 = arith.extf %21 : vector<16x32xbf16> to vector<16x32xf32>
    %c31_i32 = arith.constant 31 : i32
    %23 = tpu.dynamic_rotate %16 by %c31_i32 dim 1 : vector<16x32xf32>, i32 -> vector<16x32xf32>
    %c1_i32 = arith.constant 1 : i32
    %24 = tpu.dynamic_rotate %16 by %c1_i32 dim 1 : vector<16x32xf32>, i32 -> vector<16x32xf32>
    %25 = tpu.iota {dimensions = array<i32: 1>} : vector<16x32xi32>
    %c2_i32 = arith.constant 2 : i32
    %c0_i32 = arith.constant 0 : i32
    %26 = arith.cmpi eq, %c2_i32, %c0_i32 : i32
    %c1_i32_13 = arith.constant 1 : i32
    %27 = arith.select %26, %c1_i32_13, %c2_i32 : i32
    %28 = vector.broadcast %27 : i32 to vector<16x32xi32>
    %29 = arith.remsi %25, %28 : vector<16x32xi32>
    %c0_i32_14 = arith.constant 0 : i32
    %30 = vector.broadcast %c0_i32_14 : i32 to vector<16x32xi32>
    %31 = arith.cmpi ne, %29, %30 : vector<16x32xi32>
    %c0_i32_15 = arith.constant 0 : i32
    %32 = vector.broadcast %c0_i32_15 : i32 to vector<16x32xi32>
    %33 = arith.cmpi slt, %29, %32 : vector<16x32xi32>
    %c0_i32_16 = arith.constant 0 : i32
    %34 = arith.cmpi slt, %27, %c0_i32_16 : i32
    %35 = vector.broadcast %34 : i1 to vector<16x32xi1>
    %36 = vector.broadcast %35 : vector<16x32xi1> to vector<16x32xi1>
    %37 = arith.xori %33, %36 : vector<16x32xi1>
    %38 = arith.andi %37, %31 : vector<16x32xi1>
    %39 = vector.broadcast %27 : i32 to vector<16x32xi32>
    %40 = arith.addi %29, %39 : vector<16x32xi32>
    %41 = arith.select %38, %40, %29 : vector<16x32xi1>, vector<16x32xi32>
    %c0_i32_17 = arith.constant 0 : i32
    %42 = vector.broadcast %c0_i32_17 : i32 to vector<16x32xi32>
    %43 = arith.cmpi eq, %41, %42 : vector<16x32xi32>
    %cst_18 = arith.constant 0.000000e+00 : f32
    %44 = vector.broadcast %cst_18 : f32 to vector<16x32xf32>
    %45 = arith.subf %44, %23 : vector<16x32xf32>
    %46 = arith.select %43, %45, %24 : vector<16x32xi1>, vector<16x32xf32>
    %47 = arith.mulf %16, %19 : vector<16x32xf32>
    %48 = arith.mulf %46, %22 : vector<16x32xf32>
    %49 = arith.addf %47, %48 : vector<16x32xf32>
    %50 = arith.truncf %49 : vector<16x32xf32> to vector<16x32xbf16>
    %c0_19 = arith.constant 0 : index
    %c0_20 = arith.constant 0 : index
    %c0_21 = arith.constant 0 : index
    %c0_22 = arith.constant 0 : index
    %51 = vector.load %arg7[%c0_19, %c0_20, %c0_21, %c0_22] : memref<1x1x16x32xbf16, #tpu.memory_space<vmem>>, vector<1x1x16x32xbf16>
    %52 = vector.shape_cast %51 : vector<1x1x16x32xbf16> to vector<16x32xbf16>
    %53 = vector.shape_cast %50 : vector<16x32xbf16> to vector<1x1x16x32xbf16>
    tpu.vector_store %arg7[%c0_19, %c0_20, %c0_21, %c0_22], %53 {strides = array<i32>} : memref<1x1x16x32xbf16, #tpu.memory_space<vmem>>, vector<1x1x16x32xbf16>,
    return
  }
  func.func @transform_0(%arg0: i32, %arg1: i32, %arg2: i32) -> (i32, i32, i32, i32) {
    %c0_i32 = arith.constant 0 : i32
    %c0_i32_0 = arith.constant 0 : i32
    return %arg0, %arg1, %arg2, %c0_i32 : i32, i32, i32, i32
  }
  func.func @transform_1(%arg0: i32, %arg1: i32, %arg2: i32) -> (i32, i32) {
    %c0_i32 = arith.constant 0 : i32
    %c0_i32_0 = arith.constant 0 : i32
    %c0_i32_1 = arith.constant 0 : i32
    return %c0_i32, %c0_i32_0 : i32, i32
  }
  func.func @transform_2(%arg0: i32, %arg1: i32, %arg2: i32) -> (i32, i32, i32) {
    %c0_i32 = arith.constant 0 : i32
    %c0_i32_0 = arith.constant 0 : i32
    return %arg0, %arg2, %c0_i32 : i32, i32, i32
  }
  func.func @transform_3(%arg0: i32, %arg1: i32, %arg2: i32) -> (i32, i32, i32) {
    %c0_i32 = arith.constant 0 : i32
    %c0_i32_0 = arith.constant 0 : i32
    return %arg0, %arg2, %c0_i32 : i32, i32, i32
  }
  func.func @transform_4(%arg0: i32, %arg1: i32, %arg2: i32) -> (i32, i32, i32, i32) {
    %c0_i32 = arith.constant 0 : i32
    %c0_i32_0 = arith.constant 0 : i32
    return %arg0, %arg1, %arg2, %c0_i32 : i32, i32, i32, i32
  }
}

module attributes {stable_mosaic.version = 11 : i64} {
  func.func @_gemm_kernel(%arg0: i32, %arg1: i32, %arg2: i32, %arg3: i32, %arg4: memref<1x32x64xbf16, #tpu.memory_space<vmem>>, %arg5: memref<64x192xbf16, #tpu.memory_space<vmem>>, %arg6: memref<1x192xbf16, #tpu.memory_space<vmem>>, %arg7: memref<1x32x192xbf16, #tpu.memory_space<vmem>>, %arg8: memref<32x192xf32, #tpu.memory_space<vmem>>) attributes {dimension_semantics = [#tpu.dimension_semantics<parallel>, #tpu.dimension_semantics<parallel>, #tpu.dimension_semantics<parallel>, #tpu.dimension_semantics<arbitrary>], iteration_bounds = array<i64: 2, 1, 1, 1>, scalar_prefetch = 0 : i64, scratch_operands = 1 : i64, tpu.core_type = #tpu.core_type<tc>, window_params = [{transform_indices = @transform_0, window_bounds = array<i64: 1, 32, 64>}, {transform_indices = @transform_1, window_bounds = array<i64: 64, 192>}, {transform_indices = @transform_2, window_bounds = array<i64: 1, 192>}, {transform_indices = @transform_3, window_bounds = array<i64: 1, 32, 192>}]} {
    %c0_i32 = arith.constant 0 : i32
    %0 = arith.cmpi eq, %arg3, %c0_i32 : i32
    %1 = arith.extui %0 : i1 to i32
    %c0_i32_0 = arith.constant 0 : i32
    %2 = arith.cmpi ne, %1, %c0_i32_0 : i32
    scf.if %2 {
      %cst_11 = arith.constant 0.000000e+00 : f32
      %13 = vector.broadcast %cst_11 : f32 to vector<32x192xf32>
      %c0_12 = arith.constant 0 : index
      %c0_13 = arith.constant 0 : index
      %14 = vector.load %arg8[%c0_12, %c0_13] : memref<32x192xf32, #tpu.memory_space<vmem>>, vector<32x192xf32>
      tpu.vector_store %arg8[%c0_12, %c0_13], %13 {strides = array<i32>} : memref<32x192xf32, #tpu.memory_space<vmem>>, vector<32x192xf32>,
    } else {
    }
    %c0 = arith.constant 0 : index
    %c0_1 = arith.constant 0 : index
    %3 = vector.load %arg8[%c0, %c0_1] : memref<32x192xf32, #tpu.memory_space<vmem>>, vector<32x192xf32>
    %c0_2 = arith.constant 0 : index
    %c0_3 = arith.constant 0 : index
    %c0_4 = arith.constant 0 : index
    %4 = vector.load %arg4[%c0_2, %c0_3, %c0_4] : memref<1x32x64xbf16, #tpu.memory_space<vmem>>, vector<1x32x64xbf16>
    %5 = vector.shape_cast %4 : vector<1x32x64xbf16> to vector<32x64xbf16>
    %c0_5 = arith.constant 0 : index
    %c0_6 = arith.constant 0 : index
    %6 = vector.load %arg5[%c0_5, %c0_6] : memref<64x192xbf16, #tpu.memory_space<vmem>>, vector<64x192xbf16>
    %cst = arith.constant dense<0.000000e+00> : vector<32x192xf32>
    %7 = tpu.matmul %5, %6, %cst {dimension_numbers = #tpu.dot_dimension_numbers<[1], [0], [0], [1], [0, 0, 1, 1], [], []>} : vector<32x64xbf16>, vector<64x192xbf16>, vector<32x192xf32> -> vector<32x192xf32>
    %8 = arith.addf %3, %7 : vector<32x192xf32>
    %c0_7 = arith.constant 0 : index
    %c0_8 = arith.constant 0 : index
    %9 = vector.load %arg8[%c0_7, %c0_8] : memref<32x192xf32, #tpu.memory_space<vmem>>, vector<32x192xf32>
    tpu.vector_store %arg8[%c0_7, %c0_8], %8 {strides = array<i32>} : memref<32x192xf32, #tpu.memory_space<vmem>>, vector<32x192xf32>,
    %c0_i32_9 = arith.constant 0 : i32
    %10 = arith.cmpi eq, %arg3, %c0_i32_9 : i32
    %11 = arith.extui %10 : i1 to i32
    %c0_i32_10 = arith.constant 0 : i32
    %12 = arith.cmpi ne, %11, %c0_i32_10 : i32
    scf.if %12 {
      %c0_11 = arith.constant 0 : index
      %c0_12 = arith.constant 0 : index
      %13 = vector.load %arg8[%c0_11, %c0_12] : memref<32x192xf32, #tpu.memory_space<vmem>>, vector<32x192xf32>
      %c0_13 = arith.constant 0 : index
      %c0_14 = arith.constant 0 : index
      %14 = vector.load %arg6[%c0_13, %c0_14] : memref<1x192xbf16, #tpu.memory_space<vmem>>, vector<1x192xbf16>
      %15 = arith.extf %14 : vector<1x192xbf16> to vector<1x192xf32>
      %16 = vector.broadcast %15 : vector<1x192xf32> to vector<32x192xf32>
      %17 = arith.addf %13, %16 : vector<32x192xf32>
      %18 = arith.truncf %17 : vector<32x192xf32> to vector<32x192xbf16>
      %c0_15 = arith.constant 0 : index
      %c0_16 = arith.constant 0 : index
      %c0_17 = arith.constant 0 : index
      %19 = vector.load %arg7[%c0_15, %c0_16, %c0_17] : memref<1x32x192xbf16, #tpu.memory_space<vmem>>, vector<1x32x192xbf16>
      %20 = vector.shape_cast %19 : vector<1x32x192xbf16> to vector<32x192xbf16>
      %21 = vector.shape_cast %18 : vector<32x192xbf16> to vector<1x32x192xbf16>
      tpu.vector_store %arg7[%c0_15, %c0_16, %c0_17], %21 {strides = array<i32>} : memref<1x32x192xbf16, #tpu.memory_space<vmem>>, vector<1x32x192xbf16>,
    } else {
    }
    return
  }
  func.func @transform_0(%arg0: i32, %arg1: i32, %arg2: i32, %arg3: i32) -> (i32, i32, i32) {
    %c0_i32 = arith.constant 0 : i32
    return %arg0, %arg1, %arg3 : i32, i32, i32
  }
  func.func @transform_1(%arg0: i32, %arg1: i32, %arg2: i32, %arg3: i32) -> (i32, i32) {
    %c0_i32 = arith.constant 0 : i32
    return %arg3, %arg2 : i32, i32
  }
  func.func @transform_2(%arg0: i32, %arg1: i32, %arg2: i32, %arg3: i32) -> (i32, i32) {
    %c0_i32 = arith.constant 0 : i32
    %c0_i32_0 = arith.constant 0 : i32
    return %c0_i32, %arg2 : i32, i32
  }
  func.func @transform_3(%arg0: i32, %arg1: i32, %arg2: i32, %arg3: i32) -> (i32, i32, i32) {
    %c0_i32 = arith.constant 0 : i32
    return %arg0, %arg1, %arg2 : i32, i32, i32
  }
}

module attributes {stable_mosaic.version = 11 : i64} {
  func.func @_ln_mod_kernel(%arg0: i32, %arg1: i32, %arg2: memref<1x32x64xbf16, #tpu.memory_space<vmem>>, %arg3: memref<1x1x64xbf16, #tpu.memory_space<vmem>>, %arg4: memref<1x1x64xbf16, #tpu.memory_space<vmem>>, %arg5: memref<1x32x64xbf16, #tpu.memory_space<vmem>>) attributes {dimension_semantics = [#tpu.dimension_semantics<parallel>, #tpu.dimension_semantics<parallel>], iteration_bounds = array<i64: 2, 1>, scalar_prefetch = 0 : i64, scratch_operands = 0 : i64, tpu.core_type = #tpu.core_type<tc>, window_params = [{transform_indices = @transform_0, window_bounds = array<i64: 1, 32, 64>}, {transform_indices = @transform_1, window_bounds = array<i64: 1, 1, 64>}, {transform_indices = @transform_2, window_bounds = array<i64: 1, 1, 64>}, {transform_indices = @transform_3, window_bounds = array<i64: 1, 32, 64>}]} {
    %c0 = arith.constant 0 : index
    %c0_0 = arith.constant 0 : index
    %c0_1 = arith.constant 0 : index
    %0 = vector.load %arg2[%c0, %c0_0, %c0_1] : memref<1x32x64xbf16, #tpu.memory_space<vmem>>, vector<1x32x64xbf16>
    %1 = vector.shape_cast %0 : vector<1x32x64xbf16> to vector<32x64xbf16>
    %2 = arith.extf %1 : vector<32x64xbf16> to vector<32x64xf32>
    %cst = arith.constant dense<0.000000e+00> : vector<32xf32>
    %3 = vector.multi_reduction <add>, %2, %cst [1] : vector<32x64xf32> to vector<32xf32>
    %4 = vector.shape_cast %3 : vector<32xf32> to vector<32x1xf32>
    %cst_2 = arith.constant 6.400000e+01 : f32
    %5 = vector.broadcast %cst_2 : f32 to vector<32x1xf32>
    %6 = arith.divf %4, %5 : vector<32x1xf32>
    %7 = vector.broadcast %6 : vector<32x1xf32> to vector<32x64xf32>
    %8 = arith.subf %2, %7 : vector<32x64xf32>
    %9 = arith.mulf %8, %8 : vector<32x64xf32>
    %cst_3 = arith.constant dense<0.000000e+00> : vector<32xf32>
    %10 = vector.multi_reduction <add>, %9, %cst_3 [1] : vector<32x64xf32> to vector<32xf32>
    %11 = vector.shape_cast %10 : vector<32xf32> to vector<32x1xf32>
    %cst_4 = arith.constant 6.400000e+01 : f32
    %12 = vector.broadcast %cst_4 : f32 to vector<32x1xf32>
    %13 = arith.divf %11, %12 : vector<32x1xf32>
    %cst_5 = arith.constant 9.99999997E-7 : f32
    %14 = vector.broadcast %cst_5 : f32 to vector<32x1xf32>
    %15 = arith.addf %13, %14 : vector<32x1xf32>
    %16 = math.rsqrt %15 : vector<32x1xf32>
    %17 = vector.broadcast %16 : vector<32x1xf32> to vector<32x64xf32>
    %18 = arith.mulf %8, %17 : vector<32x64xf32>
    %c0_6 = arith.constant 0 : index
    %c0_7 = arith.constant 0 : index
    %c0_8 = arith.constant 0 : index
    %19 = vector.load %arg4[%c0_6, %c0_7, %c0_8] : memref<1x1x64xbf16, #tpu.memory_space<vmem>>, vector<1x1x64xbf16>
    %20 = vector.shape_cast %19 : vector<1x1x64xbf16> to vector<1x64xbf16>
    %21 = arith.extf %20 : vector<1x64xbf16> to vector<1x64xf32>
    %cst_9 = arith.constant 1.000000e+00 : f32
    %22 = vector.broadcast %cst_9 : f32 to vector<1x64xf32>
    %23 = arith.addf %22, %21 : vector<1x64xf32>
    %24 = vector.broadcast %23 : vector<1x64xf32> to vector<32x64xf32>
    %25 = arith.mulf %18, %24 : vector<32x64xf32>
    %c0_10 = arith.constant 0 : index
    %c0_11 = arith.constant 0 : index
    %c0_12 = arith.constant 0 : index
    %26 = vector.load %arg3[%c0_10, %c0_11, %c0_12] : memref<1x1x64xbf16, #tpu.memory_space<vmem>>, vector<1x1x64xbf16>
    %27 = vector.shape_cast %26 : vector<1x1x64xbf16> to vector<1x64xbf16>
    %28 = arith.extf %27 : vector<1x64xbf16> to vector<1x64xf32>
    %29 = vector.broadcast %28 : vector<1x64xf32> to vector<32x64xf32>
    %30 = arith.addf %25, %29 : vector<32x64xf32>
    %31 = arith.truncf %30 : vector<32x64xf32> to vector<32x64xbf16>
    %c0_13 = arith.constant 0 : index
    %c0_14 = arith.constant 0 : index
    %c0_15 = arith.constant 0 : index
    %32 = vector.load %arg5[%c0_13, %c0_14, %c0_15] : memref<1x32x64xbf16, #tpu.memory_space<vmem>>, vector<1x32x64xbf16>
    %33 = vector.shape_cast %32 : vector<1x32x64xbf16> to vector<32x64xbf16>
    %34 = vector.shape_cast %31 : vector<32x64xbf16> to vector<1x32x64xbf16>
    tpu.vector_store %arg5[%c0_13, %c0_14, %c0_15], %34 {strides = array<i32>} : memref<1x32x64xbf16, #tpu.memory_space<vmem>>, vector<1x32x64xbf16>,
    return
  }
  func.func @transform_0(%arg0: i32, %arg1: i32) -> (i32, i32, i32) {
    %c0_i32 = arith.constant 0 : i32
    %c0_i32_0 = arith.constant 0 : i32
    return %arg0, %arg1, %c0_i32 : i32, i32, i32
  }
  func.func @transform_1(%arg0: i32, %arg1: i32) -> (i32, i32, i32) {
    %c0_i32 = arith.constant 0 : i32
    %c0_i32_0 = arith.constant 0 : i32
    %c0_i32_1 = arith.constant 0 : i32
    return %arg0, %c0_i32, %c0_i32_0 : i32, i32, i32
  }
  func.func @transform_2(%arg0: i32, %arg1: i32) -> (i32, i32, i32) {
    %c0_i32 = arith.constant 0 : i32
    %c0_i32_0 = arith.constant 0 : i32
    %c0_i32_1 = arith.constant 0 : i32
    return %arg0, %c0_i32, %c0_i32_0 : i32, i32, i32
  }
  func.func @transform_3(%arg0: i32, %arg1: i32) -> (i32, i32, i32) {
    %c0_i32 = arith.constant 0 : i32
    %c0_i32_0 = arith.constant 0 : i32
    return %arg0, %arg1, %c0_i32 : i32, i32, i32
  }
}

module attributes {stable_mosaic.version = 11 : i64} {
  func.func @_rmsnorm_rope_kernel(%arg0: i32, %arg1: i32, %arg2: i32, %arg3: memref<1x1x32x32xbf16, #tpu.memory_space<vmem>>, %arg4: memref<1x32xbf16, #tpu.memory_space<vmem>>, %arg5: memref<1x32x32xbf16, #tpu.memory_space<vmem>>, %arg6: memref<1x32x32xbf16, #tpu.memory_space<vmem>>, %arg7: memref<1x1x32x32xbf16, #tpu.memory_space<vmem>>) attributes {dimension_semantics = [#tpu.dimension_semantics<parallel>, #tpu.dimension_semantics<parallel>, #tpu.dimension_semantics<parallel>], iteration_bounds = array<i64: 2, 2, 1>, scalar_prefetch = 0 : i64, scratch_operands = 0 : i64, tpu.core_type = #tpu.core_type<tc>, window_params = [{transform_indices = @transform_0, window_bounds = array<i64: 1, 1, 32, 32>}, {pipeline_mode = #tpu.pipeline_mode<synchronous>, transform_indices = @transform_1, window_bounds = array<i64: 1, 32>}, {transform_indices = @transform_2, window_bounds = array<i64: 1, 32, 32>}, {transform_indices = @transform_3, window_bounds = array<i64: 1, 32, 32>}, {transform_indices = @transform_4, window_bounds = array<i64: 1, 1, 32, 32>}]} {
    %c0 = arith.constant 0 : index
    %c0_0 = arith.constant 0 : index
    %c0_1 = arith.constant 0 : index
    %c0_2 = arith.constant 0 : index
    %0 = vector.load %arg3[%c0, %c0_0, %c0_1, %c0_2] : memref<1x1x32x32xbf16, #tpu.memory_space<vmem>>, vector<1x1x32x32xbf16>
    %1 = vector.shape_cast %0 : vector<1x1x32x32xbf16> to vector<32x32xbf16>
    %2 = arith.extf %1 : vector<32x32xbf16> to vector<32x32xf32>
    %3 = arith.mulf %2, %2 : vector<32x32xf32>
    %cst = arith.constant dense<0.000000e+00> : vector<32xf32>
    %4 = vector.multi_reduction <add>, %3, %cst [1] : vector<32x32xf32> to vector<32xf32>
    %5 = vector.shape_cast %4 : vector<32xf32> to vector<32x1xf32>
    %cst_3 = arith.constant 3.200000e+01 : f32
    %6 = vector.broadcast %cst_3 : f32 to vector<32x1xf32>
    %7 = arith.divf %5, %6 : vector<32x1xf32>
    %cst_4 = arith.constant 9.99999997E-7 : f32
    %8 = vector.broadcast %cst_4 : f32 to vector<32x1xf32>
    %9 = arith.addf %7, %8 : vector<32x1xf32>
    %10 = math.rsqrt %9 : vector<32x1xf32>
    %11 = vector.broadcast %10 : vector<32x1xf32> to vector<32x32xf32>
    %12 = arith.mulf %2, %11 : vector<32x32xf32>
    %c0_5 = arith.constant 0 : index
    %c0_6 = arith.constant 0 : index
    %13 = vector.load %arg4[%c0_5, %c0_6] : memref<1x32xbf16, #tpu.memory_space<vmem>>, vector<1x32xbf16>
    %14 = arith.extf %13 : vector<1x32xbf16> to vector<1x32xf32>
    %15 = vector.broadcast %14 : vector<1x32xf32> to vector<32x32xf32>
    %16 = arith.mulf %12, %15 : vector<32x32xf32>
    %c0_7 = arith.constant 0 : index
    %c0_8 = arith.constant 0 : index
    %c0_9 = arith.constant 0 : index
    %17 = vector.load %arg5[%c0_7, %c0_8, %c0_9] : memref<1x32x32xbf16, #tpu.memory_space<vmem>>, vector<1x32x32xbf16>
    %18 = vector.shape_cast %17 : vector<1x32x32xbf16> to vector<32x32xbf16>
    %19 = arith.extf %18 : vector<32x32xbf16> to vector<32x32xf32>
    %c0_10 = arith.constant 0 : index
    %c0_11 = arith.constant 0 : index
    %c0_12 = arith.constant 0 : index
    %20 = vector.load %arg6[%c0_10, %c0_11, %c0_12] : memref<1x32x32xbf16, #tpu.memory_space<vmem>>, vector<1x32x32xbf16>
    %21 = vector.shape_cast %20 : vector<1x32x32xbf16> to vector<32x32xbf16>
    %22 = arith.extf %21 : vector<32x32xbf16> to vector<32x32xf32>
    %c31_i32 = arith.constant 31 : i32
    %23 = tpu.dynamic_rotate %16 by %c31_i32 dim 1 : vector<32x32xf32>, i32 -> vector<32x32xf32>
    %c1_i32 = arith.constant 1 : i32
    %24 = tpu.dynamic_rotate %16 by %c1_i32 dim 1 : vector<32x32xf32>, i32 -> vector<32x32xf32>
    %25 = tpu.iota {dimensions = array<i32: 1>} : vector<32x32xi32>
    %c2_i32 = arith.constant 2 : i32
    %c0_i32 = arith.constant 0 : i32
    %26 = arith.cmpi eq, %c2_i32, %c0_i32 : i32
    %c1_i32_13 = arith.constant 1 : i32
    %27 = arith.select %26, %c1_i32_13, %c2_i32 : i32
    %28 = vector.broadcast %27 : i32 to vector<32x32xi32>
    %29 = arith.remsi %25, %28 : vector<32x32xi32>
    %c0_i32_14 = arith.constant 0 : i32
    %30 = vector.broadcast %c0_i32_14 : i32 to vector<32x32xi32>
    %31 = arith.cmpi ne, %29, %30 : vector<32x32xi32>
    %c0_i32_15 = arith.constant 0 : i32
    %32 = vector.broadcast %c0_i32_15 : i32 to vector<32x32xi32>
    %33 = arith.cmpi slt, %29, %32 : vector<32x32xi32>
    %c0_i32_16 = arith.constant 0 : i32
    %34 = arith.cmpi slt, %27, %c0_i32_16 : i32
    %35 = vector.broadcast %34 : i1 to vector<32x32xi1>
    %36 = vector.broadcast %35 : vector<32x32xi1> to vector<32x32xi1>
    %37 = arith.xori %33, %36 : vector<32x32xi1>
    %38 = arith.andi %37, %31 : vector<32x32xi1>
    %39 = vector.broadcast %27 : i32 to vector<32x32xi32>
    %40 = arith.addi %29, %39 : vector<32x32xi32>
    %41 = arith.select %38, %40, %29 : vector<32x32xi1>, vector<32x32xi32>
    %c0_i32_17 = arith.constant 0 : i32
    %42 = vector.broadcast %c0_i32_17 : i32 to vector<32x32xi32>
    %43 = arith.cmpi eq, %41, %42 : vector<32x32xi32>
    %cst_18 = arith.constant 0.000000e+00 : f32
    %44 = vector.broadcast %cst_18 : f32 to vector<32x32xf32>
    %45 = arith.subf %44, %23 : vector<32x32xf32>
    %46 = arith.select %43, %45, %24 : vector<32x32xi1>, vector<32x32xf32>
    %47 = arith.mulf %16, %19 : vector<32x32xf32>
    %48 = arith.mulf %46, %22 : vector<32x32xf32>
    %49 = arith.addf %47, %48 : vector<32x32xf32>
    %50 = arith.truncf %49 : vector<32x32xf32> to vector<32x32xbf16>
    %c0_19 = arith.constant 0 : index
    %c0_20 = arith.constant 0 : index
    %c0_21 = arith.constant 0 : index
    %c0_22 = arith.constant 0 : index
    %51 = vector.load %arg7[%c0_19, %c0_20, %c0_21, %c0_22] : memref<1x1x32x32xbf16, #tpu.memory_space<vmem>>, vector<1x1x32x32xbf16>
    %52 = vector.shape_cast %51 : vector<1x1x32x32xbf16> to vector<32x32xbf16>
    %53 = vector.shape_cast %50 : vector<32x32xbf16> to vector<1x1x32x32xbf16>
    tpu.vector_store %arg7[%c0_19, %c0_20, %c0_21, %c0_22], %53 {strides = array<i32>} : memref<1x1x32x32xbf16, #tpu.memory_space<vmem>>, vector<1x1x32x32xbf16>,
    return
  }
  func.func @transform_0(%arg0: i32, %arg1: i32, %arg2: i32) -> (i32, i32, i32, i32) {
    %c0_i32 = arith.constant 0 : i32
    %c0_i32_0 = arith.constant 0 : i32
    return %arg0, %arg1, %arg2, %c0_i32 : i32, i32, i32, i32
  }
  func.func @transform_1(%arg0: i32, %arg1: i32, %arg2: i32) -> (i32, i32) {
    %c0_i32 = arith.constant 0 : i32
    %c0_i32_0 = arith.constant 0 : i32
    %c0_i32_1 = arith.constant 0 : i32
    return %c0_i32, %c0_i32_0 : i32, i32
  }
  func.func @transform_2(%arg0: i32, %arg1: i32, %arg2: i32) -> (i32, i32, i32) {
    %c0_i32 = arith.constant 0 : i32
    %c0_i32_0 = arith.constant 0 : i32
    return %arg0, %arg2, %c0_i32 : i32, i32, i32
  }
  func.func @transform_3(%arg0: i32, %arg1: i32, %arg2: i32) -> (i32, i32, i32) {
    %c0_i32 = arith.constant 0 : i32
    %c0_i32_0 = arith.constant 0 : i32
    return %arg0, %arg2, %c0_i32 : i32, i32, i32
  }
  func.func @transform_4(%arg0: i32, %arg1: i32, %arg2: i32) -> (i32, i32, i32, i32) {
    %c0_i32 = arith.constant 0 : i32
    %c0_i32_0 = arith.constant 0 : i32
    return %arg0, %arg1, %arg2, %c0_i32 : i32, i32, i32, i32
  }
}

module attributes {stable_mosaic.version = 11 : i64} {
  func.func @_flash_kernel(%arg0: i32, %arg1: i32, %arg2: i32, %arg3: memref<1x48x32xbf16, #tpu.memory_space<vmem>>, %arg4: memref<1x48x32xbf16, #tpu.memory_space<vmem>>, %arg5: memref<1x48x32xbf16, #tpu.memory_space<vmem>>, %arg6: memref<1x48x32xbf16, #tpu.memory_space<vmem>>, %arg7: memref<48x1xf32, #tpu.memory_space<vmem>>, %arg8: memref<48x1xf32, #tpu.memory_space<vmem>>, %arg9: memref<48x32xf32, #tpu.memory_space<vmem>>) attributes {dimension_semantics = [#tpu.dimension_semantics<parallel>, #tpu.dimension_semantics<parallel>, #tpu.dimension_semantics<arbitrary>], iteration_bounds = array<i64: 4, 1, 1>, scalar_prefetch = 0 : i64, scratch_operands = 3 : i64, tpu.core_type = #tpu.core_type<tc>, window_params = [{transform_indices = @transform_0, window_bounds = array<i64: 1, 48, 32>}, {transform_indices = @transform_1, window_bounds = array<i64: 1, 48, 32>}, {transform_indices = @transform_2, window_bounds = array<i64: 1, 48, 32>}, {transform_indices = @transform_3, window_bounds = array<i64: 1, 48, 32>}]} {
    %c0_i32 = arith.constant 0 : i32
    %0 = arith.cmpi eq, %arg2, %c0_i32 : i32
    %1 = arith.extui %0 : i1 to i32
    %c0_i32_0 = arith.constant 0 : i32
    %2 = arith.cmpi ne, %1, %c0_i32_0 : i32
    scf.if %2 {
      %cst_27 = arith.constant 0xFF800000 : f32
      %38 = vector.broadcast %cst_27 : f32 to vector<48x1xf32>
      %c0_28 = arith.constant 0 : index
      %c0_29 = arith.constant 0 : index
      %39 = vector.load %arg7[%c0_28, %c0_29] : memref<48x1xf32, #tpu.memory_space<vmem>>, vector<48x1xf32>
      tpu.vector_store %arg7[%c0_28, %c0_29], %38 {strides = array<i32>} : memref<48x1xf32, #tpu.memory_space<vmem>>, vector<48x1xf32>,
      %cst_30 = arith.constant 0.000000e+00 : f32
      %40 = vector.broadcast %cst_30 : f32 to vector<48x1xf32>
      %c0_31 = arith.constant 0 : index
      %c0_32 = arith.constant 0 : index
      %41 = vector.load %arg8[%c0_31, %c0_32] : memref<48x1xf32, #tpu.memory_space<vmem>>, vector<48x1xf32>
      tpu.vector_store %arg8[%c0_31, %c0_32], %40 {strides = array<i32>} : memref<48x1xf32, #tpu.memory_space<vmem>>, vector<48x1xf32>,
      %cst_33 = arith.constant 0.000000e+00 : f32
      %42 = vector.broadcast %cst_33 : f32 to vector<48x32xf32>
      %c0_34 = arith.constant 0 : index
      %c0_35 = arith.constant 0 : index
      %43 = vector.load %arg9[%c0_34, %c0_35] : memref<48x32xf32, #tpu.memory_space<vmem>>, vector<48x32xf32>
      tpu.vector_store %arg9[%c0_34, %c0_35], %42 {strides = array<i32>} : memref<48x32xf32, #tpu.memory_space<vmem>>, vector<48x32xf32>,
    } else {
    }
    %c0 = arith.constant 0 : index
    %c0_1 = arith.constant 0 : index
    %c0_2 = arith.constant 0 : index
    %3 = vector.load %arg3[%c0, %c0_1, %c0_2] : memref<1x48x32xbf16, #tpu.memory_space<vmem>>, vector<1x48x32xbf16>
    %4 = vector.shape_cast %3 : vector<1x48x32xbf16> to vector<48x32xbf16>
    %c0_3 = arith.constant 0 : index
    %c0_4 = arith.constant 0 : index
    %c0_5 = arith.constant 0 : index
    %5 = vector.load %arg4[%c0_3, %c0_4, %c0_5] : memref<1x48x32xbf16, #tpu.memory_space<vmem>>, vector<1x48x32xbf16>
    %6 = vector.shape_cast %5 : vector<1x48x32xbf16> to vector<48x32xbf16>
    %c0_6 = arith.constant 0 : index
    %c0_7 = arith.constant 0 : index
    %c0_8 = arith.constant 0 : index
    %7 = vector.load %arg5[%c0_6, %c0_7, %c0_8] : memref<1x48x32xbf16, #tpu.memory_space<vmem>>, vector<1x48x32xbf16>
    %8 = vector.shape_cast %7 : vector<1x48x32xbf16> to vector<48x32xbf16>
    %cst = arith.constant dense<0.000000e+00> : vector<48x48xf32>
    %9 = tpu.matmul %4, %6, %cst {dimension_numbers = #tpu.dot_dimension_numbers<[1], [1], [0], [0], [0, 0, 1, 0], [], []>} : vector<48x32xbf16>, vector<48x32xbf16>, vector<48x48xf32> -> vector<48x48xf32>
    %cst_9 = arith.constant 0.176776692 : f32
    %10 = vector.broadcast %cst_9 : f32 to vector<48x48xf32>
    %11 = arith.mulf %9, %10 : vector<48x48xf32>
    %c0_10 = arith.constant 0 : index
    %c0_11 = arith.constant 0 : index
    %12 = vector.load %arg7[%c0_10, %c0_11] : memref<48x1xf32, #tpu.memory_space<vmem>>, vector<48x1xf32>
    %cst_12 = arith.constant dense<0xFF800000> : vector<48xf32>
    %13 = vector.multi_reduction <maximumf>, %11, %cst_12 [1] : vector<48x48xf32> to vector<48xf32>
    %14 = vector.shape_cast %13 : vector<48xf32> to vector<48x1xf32>
    %15 = arith.maximumf %12, %14 : vector<48x1xf32>
    %16 = arith.subf %12, %15 : vector<48x1xf32>
    %17 = math.exp %16 : vector<48x1xf32>
    %18 = vector.broadcast %15 : vector<48x1xf32> to vector<48x48xf32>
    %19 = arith.subf %11, %18 : vector<48x48xf32>
    %20 = math.exp %19 : vector<48x48xf32>
    %c0_13 = arith.constant 0 : index
    %c0_14 = arith.constant 0 : index
    %21 = vector.load %arg8[%c0_13, %c0_14] : memref<48x1xf32, #tpu.memory_space<vmem>>, vector<48x1xf32>
    %22 = arith.mulf %17, %21 : vector<48x1xf32>
    %cst_15 = arith.constant dense<0.000000e+00> : vector<48xf32>
    %23 = vector.multi_reduction <add>, %20, %cst_15 [1] : vector<48x48xf32> to vector<48xf32>
    %24 = vector.shape_cast %23 : vector<48xf32> to vector<48x1xf32>
    %25 = arith.addf %22, %24 : vector<48x1xf32>
    %c0_16 = arith.constant 0 : index
    %c0_17 = arith.constant 0 : index
    %26 = vector.load %arg8[%c0_16, %c0_17] : memref<48x1xf32, #tpu.memory_space<vmem>>, vector<48x1xf32>
    tpu.vector_store %arg8[%c0_16, %c0_17], %25 {strides = array<i32>} : memref<48x1xf32, #tpu.memory_space<vmem>>, vector<48x1xf32>,
    %c0_18 = arith.constant 0 : index
    %c0_19 = arith.constant 0 : index
    %27 = vector.load %arg9[%c0_18, %c0_19] : memref<48x32xf32, #tpu.memory_space<vmem>>, vector<48x32xf32>
    %28 = vector.broadcast %17 : vector<48x1xf32> to vector<48x32xf32>
    %29 = arith.mulf %28, %27 : vector<48x32xf32>
    %30 = arith.truncf %20 : vector<48x48xf32> to vector<48x48xbf16>
    %cst_20 = arith.constant dense<0.000000e+00> : vector<48x32xf32>
    %31 = tpu.matmul %30, %8, %cst_20 {dimension_numbers = #tpu.dot_dimension_numbers<[1], [0], [0], [1], [0, 0, 1, 1], [], []>} : vector<48x48xbf16>, vector<48x32xbf16>, vector<48x32xf32> -> vector<48x32xf32>
    %32 = arith.addf %29, %31 : vector<48x32xf32>
    %c0_21 = arith.constant 0 : index
    %c0_22 = arith.constant 0 : index
    %33 = vector.load %arg9[%c0_21, %c0_22] : memref<48x32xf32, #tpu.memory_space<vmem>>, vector<48x32xf32>
    tpu.vector_store %arg9[%c0_21, %c0_22], %32 {strides = array<i32>} : memref<48x32xf32, #tpu.memory_space<vmem>>, vector<48x32xf32>,
    %c0_23 = arith.constant 0 : index
    %c0_24 = arith.constant 0 : index
    %34 = vector.load %arg7[%c0_23, %c0_24] : memref<48x1xf32, #tpu.memory_space<vmem>>, vector<48x1xf32>
    tpu.vector_store %arg7[%c0_23, %c0_24], %15 {strides = array<i32>} : memref<48x1xf32, #tpu.memory_space<vmem>>, vector<48x1xf32>,
    %c0_i32_25 = arith.constant 0 : i32
    %35 = arith.cmpi eq, %arg2, %c0_i32_25 : i32
    %36 = arith.extui %35 : i1 to i32
    %c0_i32_26 = arith.constant 0 : i32
    %37 = arith.cmpi ne, %36, %c0_i32_26 : i32
    scf.if %37 {
      %c0_27 = arith.constant 0 : index
      %c0_28 = arith.constant 0 : index
      %38 = vector.load %arg8[%c0_27, %c0_28] : memref<48x1xf32, #tpu.memory_space<vmem>>, vector<48x1xf32>
      %39 = tpu.reciprocal %38 {approx = true} : vector<48x1xf32> -> vector<48x1xf32>
      %c0_29 = arith.constant 0 : index
      %c0_30 = arith.constant 0 : index
      %40 = vector.load %arg9[%c0_29, %c0_30] : memref<48x32xf32, #tpu.memory_space<vmem>>, vector<48x32xf32>
      %41 = vector.broadcast %39 : vector<48x1xf32> to vector<48x32xf32>
      %42 = arith.mulf %40, %41 : vector<48x32xf32>
      %43 = arith.truncf %42 : vector<48x32xf32> to vector<48x32xbf16>
      %c0_31 = arith.constant 0 : index
      %c0_32 = arith.constant 0 : index
      %c0_33 = arith.constant 0 : index
      %44 = vector.load %arg6[%c0_31, %c0_32, %c0_33] : memref<1x48x32xbf16, #tpu.memory_space<vmem>>, vector<1x48x32xbf16>
      %45 = vector.shape_cast %44 : vector<1x48x32xbf16> to vector<48x32xbf16>
      %46 = vector.shape_cast %43 : vector<48x32xbf16> to vector<1x48x32xbf16>
      tpu.vector_store %arg6[%c0_31, %c0_32, %c0_33], %46 {strides = array<i32>} : memref<1x48x32xbf16, #tpu.memory_space<vmem>>, vector<1x48x32xbf16>,
    } else {
    }
    return
  }
  func.func @transform_0(%arg0: i32, %arg1: i32, %arg2: i32) -> (i32, i32, i32) {
    %c0_i32 = arith.constant 0 : i32
    %c0_i32_0 = arith.constant 0 : i32
    return %arg0, %arg1, %c0_i32 : i32, i32, i32
  }
  func.func @transform_1(%arg0: i32, %arg1: i32, %arg2: i32) -> (i32, i32, i32) {
    %c0_i32 = arith.constant 0 : i32
    %c0_i32_0 = arith.constant 0 : i32
    return %arg0, %arg2, %c0_i32 : i32, i32, i32
  }
  func.func @transform_2(%arg0: i32, %arg1: i32, %arg2: i32) -> (i32, i32, i32) {
    %c0_i32 = arith.constant 0 : i32
    %c0_i32_0 = arith.constant 0 : i32
    return %arg0, %arg2, %c0_i32 : i32, i32, i32
  }
  func.func @transform_3(%arg0: i32, %arg1: i32, %arg2: i32) -> (i32, i32, i32) {
    %c0_i32 = arith.constant 0 : i32
    %c0_i32_0 = arith.constant 0 : i32
    return %arg0, %arg1, %c0_i32 : i32, i32, i32
  }
}

module attributes {stable_mosaic.version = 11 : i64} {
  func.func @_gemm_kernel(%arg0: i32, %arg1: i32, %arg2: i32, %arg3: i32, %arg4: memref<1x16x64xbf16, #tpu.memory_space<vmem>>, %arg5: memref<64x64xbf16, #tpu.memory_space<vmem>>, %arg6: memref<1x64xbf16, #tpu.memory_space<vmem>>, %arg7: memref<1x1x64xbf16, #tpu.memory_space<vmem>>, %arg8: memref<1x16x64xbf16, #tpu.memory_space<vmem>>, %arg9: memref<1x16x64xbf16, #tpu.memory_space<vmem>>, %arg10: memref<16x64xf32, #tpu.memory_space<vmem>>) attributes {dimension_semantics = [#tpu.dimension_semantics<parallel>, #tpu.dimension_semantics<parallel>, #tpu.dimension_semantics<parallel>, #tpu.dimension_semantics<arbitrary>], iteration_bounds = array<i64: 2, 1, 1, 1>, scalar_prefetch = 0 : i64, scratch_operands = 1 : i64, tpu.core_type = #tpu.core_type<tc>, window_params = [{transform_indices = @transform_0, window_bounds = array<i64: 1, 16, 64>}, {transform_indices = @transform_1, window_bounds = array<i64: 64, 64>}, {transform_indices = @transform_2, window_bounds = array<i64: 1, 64>}, {transform_indices = @transform_3, window_bounds = array<i64: 1, 1, 64>}, {transform_indices = @transform_4, window_bounds = array<i64: 1, 16, 64>}, {transform_indices = @transform_5, window_bounds = array<i64: 1, 16, 64>}]} {
    %c0_i32 = arith.constant 0 : i32
    %0 = arith.cmpi eq, %arg3, %c0_i32 : i32
    %1 = arith.extui %0 : i1 to i32
    %c0_i32_0 = arith.constant 0 : i32
    %2 = arith.cmpi ne, %1, %c0_i32_0 : i32
    scf.if %2 {
      %cst_11 = arith.constant 0.000000e+00 : f32
      %13 = vector.broadcast %cst_11 : f32 to vector<16x64xf32>
      %c0_12 = arith.constant 0 : index
      %c0_13 = arith.constant 0 : index
      %14 = vector.load %arg10[%c0_12, %c0_13] : memref<16x64xf32, #tpu.memory_space<vmem>>, vector<16x64xf32>
      tpu.vector_store %arg10[%c0_12, %c0_13], %13 {strides = array<i32>} : memref<16x64xf32, #tpu.memory_space<vmem>>, vector<16x64xf32>,
    } else {
    }
    %c0 = arith.constant 0 : index
    %c0_1 = arith.constant 0 : index
    %3 = vector.load %arg10[%c0, %c0_1] : memref<16x64xf32, #tpu.memory_space<vmem>>, vector<16x64xf32>
    %c0_2 = arith.constant 0 : index
    %c0_3 = arith.constant 0 : index
    %c0_4 = arith.constant 0 : index
    %4 = vector.load %arg4[%c0_2, %c0_3, %c0_4] : memref<1x16x64xbf16, #tpu.memory_space<vmem>>, vector<1x16x64xbf16>
    %5 = vector.shape_cast %4 : vector<1x16x64xbf16> to vector<16x64xbf16>
    %c0_5 = arith.constant 0 : index
    %c0_6 = arith.constant 0 : index
    %6 = vector.load %arg5[%c0_5, %c0_6] : memref<64x64xbf16, #tpu.memory_space<vmem>>, vector<64x64xbf16>
    %cst = arith.constant dense<0.000000e+00> : vector<16x64xf32>
    %7 = tpu.matmul %5, %6, %cst {dimension_numbers = #tpu.dot_dimension_numbers<[1], [0], [0], [1], [0, 0, 1, 1], [], []>} : vector<16x64xbf16>, vector<64x64xbf16>, vector<16x64xf32> -> vector<16x64xf32>
    %8 = arith.addf %3, %7 : vector<16x64xf32>
    %c0_7 = arith.constant 0 : index
    %c0_8 = arith.constant 0 : index
    %9 = vector.load %arg10[%c0_7, %c0_8] : memref<16x64xf32, #tpu.memory_space<vmem>>, vector<16x64xf32>
    tpu.vector_store %arg10[%c0_7, %c0_8], %8 {strides = array<i32>} : memref<16x64xf32, #tpu.memory_space<vmem>>, vector<16x64xf32>,
    %c0_i32_9 = arith.constant 0 : i32
    %10 = arith.cmpi eq, %arg3, %c0_i32_9 : i32
    %11 = arith.extui %10 : i1 to i32
    %c0_i32_10 = arith.constant 0 : i32
    %12 = arith.cmpi ne, %11, %c0_i32_10 : i32
    scf.if %12 {
      %c0_11 = arith.constant 0 : index
      %c0_12 = arith.constant 0 : index
      %13 = vector.load %arg10[%c0_11, %c0_12] : memref<16x64xf32, #tpu.memory_space<vmem>>, vector<16x64xf32>
      %c0_13 = arith.constant 0 : index
      %c0_14 = arith.constant 0 : index
      %14 = vector.load %arg6[%c0_13, %c0_14] : memref<1x64xbf16, #tpu.memory_space<vmem>>, vector<1x64xbf16>
      %15 = arith.extf %14 : vector<1x64xbf16> to vector<1x64xf32>
      %16 = vector.broadcast %15 : vector<1x64xf32> to vector<16x64xf32>
      %17 = arith.addf %13, %16 : vector<16x64xf32>
      %c0_15 = arith.constant 0 : index
      %c0_16 = arith.constant 0 : index
      %c0_17 = arith.constant 0 : index
      %18 = vector.load %arg7[%c0_15, %c0_16, %c0_17] : memref<1x1x64xbf16, #tpu.memory_space<vmem>>, vector<1x1x64xbf16>
      %19 = vector.shape_cast %18 : vector<1x1x64xbf16> to vector<1x64xbf16>
      %20 = arith.extf %19 : vector<1x64xbf16> to vector<1x64xf32>
      %21 = vector.broadcast %20 : vector<1x64xf32> to vector<16x64xf32>
      %22 = arith.mulf %17, %21 : vector<16x64xf32>
      %c0_18 = arith.constant 0 : index
      %c0_19 = arith.constant 0 : index
      %c0_20 = arith.constant 0 : index
      %23 = vector.load %arg8[%c0_18, %c0_19, %c0_20] : memref<1x16x64xbf16, #tpu.memory_space<vmem>>, vector<1x16x64xbf16>
      %24 = vector.shape_cast %23 : vector<1x16x64xbf16> to vector<16x64xbf16>
      %25 = arith.extf %24 : vector<16x64xbf16> to vector<16x64xf32>
      %26 = arith.addf %22, %25 : vector<16x64xf32>
      %27 = arith.truncf %26 : vector<16x64xf32> to vector<16x64xbf16>
      %c0_21 = arith.constant 0 : index
      %c0_22 = arith.constant 0 : index
      %c0_23 = arith.constant 0 : index
      %28 = vector.load %arg9[%c0_21, %c0_22, %c0_23] : memref<1x16x64xbf16, #tpu.memory_space<vmem>>, vector<1x16x64xbf16>
      %29 = vector.shape_cast %28 : vector<1x16x64xbf16> to vector<16x64xbf16>
      %30 = vector.shape_cast %27 : vector<16x64xbf16> to vector<1x16x64xbf16>
      tpu.vector_store %arg9[%c0_21, %c0_22, %c0_23], %30 {strides = array<i32>} : memref<1x16x64xbf16, #tpu.memory_space<vmem>>, vector<1x16x64xbf16>,
    } else {
    }
    return
  }
  func.func @transform_0(%arg0: i32, %arg1: i32, %arg2: i32, %arg3: i32) -> (i32, i32, i32) {
    %c0_i32 = arith.constant 0 : i32
    return %arg0, %arg1, %arg3 : i32, i32, i32
  }
  func.func @transform_1(%arg0: i32, %arg1: i32, %arg2: i32, %arg3: i32) -> (i32, i32) {
    %c0_i32 = arith.constant 0 : i32
    return %arg3, %arg2 : i32, i32
  }
  func.func @transform_2(%arg0: i32, %arg1: i32, %arg2: i32, %arg3: i32) -> (i32, i32) {
    %c0_i32 = arith.constant 0 : i32
    %c0_i32_0 = arith.constant 0 : i32
    return %c0_i32, %arg2 : i32, i32
  }
  func.func @transform_3(%arg0: i32, %arg1: i32, %arg2: i32, %arg3: i32) -> (i32, i32, i32) {
    %c0_i32 = arith.constant 0 : i32
    %c0_i32_0 = arith.constant 0 : i32
    return %arg0, %c0_i32, %arg2 : i32, i32, i32
  }
  func.func @transform_4(%arg0: i32, %arg1: i32, %arg2: i32, %arg3: i32) -> (i32, i32, i32) {
    %c0_i32 = arith.constant 0 : i32
    return %arg0, %arg1, %arg2 : i32, i32, i32
  }
  func.func @transform_5(%arg0: i32, %arg1: i32, %arg2: i32, %arg3: i32) -> (i32, i32, i32) {
    %c0_i32 = arith.constant 0 : i32
    return %arg0, %arg1, %arg2 : i32, i32, i32
  }
}

module attributes {stable_mosaic.version = 11 : i64} {
  func.func @_mlp_kernel(%arg0: i32, %arg1: i32, %arg2: i32, %arg3: memref<1x16x64xbf16, #tpu.memory_space<vmem>>, %arg4: memref<64x256xbf16, #tpu.memory_space<vmem>>, %arg5: memref<1x256xbf16, #tpu.memory_space<vmem>>, %arg6: memref<256x64xbf16, #tpu.memory_space<vmem>>, %arg7: memref<1x64xbf16, #tpu.memory_space<vmem>>, %arg8: memref<1x1x64xbf16, #tpu.memory_space<vmem>>, %arg9: memref<1x16x64xbf16, #tpu.memory_space<vmem>>, %arg10: memref<1x16x64xbf16, #tpu.memory_space<vmem>>, %arg11: memref<16x64xf32, #tpu.memory_space<vmem>>) attributes {dimension_semantics = [#tpu.dimension_semantics<parallel>, #tpu.dimension_semantics<parallel>, #tpu.dimension_semantics<arbitrary>], iteration_bounds = array<i64: 2, 1, 1>, scalar_prefetch = 0 : i64, scratch_operands = 1 : i64, tpu.core_type = #tpu.core_type<tc>, window_params = [{transform_indices = @transform_0, window_bounds = array<i64: 1, 16, 64>}, {transform_indices = @transform_1, window_bounds = array<i64: 64, 256>}, {transform_indices = @transform_2, window_bounds = array<i64: 1, 256>}, {transform_indices = @transform_3, window_bounds = array<i64: 256, 64>}, {pipeline_mode = #tpu.pipeline_mode<synchronous>, transform_indices = @transform_4, window_bounds = array<i64: 1, 64>}, {transform_indices = @transform_5, window_bounds = array<i64: 1, 1, 64>}, {transform_indices = @transform_6, window_bounds = array<i64: 1, 16, 64>}, {transform_indices = @transform_7, window_bounds = array<i64: 1, 16, 64>}]} {
    %c0_i32 = arith.constant 0 : i32
    %0 = arith.cmpi eq, %arg2, %c0_i32 : i32
    %1 = arith.extui %0 : i1 to i32
    %c0_i32_0 = arith.constant 0 : i32
    %2 = arith.cmpi ne, %1, %c0_i32_0 : i32
    scf.if %2 {
      %cst_20 = arith.constant 0.000000e+00 : f32
      %33 = vector.broadcast %cst_20 : f32 to vector<16x64xf32>
      %c0_21 = arith.constant 0 : index
      %c0_22 = arith.constant 0 : index
      %34 = vector.load %arg11[%c0_21, %c0_22] : memref<16x64xf32, #tpu.memory_space<vmem>>, vector<16x64xf32>
      tpu.vector_store %arg11[%c0_21, %c0_22], %33 {strides = array<i32>} : memref<16x64xf32, #tpu.memory_space<vmem>>, vector<16x64xf32>,
    } else {
    }
    %c0 = arith.constant 0 : index
    %c0_1 = arith.constant 0 : index
    %c0_2 = arith.constant 0 : index
    %3 = vector.load %arg3[%c0, %c0_1, %c0_2] : memref<1x16x64xbf16, #tpu.memory_space<vmem>>, vector<1x16x64xbf16>
    %4 = vector.shape_cast %3 : vector<1x16x64xbf16> to vector<16x64xbf16>
    %c0_3 = arith.constant 0 : index
    %c0_4 = arith.constant 0 : index
    %5 = vector.load %arg4[%c0_3, %c0_4] : memref<64x256xbf16, #tpu.memory_space<vmem>>, vector<64x256xbf16>
    %cst = arith.constant dense<0.000000e+00> : vector<16x256xf32>
    %6 = tpu.matmul %4, %5, %cst {dimension_numbers = #tpu.dot_dimension_numbers<[1], [0], [0], [1], [0, 0, 1, 1], [], []>} : vector<16x64xbf16>, vector<64x256xbf16>, vector<16x256xf32> -> vector<16x256xf32>
    %c0_5 = arith.constant 0 : index
    %c0_6 = arith.constant 0 : index
    %7 = vector.load %arg5[%c0_5, %c0_6] : memref<1x256xbf16, #tpu.memory_space<vmem>>, vector<1x256xbf16>
    %8 = arith.extf %7 : vector<1x256xbf16> to vector<1x256xf32>
    %9 = vector.broadcast %8 : vector<1x256xf32> to vector<16x256xf32>
    %10 = arith.addf %6, %9 : vector<16x256xf32>
    %11 = arith.mulf %10, %10 : vector<16x256xf32>
    %12 = arith.mulf %10, %11 : vector<16x256xf32>
    %cst_7 = arith.constant 4.471500e-02 : f32
    %13 = vector.broadcast %cst_7 : f32 to vector<16x256xf32>
    %14 = arith.mulf %13, %12 : vector<16x256xf32>
    %15 = arith.addf %10, %14 : vector<16x256xf32>
    %cst_8 = arith.constant 0.797884583 : f32
    %16 = vector.broadcast %cst_8 : f32 to vector<16x256xf32>
    %17 = arith.mulf %16, %15 : vector<16x256xf32>
    %18 = math.tanh %17 : vector<16x256xf32>
    %cst_9 = arith.constant 1.000000e+00 : f32
    %19 = vector.broadcast %cst_9 : f32 to vector<16x256xf32>
    %20 = arith.addf %19, %18 : vector<16x256xf32>
    %cst_10 = arith.constant 5.000000e-01 : f32
    %21 = vector.broadcast %cst_10 : f32 to vector<16x256xf32>
    %22 = arith.mulf %21, %20 : vector<16x256xf32>
    %23 = arith.mulf %10, %22 : vector<16x256xf32>
    %c0_11 = arith.constant 0 : index
    %c0_12 = arith.constant 0 : index
    %24 = vector.load %arg11[%c0_11, %c0_12] : memref<16x64xf32, #tpu.memory_space<vmem>>, vector<16x64xf32>
    %25 = arith.truncf %23 : vector<16x256xf32> to vector<16x256xbf16>
    %c0_13 = arith.constant 0 : index
    %c0_14 = arith.constant 0 : index
    %26 = vector.load %arg6[%c0_13, %c0_14] : memref<256x64xbf16, #tpu.memory_space<vmem>>, vector<256x64xbf16>
    %cst_15 = arith.constant dense<0.000000e+00> : vector<16x64xf32>
    %27 = tpu.matmul %25, %26, %cst_15 {dimension_numbers = #tpu.dot_dimension_numbers<[1], [0], [0], [1], [0, 0, 1, 1], [], []>} : vector<16x256xbf16>, vector<256x64xbf16>, vector<16x64xf32> -> vector<16x64xf32>
    %28 = arith.addf %24, %27 : vector<16x64xf32>
    %c0_16 = arith.constant 0 : index
    %c0_17 = arith.constant 0 : index
    %29 = vector.load %arg11[%c0_16, %c0_17] : memref<16x64xf32, #tpu.memory_space<vmem>>, vector<16x64xf32>
    tpu.vector_store %arg11[%c0_16, %c0_17], %28 {strides = array<i32>} : memref<16x64xf32, #tpu.memory_space<vmem>>, vector<16x64xf32>,
    %c0_i32_18 = arith.constant 0 : i32
    %30 = arith.cmpi eq, %arg2, %c0_i32_18 : i32
    %31 = arith.extui %30 : i1 to i32
    %c0_i32_19 = arith.constant 0 : i32
    %32 = arith.cmpi ne, %31, %c0_i32_19 : i32
    scf.if %32 {
      %c0_20 = arith.constant 0 : index
      %c0_21 = arith.constant 0 : index
      %33 = vector.load %arg11[%c0_20, %c0_21] : memref<16x64xf32, #tpu.memory_space<vmem>>, vector<16x64xf32>
      %c0_22 = arith.constant 0 : index
      %c0_23 = arith.constant 0 : index
      %34 = vector.load %arg7[%c0_22, %c0_23] : memref<1x64xbf16, #tpu.memory_space<vmem>>, vector<1x64xbf16>
      %35 = arith.extf %34 : vector<1x64xbf16> to vector<1x64xf32>
      %36 = vector.broadcast %35 : vector<1x64xf32> to vector<16x64xf32>
      %37 = arith.addf %33, %36 : vector<16x64xf32>
      %c0_24 = arith.constant 0 : index
      %c0_25 = arith.constant 0 : index
      %c0_26 = arith.constant 0 : index
      %38 = vector.load %arg8[%c0_24, %c0_25, %c0_26] : memref<1x1x64xbf16, #tpu.memory_space<vmem>>, vector<1x1x64xbf16>
      %39 = vector.shape_cast %38 : vector<1x1x64xbf16> to vector<1x64xbf16>
      %40 = arith.extf %39 : vector<1x64xbf16> to vector<1x64xf32>
      %41 = vector.broadcast %40 : vector<1x64xf32> to vector<16x64xf32>
      %42 = arith.mulf %37, %41 : vector<16x64xf32>
      %c0_27 = arith.constant 0 : index
      %c0_28 = arith.constant 0 : index
      %c0_29 = arith.constant 0 : index
      %43 = vector.load %arg9[%c0_27, %c0_28, %c0_29] : memref<1x16x64xbf16, #tpu.memory_space<vmem>>, vector<1x16x64xbf16>
      %44 = vector.shape_cast %43 : vector<1x16x64xbf16> to vector<16x64xbf16>
      %45 = arith.extf %44 : vector<16x64xbf16> to vector<16x64xf32>
      %46 = arith.addf %42, %45 : vector<16x64xf32>
      %47 = arith.truncf %46 : vector<16x64xf32> to vector<16x64xbf16>
      %c0_30 = arith.constant 0 : index
      %c0_31 = arith.constant 0 : index
      %c0_32 = arith.constant 0 : index
      %48 = vector.load %arg10[%c0_30, %c0_31, %c0_32] : memref<1x16x64xbf16, #tpu.memory_space<vmem>>, vector<1x16x64xbf16>
      %49 = vector.shape_cast %48 : vector<1x16x64xbf16> to vector<16x64xbf16>
      %50 = vector.shape_cast %47 : vector<16x64xbf16> to vector<1x16x64xbf16>
      tpu.vector_store %arg10[%c0_30, %c0_31, %c0_32], %50 {strides = array<i32>} : memref<1x16x64xbf16, #tpu.memory_space<vmem>>, vector<1x16x64xbf16>,
    } else {
    }
    return
  }
  func.func @transform_0(%arg0: i32, %arg1: i32, %arg2: i32) -> (i32, i32, i32) {
    %c0_i32 = arith.constant 0 : i32
    %c0_i32_0 = arith.constant 0 : i32
    return %arg0, %arg1, %c0_i32 : i32, i32, i32
  }
  func.func @transform_1(%arg0: i32, %arg1: i32, %arg2: i32) -> (i32, i32) {
    %c0_i32 = arith.constant 0 : i32
    %c0_i32_0 = arith.constant 0 : i32
    return %c0_i32, %arg2 : i32, i32
  }
  func.func @transform_2(%arg0: i32, %arg1: i32, %arg2: i32) -> (i32, i32) {
    %c0_i32 = arith.constant 0 : i32
    %c0_i32_0 = arith.constant 0 : i32
    return %c0_i32, %arg2 : i32, i32
  }
  func.func @transform_3(%arg0: i32, %arg1: i32, %arg2: i32) -> (i32, i32) {
    %c0_i32 = arith.constant 0 : i32
    %c0_i32_0 = arith.constant 0 : i32
    return %arg2, %c0_i32 : i32, i32
  }
  func.func @transform_4(%arg0: i32, %arg1: i32, %arg2: i32) -> (i32, i32) {
    %c0_i32 = arith.constant 0 : i32
    %c0_i32_0 = arith.constant 0 : i32
    %c0_i32_1 = arith.constant 0 : i32
    return %c0_i32, %c0_i32_0 : i32, i32
  }
  func.func @transform_5(%arg0: i32, %arg1: i32, %arg2: i32) -> (i32, i32, i32) {
    %c0_i32 = arith.constant 0 : i32
    %c0_i32_0 = arith.constant 0 : i32
    %c0_i32_1 = arith.constant 0 : i32
    return %arg0, %c0_i32, %c0_i32_0 : i32, i32, i32
  }
  func.func @transform_6(%arg0: i32, %arg1: i32, %arg2: i32) -> (i32, i32, i32) {
    %c0_i32 = arith.constant 0 : i32
    %c0_i32_0 = arith.constant 0 : i32
    return %arg0, %arg1, %c0_i32 : i32, i32, i32
  }
  func.func @transform_7(%arg0: i32, %arg1: i32, %arg2: i32) -> (i32, i32, i32) {
    %c0_i32 = arith.constant 0 : i32
    %c0_i32_0 = arith.constant 0 : i32
    return %arg0, %arg1, %c0_i32 : i32, i32, i32
  }
}

module attributes {stable_mosaic.version = 11 : i64} {
  func.func @_gemm_kernel(%arg0: i32, %arg1: i32, %arg2: i32, %arg3: i32, %arg4: memref<1x32x64xbf16, #tpu.memory_space<vmem>>, %arg5: memref<64x64xbf16, #tpu.memory_space<vmem>>, %arg6: memref<1x64xbf16, #tpu.memory_space<vmem>>, %arg7: memref<1x1x64xbf16, #tpu.memory_space<vmem>>, %arg8: memref<1x32x64xbf16, #tpu.memory_space<vmem>>, %arg9: memref<1x32x64xbf16, #tpu.memory_space<vmem>>, %arg10: memref<32x64xf32, #tpu.memory_space<vmem>>) attributes {dimension_semantics = [#tpu.dimension_semantics<parallel>, #tpu.dimension_semantics<parallel>, #tpu.dimension_semantics<parallel>, #tpu.dimension_semantics<arbitrary>], iteration_bounds = array<i64: 2, 1, 1, 1>, scalar_prefetch = 0 : i64, scratch_operands = 1 : i64, tpu.core_type = #tpu.core_type<tc>, window_params = [{transform_indices = @transform_0, window_bounds = array<i64: 1, 32, 64>}, {transform_indices = @transform_1, window_bounds = array<i64: 64, 64>}, {transform_indices = @transform_2, window_bounds = array<i64: 1, 64>}, {transform_indices = @transform_3, window_bounds = array<i64: 1, 1, 64>}, {transform_indices = @transform_4, window_bounds = array<i64: 1, 32, 64>}, {transform_indices = @transform_5, window_bounds = array<i64: 1, 32, 64>}]} {
    %c0_i32 = arith.constant 0 : i32
    %0 = arith.cmpi eq, %arg3, %c0_i32 : i32
    %1 = arith.extui %0 : i1 to i32
    %c0_i32_0 = arith.constant 0 : i32
    %2 = arith.cmpi ne, %1, %c0_i32_0 : i32
    scf.if %2 {
      %cst_11 = arith.constant 0.000000e+00 : f32
      %13 = vector.broadcast %cst_11 : f32 to vector<32x64xf32>
      %c0_12 = arith.constant 0 : index
      %c0_13 = arith.constant 0 : index
      %14 = vector.load %arg10[%c0_12, %c0_13] : memref<32x64xf32, #tpu.memory_space<vmem>>, vector<32x64xf32>
      tpu.vector_store %arg10[%c0_12, %c0_13], %13 {strides = array<i32>} : memref<32x64xf32, #tpu.memory_space<vmem>>, vector<32x64xf32>,
    } else {
    }
    %c0 = arith.constant 0 : index
    %c0_1 = arith.constant 0 : index
    %3 = vector.load %arg10[%c0, %c0_1] : memref<32x64xf32, #tpu.memory_space<vmem>>, vector<32x64xf32>
    %c0_2 = arith.constant 0 : index
    %c0_3 = arith.constant 0 : index
    %c0_4 = arith.constant 0 : index
    %4 = vector.load %arg4[%c0_2, %c0_3, %c0_4] : memref<1x32x64xbf16, #tpu.memory_space<vmem>>, vector<1x32x64xbf16>
    %5 = vector.shape_cast %4 : vector<1x32x64xbf16> to vector<32x64xbf16>
    %c0_5 = arith.constant 0 : index
    %c0_6 = arith.constant 0 : index
    %6 = vector.load %arg5[%c0_5, %c0_6] : memref<64x64xbf16, #tpu.memory_space<vmem>>, vector<64x64xbf16>
    %cst = arith.constant dense<0.000000e+00> : vector<32x64xf32>
    %7 = tpu.matmul %5, %6, %cst {dimension_numbers = #tpu.dot_dimension_numbers<[1], [0], [0], [1], [0, 0, 1, 1], [], []>} : vector<32x64xbf16>, vector<64x64xbf16>, vector<32x64xf32> -> vector<32x64xf32>
    %8 = arith.addf %3, %7 : vector<32x64xf32>
    %c0_7 = arith.constant 0 : index
    %c0_8 = arith.constant 0 : index
    %9 = vector.load %arg10[%c0_7, %c0_8] : memref<32x64xf32, #tpu.memory_space<vmem>>, vector<32x64xf32>
    tpu.vector_store %arg10[%c0_7, %c0_8], %8 {strides = array<i32>} : memref<32x64xf32, #tpu.memory_space<vmem>>, vector<32x64xf32>,
    %c0_i32_9 = arith.constant 0 : i32
    %10 = arith.cmpi eq, %arg3, %c0_i32_9 : i32
    %11 = arith.extui %10 : i1 to i32
    %c0_i32_10 = arith.constant 0 : i32
    %12 = arith.cmpi ne, %11, %c0_i32_10 : i32
    scf.if %12 {
      %c0_11 = arith.constant 0 : index
      %c0_12 = arith.constant 0 : index
      %13 = vector.load %arg10[%c0_11, %c0_12] : memref<32x64xf32, #tpu.memory_space<vmem>>, vector<32x64xf32>
      %c0_13 = arith.constant 0 : index
      %c0_14 = arith.constant 0 : index
      %14 = vector.load %arg6[%c0_13, %c0_14] : memref<1x64xbf16, #tpu.memory_space<vmem>>, vector<1x64xbf16>
      %15 = arith.extf %14 : vector<1x64xbf16> to vector<1x64xf32>
      %16 = vector.broadcast %15 : vector<1x64xf32> to vector<32x64xf32>
      %17 = arith.addf %13, %16 : vector<32x64xf32>
      %c0_15 = arith.constant 0 : index
      %c0_16 = arith.constant 0 : index
      %c0_17 = arith.constant 0 : index
      %18 = vector.load %arg7[%c0_15, %c0_16, %c0_17] : memref<1x1x64xbf16, #tpu.memory_space<vmem>>, vector<1x1x64xbf16>
      %19 = vector.shape_cast %18 : vector<1x1x64xbf16> to vector<1x64xbf16>
      %20 = arith.extf %19 : vector<1x64xbf16> to vector<1x64xf32>
      %21 = vector.broadcast %20 : vector<1x64xf32> to vector<32x64xf32>
      %22 = arith.mulf %17, %21 : vector<32x64xf32>
      %c0_18 = arith.constant 0 : index
      %c0_19 = arith.constant 0 : index
      %c0_20 = arith.constant 0 : index
      %23 = vector.load %arg8[%c0_18, %c0_19, %c0_20] : memref<1x32x64xbf16, #tpu.memory_space<vmem>>, vector<1x32x64xbf16>
      %24 = vector.shape_cast %23 : vector<1x32x64xbf16> to vector<32x64xbf16>
      %25 = arith.extf %24 : vector<32x64xbf16> to vector<32x64xf32>
      %26 = arith.addf %22, %25 : vector<32x64xf32>
      %27 = arith.truncf %26 : vector<32x64xf32> to vector<32x64xbf16>
      %c0_21 = arith.constant 0 : index
      %c0_22 = arith.constant 0 : index
      %c0_23 = arith.constant 0 : index
      %28 = vector.load %arg9[%c0_21, %c0_22, %c0_23] : memref<1x32x64xbf16, #tpu.memory_space<vmem>>, vector<1x32x64xbf16>
      %29 = vector.shape_cast %28 : vector<1x32x64xbf16> to vector<32x64xbf16>
      %30 = vector.shape_cast %27 : vector<32x64xbf16> to vector<1x32x64xbf16>
      tpu.vector_store %arg9[%c0_21, %c0_22, %c0_23], %30 {strides = array<i32>} : memref<1x32x64xbf16, #tpu.memory_space<vmem>>, vector<1x32x64xbf16>,
    } else {
    }
    return
  }
  func.func @transform_0(%arg0: i32, %arg1: i32, %arg2: i32, %arg3: i32) -> (i32, i32, i32) {
    %c0_i32 = arith.constant 0 : i32
    return %arg0, %arg1, %arg3 : i32, i32, i32
  }
  func.func @transform_1(%arg0: i32, %arg1: i32, %arg2: i32, %arg3: i32) -> (i32, i32) {
    %c0_i32 = arith.constant 0 : i32
    return %arg3, %arg2 : i32, i32
  }
  func.func @transform_2(%arg0: i32, %arg1: i32, %arg2: i32, %arg3: i32) -> (i32, i32) {
    %c0_i32 = arith.constant 0 : i32
    %c0_i32_0 = arith.constant 0 : i32
    return %c0_i32, %arg2 : i32, i32
  }
  func.func @transform_3(%arg0: i32, %arg1: i32, %arg2: i32, %arg3: i32) -> (i32, i32, i32) {
    %c0_i32 = arith.constant 0 : i32
    %c0_i32_0 = arith.constant 0 : i32
    return %arg0, %c0_i32, %arg2 : i32, i32, i32
  }
  func.func @transform_4(%arg0: i32, %arg1: i32, %arg2: i32, %arg3: i32) -> (i32, i32, i32) {
    %c0_i32 = arith.constant 0 : i32
    return %arg0, %arg1, %arg2 : i32, i32, i32
  }
  func.func @transform_5(%arg0: i32, %arg1: i32, %arg2: i32, %arg3: i32) -> (i32, i32, i32) {
    %c0_i32 = arith.constant 0 : i32
    return %arg0, %arg1, %arg2 : i32, i32, i32
  }
}

module attributes {stable_mosaic.version = 11 : i64} {
  func.func @_mlp_kernel(%arg0: i32, %arg1: i32, %arg2: i32, %arg3: memref<1x32x64xbf16, #tpu.memory_space<vmem>>, %arg4: memref<64x256xbf16, #tpu.memory_space<vmem>>, %arg5: memref<1x256xbf16, #tpu.memory_space<vmem>>, %arg6: memref<256x64xbf16, #tpu.memory_space<vmem>>, %arg7: memref<1x64xbf16, #tpu.memory_space<vmem>>, %arg8: memref<1x1x64xbf16, #tpu.memory_space<vmem>>, %arg9: memref<1x32x64xbf16, #tpu.memory_space<vmem>>, %arg10: memref<1x32x64xbf16, #tpu.memory_space<vmem>>, %arg11: memref<32x64xf32, #tpu.memory_space<vmem>>) attributes {dimension_semantics = [#tpu.dimension_semantics<parallel>, #tpu.dimension_semantics<parallel>, #tpu.dimension_semantics<arbitrary>], iteration_bounds = array<i64: 2, 1, 1>, scalar_prefetch = 0 : i64, scratch_operands = 1 : i64, tpu.core_type = #tpu.core_type<tc>, window_params = [{transform_indices = @transform_0, window_bounds = array<i64: 1, 32, 64>}, {transform_indices = @transform_1, window_bounds = array<i64: 64, 256>}, {transform_indices = @transform_2, window_bounds = array<i64: 1, 256>}, {transform_indices = @transform_3, window_bounds = array<i64: 256, 64>}, {pipeline_mode = #tpu.pipeline_mode<synchronous>, transform_indices = @transform_4, window_bounds = array<i64: 1, 64>}, {transform_indices = @transform_5, window_bounds = array<i64: 1, 1, 64>}, {transform_indices = @transform_6, window_bounds = array<i64: 1, 32, 64>}, {transform_indices = @transform_7, window_bounds = array<i64: 1, 32, 64>}]} {
    %c0_i32 = arith.constant 0 : i32
    %0 = arith.cmpi eq, %arg2, %c0_i32 : i32
    %1 = arith.extui %0 : i1 to i32
    %c0_i32_0 = arith.constant 0 : i32
    %2 = arith.cmpi ne, %1, %c0_i32_0 : i32
    scf.if %2 {
      %cst_20 = arith.constant 0.000000e+00 : f32
      %33 = vector.broadcast %cst_20 : f32 to vector<32x64xf32>
      %c0_21 = arith.constant 0 : index
      %c0_22 = arith.constant 0 : index
      %34 = vector.load %arg11[%c0_21, %c0_22] : memref<32x64xf32, #tpu.memory_space<vmem>>, vector<32x64xf32>
      tpu.vector_store %arg11[%c0_21, %c0_22], %33 {strides = array<i32>} : memref<32x64xf32, #tpu.memory_space<vmem>>, vector<32x64xf32>,
    } else {
    }
    %c0 = arith.constant 0 : index
    %c0_1 = arith.constant 0 : index
    %c0_2 = arith.constant 0 : index
    %3 = vector.load %arg3[%c0, %c0_1, %c0_2] : memref<1x32x64xbf16, #tpu.memory_space<vmem>>, vector<1x32x64xbf16>
    %4 = vector.shape_cast %3 : vector<1x32x64xbf16> to vector<32x64xbf16>
    %c0_3 = arith.constant 0 : index
    %c0_4 = arith.constant 0 : index
    %5 = vector.load %arg4[%c0_3, %c0_4] : memref<64x256xbf16, #tpu.memory_space<vmem>>, vector<64x256xbf16>
    %cst = arith.constant dense<0.000000e+00> : vector<32x256xf32>
    %6 = tpu.matmul %4, %5, %cst {dimension_numbers = #tpu.dot_dimension_numbers<[1], [0], [0], [1], [0, 0, 1, 1], [], []>} : vector<32x64xbf16>, vector<64x256xbf16>, vector<32x256xf32> -> vector<32x256xf32>
    %c0_5 = arith.constant 0 : index
    %c0_6 = arith.constant 0 : index
    %7 = vector.load %arg5[%c0_5, %c0_6] : memref<1x256xbf16, #tpu.memory_space<vmem>>, vector<1x256xbf16>
    %8 = arith.extf %7 : vector<1x256xbf16> to vector<1x256xf32>
    %9 = vector.broadcast %8 : vector<1x256xf32> to vector<32x256xf32>
    %10 = arith.addf %6, %9 : vector<32x256xf32>
    %11 = arith.mulf %10, %10 : vector<32x256xf32>
    %12 = arith.mulf %10, %11 : vector<32x256xf32>
    %cst_7 = arith.constant 4.471500e-02 : f32
    %13 = vector.broadcast %cst_7 : f32 to vector<32x256xf32>
    %14 = arith.mulf %13, %12 : vector<32x256xf32>
    %15 = arith.addf %10, %14 : vector<32x256xf32>
    %cst_8 = arith.constant 0.797884583 : f32
    %16 = vector.broadcast %cst_8 : f32 to vector<32x256xf32>
    %17 = arith.mulf %16, %15 : vector<32x256xf32>
    %18 = math.tanh %17 : vector<32x256xf32>
    %cst_9 = arith.constant 1.000000e+00 : f32
    %19 = vector.broadcast %cst_9 : f32 to vector<32x256xf32>
    %20 = arith.addf %19, %18 : vector<32x256xf32>
    %cst_10 = arith.constant 5.000000e-01 : f32
    %21 = vector.broadcast %cst_10 : f32 to vector<32x256xf32>
    %22 = arith.mulf %21, %20 : vector<32x256xf32>
    %23 = arith.mulf %10, %22 : vector<32x256xf32>
    %c0_11 = arith.constant 0 : index
    %c0_12 = arith.constant 0 : index
    %24 = vector.load %arg11[%c0_11, %c0_12] : memref<32x64xf32, #tpu.memory_space<vmem>>, vector<32x64xf32>
    %25 = arith.truncf %23 : vector<32x256xf32> to vector<32x256xbf16>
    %c0_13 = arith.constant 0 : index
    %c0_14 = arith.constant 0 : index
    %26 = vector.load %arg6[%c0_13, %c0_14] : memref<256x64xbf16, #tpu.memory_space<vmem>>, vector<256x64xbf16>
    %cst_15 = arith.constant dense<0.000000e+00> : vector<32x64xf32>
    %27 = tpu.matmul %25, %26, %cst_15 {dimension_numbers = #tpu.dot_dimension_numbers<[1], [0], [0], [1], [0, 0, 1, 1], [], []>} : vector<32x256xbf16>, vector<256x64xbf16>, vector<32x64xf32> -> vector<32x64xf32>
    %28 = arith.addf %24, %27 : vector<32x64xf32>
    %c0_16 = arith.constant 0 : index
    %c0_17 = arith.constant 0 : index
    %29 = vector.load %arg11[%c0_16, %c0_17] : memref<32x64xf32, #tpu.memory_space<vmem>>, vector<32x64xf32>
    tpu.vector_store %arg11[%c0_16, %c0_17], %28 {strides = array<i32>} : memref<32x64xf32, #tpu.memory_space<vmem>>, vector<32x64xf32>,
    %c0_i32_18 = arith.constant 0 : i32
    %30 = arith.cmpi eq, %arg2, %c0_i32_18 : i32
    %31 = arith.extui %30 : i1 to i32
    %c0_i32_19 = arith.constant 0 : i32
    %32 = arith.cmpi ne, %31, %c0_i32_19 : i32
    scf.if %32 {
      %c0_20 = arith.constant 0 : index
      %c0_21 = arith.constant 0 : index
      %33 = vector.load %arg11[%c0_20, %c0_21] : memref<32x64xf32, #tpu.memory_space<vmem>>, vector<32x64xf32>
      %c0_22 = arith.constant 0 : index
      %c0_23 = arith.constant 0 : index
      %34 = vector.load %arg7[%c0_22, %c0_23] : memref<1x64xbf16, #tpu.memory_space<vmem>>, vector<1x64xbf16>
      %35 = arith.extf %34 : vector<1x64xbf16> to vector<1x64xf32>
      %36 = vector.broadcast %35 : vector<1x64xf32> to vector<32x64xf32>
      %37 = arith.addf %33, %36 : vector<32x64xf32>
      %c0_24 = arith.constant 0 : index
      %c0_25 = arith.constant 0 : index
      %c0_26 = arith.constant 0 : index
      %38 = vector.load %arg8[%c0_24, %c0_25, %c0_26] : memref<1x1x64xbf16, #tpu.memory_space<vmem>>, vector<1x1x64xbf16>
      %39 = vector.shape_cast %38 : vector<1x1x64xbf16> to vector<1x64xbf16>
      %40 = arith.extf %39 : vector<1x64xbf16> to vector<1x64xf32>
      %41 = vector.broadcast %40 : vector<1x64xf32> to vector<32x64xf32>
      %42 = arith.mulf %37, %41 : vector<32x64xf32>
      %c0_27 = arith.constant 0 : index
      %c0_28 = arith.constant 0 : index
      %c0_29 = arith.constant 0 : index
      %43 = vector.load %arg9[%c0_27, %c0_28, %c0_29] : memref<1x32x64xbf16, #tpu.memory_space<vmem>>, vector<1x32x64xbf16>
      %44 = vector.shape_cast %43 : vector<1x32x64xbf16> to vector<32x64xbf16>
      %45 = arith.extf %44 : vector<32x64xbf16> to vector<32x64xf32>
      %46 = arith.addf %42, %45 : vector<32x64xf32>
      %47 = arith.truncf %46 : vector<32x64xf32> to vector<32x64xbf16>
      %c0_30 = arith.constant 0 : index
      %c0_31 = arith.constant 0 : index
      %c0_32 = arith.constant 0 : index
      %48 = vector.load %arg10[%c0_30, %c0_31, %c0_32] : memref<1x32x64xbf16, #tpu.memory_space<vmem>>, vector<1x32x64xbf16>
      %49 = vector.shape_cast %48 : vector<1x32x64xbf16> to vector<32x64xbf16>
      %50 = vector.shape_cast %47 : vector<32x64xbf16> to vector<1x32x64xbf16>
      tpu.vector_store %arg10[%c0_30, %c0_31, %c0_32], %50 {strides = array<i32>} : memref<1x32x64xbf16, #tpu.memory_space<vmem>>, vector<1x32x64xbf16>,
    } else {
    }
    return
  }
  func.func @transform_0(%arg0: i32, %arg1: i32, %arg2: i32) -> (i32, i32, i32) {
    %c0_i32 = arith.constant 0 : i32
    %c0_i32_0 = arith.constant 0 : i32
    return %arg0, %arg1, %c0_i32 : i32, i32, i32
  }
  func.func @transform_1(%arg0: i32, %arg1: i32, %arg2: i32) -> (i32, i32) {
    %c0_i32 = arith.constant 0 : i32
    %c0_i32_0 = arith.constant 0 : i32
    return %c0_i32, %arg2 : i32, i32
  }
  func.func @transform_2(%arg0: i32, %arg1: i32, %arg2: i32) -> (i32, i32) {
    %c0_i32 = arith.constant 0 : i32
    %c0_i32_0 = arith.constant 0 : i32
    return %c0_i32, %arg2 : i32, i32
  }
  func.func @transform_3(%arg0: i32, %arg1: i32, %arg2: i32) -> (i32, i32) {
    %c0_i32 = arith.constant 0 : i32
    %c0_i32_0 = arith.constant 0 : i32
    return %arg2, %c0_i32 : i32, i32
  }
  func.func @transform_4(%arg0: i32, %arg1: i32, %arg2: i32) -> (i32, i32) {
    %c0_i32 = arith.constant 0 : i32
    %c0_i32_0 = arith.constant 0 : i32
    %c0_i32_1 = arith.constant 0 : i32
    return %c0_i32, %c0_i32_0 : i32, i32
  }
  func.func @transform_5(%arg0: i32, %arg1: i32, %arg2: i32) -> (i32, i32, i32) {
    %c0_i32 = arith.constant 0 : i32
    %c0_i32_0 = arith.constant 0 : i32
    %c0_i32_1 = arith.constant 0 : i32
    return %arg0, %c0_i32, %c0_i32_0 : i32, i32, i32
  }
  func.func @transform_6(%arg0: i32, %arg1: i32, %arg2: i32) -> (i32, i32, i32) {
    %c0_i32 = arith.constant 0 : i32
    %c0_i32_0 = arith.constant 0 : i32
    return %arg0, %arg1, %c0_i32 : i32, i32, i32
  }
  func.func @transform_7(%arg0: i32, %arg1: i32, %arg2: i32) -> (i32, i32, i32) {
    %c0_i32 = arith.constant 0 : i32
    %c0_i32_0 = arith.constant 0 : i32
    return %arg0, %arg1, %c0_i32 : i32, i32, i32
  }
}

</mosaic_0001>

<bundles_post_ra>
// kernel: forward_layer.16
= control target key start
LH: loop header
LB: loop body
LE: loop exit
PB: predicated region body
PF: predicated region fallthrough
CT: control target
= control target key end

     0   :  { %s496_s12 = smov 0   ;;  %s498_s13 = smov 0   ;;  %s548_s0 = inlined_call_operand.vmem [shape: bf16[2,16,64], index: 0, kind: input, shape index: {}]   ;;  %s549_s1 = inlined_call_operand.vmem [shape: bf16[2,1,64], index: 1, kind: input, shape index: {}]   ;;  %s550_s2 = inlined_call_operand.vmem [shape: bf16[2,1,64], index: 2, kind: input, shape index: {}]   ;;  %s551_s3 = inlined_call_operand.vmem [shape: bf16[2,16,64], index: 3, kind: output, shape index: {}]  }
   0x1   :  { %s500_s14 = smov 0  }
   0x2 LB: > { %s25_s15 = sadd.s32 1, %s470_s13  ;;  %p407_p0 = scmp.ge.s32.totalorder %s474_s14, 1  ;;  %s474_s14 = sphi %s500_s14, %s13_s14   ;;  %s470_s13 = sphi %s498_s13, %s553_s13   ;;  %s466_s12 = sphi %s496_s12, %s552_s12  }
   0x3   : > { %p27_p1 = scmp.ge.s32.totalorder %s25_s15, 2  ;;  %p174_p2 = scmp.lt.s32.totalorder %s474_s14, 3 }
   0x5   : > { %s555_s15 = smov (%p27_p1, %s25_s15), 0  ;;  %p175_p3 = pnand %p407_p0, %p174_p2 }
   0x6   : > { %p213_p4 = scmp.lt.s32.totalorder (!%p175_p3), %s466_s12, 1 }
   0x7   : > { %178 = sbr.rel (%p175_p3) target bundleno = 333 (0x14d), region = 32 }
   0xc   : > { %s557_s12 = smov (!%p213_p4, %s466_s12), 1  ;;  %vm242_vm0 = vcmask 523264   ;;  %v273_v19 = vlaneseq  ;;  %vm295_vm1 = vcmask 519168  }
   0xd   : > { %s416_s16 = sshll.u32 %s557_s12, 3  ;;  %s227_s22 = scalar_lea.vmem %s550_s2, %s557_s12 }
   0xe   : > { %s220_s19 = scalar_lea.vmem %s548_s0, %s416_s16  ;;  %v270_v21 = vld [vmem:[%s227_s22] sm:$0x1]  ;;  %s224_s25 = scalar_lea.vmem %s549_s1, %s557_s12  ;;  %v274_v24 = vshrl.u32 %v273_v19, 7 }
   0xf   : > { %v421_v0 = vld [vmem:[%s220_s19] sm:$0xff]   ;;  %v271_v23 = vunpack.c.l.bf16 %v270_v21  ;;  %s236_s28 = scalar_lea.vmem %s551_s3, %s416_s16 }
  0x10   : > { %v422_v1 = vunpack.c.l.bf16 %v421_v0  ;;  %v423_v2 = vunpack.c.h.bf16 %v421_v0  ;;  %v279_v25 = vld [vmem:[%s224_s25] sm:$0x1]  ;;  %v275_v27 = vsub.s32 0, %v274_v24 }
  0x11   : > { %v272_v26 = vadd.f32 1.0, %v271_v23  ;;  %v280_v28 = vunpack.c.l.bf16 %v279_v25 }
  0x12   : > { %v243_v3 = vsel %vm242_vm0, %v422_v1, 0.0  ;;  %v246_v4 = vsel %vm242_vm0, %v423_v2, 0.0 }
  0x13   : > { %244 = vadd.xlane.f32.xlu0 %v243_v3  ;;  %v276_v29 = vrot.slane %v272_v26, %v275_v27  ;;  %v284_v31 = vrot.slane %v280_v28, %v275_v27 }
  0x17   : > { %247 = vadd.xlane.f32.xlu0 %v246_v4 }
  0x9c   : > { %v245_v5 = vpop.xlane.xlu0 %244 }
  0x9d   : > { %v250_v6 = vmul.f32 0.015625, %v245_v5 }
  0x9f   : > { %v252_v7 = vsub.f32 %v422_v1, %v250_v6 }
  0xa0   : > { %v248_v8 = vpop.xlane.xlu0 %247 }
  0xa1   : > { %v251_v9 = vmul.f32 0.015625, %v248_v8  ;;  %v254_v10 = vmul.f32 %v252_v7, %v252_v7 }
  0xa3   : > { %v253_v11 = vsub.f32 %v423_v2, %v251_v9  ;;  %v256_v12 = vsel %vm242_vm0, %v254_v10, 0.0 }
  0xa4   : > { %257 = vadd.xlane.f32.xlu1 %v256_v12 }
  0xa5   : > { %v255_v13 = vmul.f32 %v253_v11, %v253_v11 }
  0xa7   : > { %v259_v14 = vsel %vm242_vm0, %v255_v13, 0.0 }
  0xa8   : > { %260 = vadd.xlane.f32.xlu1 %v259_v14 }
 0x12d   : > { %v258_v15 = vpop.xlane.xlu1 %257 }
 0x12e   : > { %v262_v16 = vmul.f32 0.015625, %v258_v15 }
 0x130   : > { %v264_v17 = vadd.f32 1e-06, %v262_v16 }
 0x131   : > { %v261_v18 = vpop.xlane.xlu1 %260 }
 0x132   : > { %448 = vrsqrt.f32 %v264_v17  ;;  %v263_v20 = vmul.f32 0.015625, %v261_v18 }
 0x134   : > { %v265_v22 = vadd.f32 1e-06, %v263_v20 }
 0x136   : > { %450 = vrsqrt.f32 %v265_v22 }
 0x13f   : > { %v449_v30 = vpop.eup %448 }
 0x140   : > { %v268_v32 = vmul.f32 %v449_v30, %v252_v7 }
 0x142   : > { %v277_v33 = vmul.f32 %v276_v29, %v268_v32 }
 0x143   : > { %v451_v34 = vpop.eup %450 }
 0x144   : > { %v285_v35 = vadd.f32 %v284_v31, %v277_v33  ;;  %v269_v36 = vmul.f32 %v451_v34, %v253_v11 }
 0x146   : > { %v418_v37 = vpack.c.bf16 %v285_v35, %v285_v35  ;;  %v278_v38 = vmul.f32 %v276_v29, %v269_v36 }
 0x148   : > { %296 = vst.msk [vmem:[%s236_s28] sm:$0xf] %vm295_vm1, %v418_v37  ;;  %v286_v39 = vadd.f32 %v284_v31, %v278_v38 }
 0x14a   : > { %v419_v40 = vpack.c.bf16 %v286_v39, %v286_v39 }
 0x14c   : > { %297 = vst.msk [vmem:[%s236_s28 + $0x4] sm:$0xf] %vm295_vm1, %v419_v40 }
 0x14d PF: > { %s13_s14 = sadd.s32 1, %s474_s14   ;;  %s552_s12 = smov %s470_s13 }
 0x14e   : > { %p10_p5 = scmp.ge.s32.totalorder %s13_s14, 4   ;;  %s553_s13 = smov %s555_s15 }
 0x150   :  { %12 = sbr.rel (!%p10_p5) target bundleno = 2 (0x2), region = 68 }

// kernel: forward_layer.18
= control target key start
LH: loop header
LB: loop body
LE: loop exit
PB: predicated region body
PF: predicated region fallthrough
CT: control target
= control target key end

     0   :  { %s743_s12 = smov 0   ;;  %s745_s13 = smov 0   ;;  %s812_s0 = inlined_call_operand.vmem [shape: bf16[2,16,64], index: 0, kind: input, shape index: {}]   ;;  %s813_s1 = inlined_call_operand.vmem [shape: bf16[64,192], index: 1, kind: input, shape index: {}]   ;;  %s814_s2 = inlined_call_operand.vmem [shape: bf16[1,192], index: 2, kind: input, shape index: {}]   ;;  %s815_s3 = inlined_call_operand.vmem [shape: bf16[2,16,192], index: 3, kind: output, shape index: {}]  }
   0x1   :  { %s747_s14 = smov 0  }
   0x2 LB: > { %s39_s15 = sadd.s32 1, %s715_s13  ;;  %p635_p0 = scmp.ge.s32.totalorder %s719_s14, 1  ;;  %s719_s14 = sphi %s747_s14, %s13_s14   ;;  %s715_s13 = sphi %s745_s13, %s817_s13   ;;  %s711_s12 = sphi %s743_s12, %s816_s12  }
   0x3   : > { %p41_p1 = scmp.ge.s32.totalorder %s39_s15, 2  ;;  %p208_p2 = scmp.lt.s32.totalorder %s719_s14, 3 }
   0x5   : > { %s819_s15 = smov (%p41_p1, %s39_s15), 0  ;;  %p209_p3 = pnand %p635_p0, %p208_p2 }
   0x6   : > { %p263_p4 = scmp.lt.s32.totalorder (!%p209_p3), %s711_s12, 1 }
   0x7   : > { %212 = sbr.rel (%p209_p3) target bundleno = 243 (0xf3), region = 32 }
   0xc   : > { %v684_v0 = vld [vmem:[%s813_s1 + $0x34] ss:$8 sps:$4 sm:$0xff]   ;;  %v686_v1 = vld [vmem:[%s813_s1 + $0x30] ss:$8 sps:$4 sm:$0xff]   ;;  %v721_v2 = vmov 0   ;;  %vm314_vm0 = vcmask 523264   ;;  %v442_v11 = vlaneseq }
   0xd   : > { %413 = vmatprep.mubr.bf16.mxu0 %v721_v2  ;;  %389 = vmatprep.subr.bf16.mxu0 %v684_v0  ;;  %v687_v3 = vld [vmem:[%s813_s1 + $0x24] ss:$8 sps:$4 sm:$0xff]   ;;  %s821_s12 = smov (!%p263_p4, %s711_s12), 1  ;;  %v722_v4 = vmov 0.0   ;;  %v689_v5 = vld [vmem:[%s813_s1 + $0x20] ss:$8 sps:$4 sm:$0xff]  }
   0xe   : > { %315 = vst.msk [vmem:[#allocation2 + $0x8] sm:$0xff] %vm314_vm0, %v722_v4  ;;  %317 = vst.msk [vmem:[#allocation2 + $0x18] sm:$0xff] %vm314_vm0, %v722_v4  ;;  %390 = vmatpush1.bf16.msra.mxu0 %v686_v1  ;;  %v690_v6 = vld [vmem:[%s813_s1 + $0x14] ss:$8 sps:$4 sm:$0xff]   ;;  %s654_s26 = sshll.u32 %s821_s12, 3  ;;  %v443_v12 = vshrl.u32 %v442_v11, 7 }
   0xf   : > { %391 = vmatprep.subr.bf16.mxu0 %v687_v3  ;;  %s273_s29 = scalar_lea.vmem %s812_s0, %s654_s26  ;;  %v692_v7 = vld [vmem:[%s813_s1 + $0x10] ss:$8 sps:$4 sm:$0xff]   ;;  %v693_v8 = vld [vmem:[%s813_s1 + $0x4] ss:$8 sps:$4 sm:$0xff]   ;;  %v695_v9 = vld [vmem:[%s813_s1] ss:$8 sps:$4 sm:$0xff]  }
  0x10   : > { %v696_v10 = vld [vmem:[%s273_s29] sm:$0xff]   ;;  %v444_v17 = vsub.s32 0, %v443_v12  ;;  %v448_v18 = vsub.s32 2, %v443_v12  ;;  %s655_s11 = sshll.u32 %s821_s12, 4  ;;  %vm476_vm1 = vcmask 1043456   ;;  %vm477_vm2 = vcmask 523268  }
  0x11   : > { %v439_v13 = vld [vmem:[%s814_s2] sm:$0x3]  ;;  %s305_s18 = scalar_lea.vmem %s815_s3, %s655_s11  ;;  %vm478_vm3 = vmor %vm477_vm2, %vm476_vm1 }
  0x12   : > { %392 = vmatpush1.bf16.msra.mxu0 %v689_v5  ;;  %v440_v16 = vunpack.c.l.bf16 %v439_v13 }
  0x13   : > { %393 = vmatprep.subr.bf16.mxu0 %v690_v6 }
  0x14   : > { %v445_v23 = vrot.slane %v440_v16, %v444_v17  ;;  %v449_v24 = vrot.slane %v440_v16, %v448_v18 }
  0x15   : > { %v319_v15 = vld [vmem:[#allocation2 + $0x8] sm:$0xff]  ;;  %v321_v22 = vld [vmem:[#allocation2 + $0x18] sm:$0xff] }
  0x16   : > { %394 = vmatpush1.bf16.msra.mxu0 %v692_v7  ;;  %v455_v27 = vrot.slane %v445_v23, %v444_v17  ;;  %v459_v28 = vrot.slane %v449_v24, %v444_v17 }
  0x17   : > { %395 = vmatprep.subr.bf16.mxu0 %v693_v8 }
  0x1a   : > { %396 = vmatpush1.bf16.msra.mxu0 %v695_v9 }
  0x1d   : > { %649 = vmatmul.mubr.msk.bf16.vlgmr.msra.gmra.mxu0 %vm314_vm0, %v696_v10 }
  0xdd   : > { %v415_v14 = vpop.f32.mrf.mxu0 }
  0xde   : > { %v460_v30 = vadd.f32 %v455_v27, %v415_v14 }
  0xdf   : > { %v417_v19 = vpop.f32.mrf.mxu0 }
  0xe0   : > { %v425_v20 = vadd.f32 %v417_v19, %v319_v15 }
  0xe1   : > { %v419_v21 = vpop.f32.mrf.mxu0 }
  0xe2   : > { %429 = vst.msk [vmem:[#allocation2 + $0x8] sm:$0xff] %vm314_vm0, %v425_v20  ;;  %v462_v34 = vadd.f32 %v455_v27, %v419_v21 }
  0xe3   : > { %v421_v25 = vpop.f32.mrf.mxu0 }
  0xe4   : > { %v427_v26 = vadd.f32 %v421_v25, %v321_v22 }
  0xe6   : > { %431 = vst.msk [vmem:[#allocation2 + $0x18] sm:$0xff] %vm314_vm0, %v427_v26 }
  0xe9   : > { %v436_v29 = vld [vmem:[#allocation2 + $0x8] sm:$0xff] }
  0xea   : > { %v461_v31 = vadd.f32 %v459_v28, %v436_v29 }
  0xec   : > { %v656_v32 = vpack.c.bf16 %v461_v31, %v460_v30 }
  0xed   : > { %v438_v33 = vld [vmem:[#allocation2 + $0x18] sm:$0xff] }
  0xee   : > { %479 = vst.msk [vmem:[%s305_s18] sm:$0xff] %vm478_vm3, %v656_v32  ;;  %v463_v35 = vadd.f32 %v459_v28, %v438_v33 }
  0xf0   : > { %v657_v36 = vpack.c.bf16 %v463_v35, %v462_v34 }
  0xf2   : > { %480 = vst.msk [vmem:[%s305_s18 + $0x8] sm:$0xff] %vm478_vm3, %v657_v36 }
  0xf3 PF: > { %s13_s14 = sadd.s32 1, %s719_s14   ;;  %s816_s12 = smov %s715_s13 }
  0xf4   : > { %p10_p5 = scmp.ge.s32.totalorder %s13_s14, 4   ;;  %s817_s13 = smov %s819_s15 }
  0xf6   :  { %12 = sbr.rel (!%p10_p5) target bundleno = 2 (0x2), region = 76 }

// kernel: forward_layer.22
= control target key start
LH: loop header
LB: loop body
LE: loop exit
PB: predicated region body
PF: predicated region fallthrough
CT: control target
= control target key end

     0   :  { %s744_s15 = smov 0   ;;  %s746_s16 = smov 0   ;;  %s823_s0 = inlined_call_operand.vmem [shape: bf16[2,2,16,32], index: 0, kind: input, shape index: {}]   ;;  %s824_s1 = inlined_call_operand.vmem [shape: bf16[1,32], index: 1, kind: input, shape index: {}]   ;;  %s825_s2 = inlined_call_operand.vmem [shape: bf16[2,16,32], index: 2, kind: input, shape index: {}]   ;;  %s826_s3 = inlined_call_operand.vmem [shape: bf16[2,16,32], index: 3, kind: input, shape index: {}]   ;;  %s827_s4 = inlined_call_operand.vmem [shape: bf16[2,2,16,32], index: 4, kind: output, shape index: {}]  }
   0x1   :  { %s748_s17 = smov 0   ;;  %s750_s18 = smov 0  }
   0x2   :  { %s752_s19 = smov 0  }
   0x3 LB: > { %s29_s20 = sadd.s32 1, %s706_s17  ;;  %s33_s21 = sadd.s32 1, %s710_s18  ;;  %s714_s19 = sphi %s752_s19, %s14_s19   ;;  %s710_s18 = sphi %s750_s18, %s833_s18   ;;  %s706_s17 = sphi %s748_s17, %s832_s17   ;;  %s702_s16 = sphi %s746_s16, %s831_s16   ;;  %s698_s15 = sphi %s744_s15, %s830_s15  }
   0x4   : > { %p31_p0 = scmp.ge.s32.totalorder %s29_s20, 2  ;;  %p598_p1 = scmp.ge.s32.totalorder %s714_s19, 1 }
   0x5   : > { %p232_p2 = scmp.lt.s32.totalorder %s714_s19, 5 }
   0x6   : > { %s835_s20 = smov (%p31_p0, %s29_s20), 0  ;;  %s837_s21 = smov (!%p31_p0, %s33_s21), %s710_s18 }
   0x7   : > { %p233_p3 = pnand %p598_p1, %p232_p2  ;;  %p35_p4 = scmp.ge.s32.totalorder %s837_s21, 2 }
   0x8   : > { %p293_p5 = scmp.lt.s32.totalorder (!%p233_p3), %s702_s16, 1  ;;  %p295_p6 = scmp.lt.s32.totalorder (!%p233_p3), %s698_s15, 1 }
   0x9   : > { %s839_s21 = smov (%p35_p4, %s837_s21), 0  ;;  %236 = sbr.rel (%p233_p3) target bundleno = 552 (0x228), region = 36 }
   0xa   : > { %s716_s5 = smov (!%p233_p3), 32   ;;  %s717_s6 = smov (!%p233_p3), 97  }
   0xb   : > { %s718_s7 = smov (!%p233_p3), 127  }
   0xe   : > { %s841_s16 = smov (!%p293_p5, %s702_s16), 1  ;;  %s843_s15 = smov (!%p295_p6, %s698_s15), 1  ;;  %vm346_vm0 = vcmask 261120   ;;  %v364_v12 = vlaneseq  ;;  %v362_v15 = vld [vmem:[%s824_s1] sm:$0x1]  ;;  %vm378_vm1 = vcmask 1047808  }
   0xf   : > { %s600_s22 = sshll.u32 %s841_s16, 2  ;;  %s599_s23 = sshll.u32 %s843_s15, 1  ;;  %v363_v16 = vunpack.c.l.bf16 %v362_v15  ;;  %vm440_vm3 = vcmask 257024  }
  0x10   : > { %s777_s24 = sadd.s32 %s600_s22, %s599_s23  ;;  %v365_v14 = vshrl.u32 %v364_v12, 7  ;;  %s613_s8 = sshll.u32 %s841_s16, 3  ;;  %v392_v35 = vand.u32 127, %v364_v12 }
  0x11   : > { %s601_s25 = sshll.u32 %s777_s24, 2  ;;  %s314_s11 = scalar_lea.vmem %s825_s2, %s613_s8 }
  0x12   : > { %s304_s28 = scalar_lea.vmem %s823_s0, %s601_s25  ;;  %v366_v17 = vsub.s32 0, %v365_v14  ;;  %s324_s14 = scalar_lea.vmem %s826_s3, %s613_s8  ;;  %v397_v36 = vand.u32 1, %v392_v35  ;;  %v622_v37 = vld [vmem:[%s314_s11] sm:$0xff]  }
  0x13   : > { %v618_v0 = vld [vmem:[%s304_s28] sm:$0xff]   ;;  %v623_v40 = vunpack.c.l.bf16 %v622_v37  ;;  %s338_s22 = scalar_lea.vmem %s827_s4, %s601_s25  ;;  %v624_v50 = vunpack.c.h.bf16 %v622_v37 }
  0x14   : > { %v619_v1 = vunpack.c.l.bf16 %v618_v0  ;;  %v620_v2 = vunpack.c.h.bf16 %v618_v0  ;;  %v367_v18 = vrot.slane %v363_v16, %v366_v17  ;;  %v626_v38 = vld [vmem:[%s324_s14] sm:$0xff]   ;;  %vm795_vm2 = vcmp.eq.s32.totalorder %v397_v36, 0 }
  0x15   : > { %v627_v41 = vunpack.c.l.bf16 %v626_v38  ;;  %v628_v51 = vunpack.c.h.bf16 %v626_v38 }
  0x16   : > { %v344_v3 = vmul.f32 %v619_v1, %v619_v1  ;;  %v345_v4 = vmul.f32 %v620_v2, %v620_v2 }
  0x18   : > { %v347_v5 = vsel %vm346_vm0, %v344_v3, 0.0  ;;  %v350_v6 = vsel %vm346_vm0, %v345_v4, 0.0 }
  0x19   : > { %348 = vadd.xlane.f32.xlu0 %v347_v5 }
  0x1d   : > { %351 = vadd.xlane.f32.xlu0 %v350_v6 }
  0xa2   : > { %v349_v7 = vpop.xlane.xlu0 %348 }
  0xa3   : > { %v354_v8 = vmul.f32 0.03125, %v349_v7 }
  0xa5   : > { %v356_v9 = vadd.f32 1e-06, %v354_v8 }
  0xa6   : > { %v352_v10 = vpop.xlane.xlu0 %351 }
  0xa7   : > { %672 = vrsqrt.f32 %v356_v9  ;;  %v355_v11 = vmul.f32 0.03125, %v352_v10 }
  0xa9   : > { %v357_v13 = vadd.f32 1e-06, %v355_v11 }
  0xab   : > { %674 = vrsqrt.f32 %v357_v13 }
  0xb4   : > { %v673_v19 = vpop.eup %672 }
  0xb5   : > { %v360_v20 = vmul.f32 %v673_v19, %v619_v1 }
  0xb7   : > { %v368_v21 = vmul.f32 %v367_v18, %v360_v20 }
  0xb8   : > { %v675_v22 = vpop.eup %674 }
  0xb9   : > { %379 = vrot.lane.b32.xlu1 %v368_v21, %s716_s5  ;;  %v361_v23 = vmul.f32 %v675_v22, %v620_v2  ;;  %v426_v45 = vmul.f32 %v623_v40, %v368_v21 }
  0xbb   : > { %v369_v24 = vmul.f32 %v367_v18, %v361_v23 }
  0xbd   : > { %382 = vrot.lane.b32.xlu1 %v369_v24, %s716_s5  ;;  %v427_v54 = vmul.f32 %v624_v50, %v369_v24 }
 0x12b   : > { %v380_v25 = vpop.permute.xlu1 %379 }
 0x12c   : > { %v381_v26 = vsel %vm378_vm1, %v380_v25, %v368_v21 }
 0x12d   : > { %385 = vrot.lane.b32.xlu0 %v381_v26, %s716_s5 }
 0x12f   : > { %v383_v27 = vpop.permute.xlu1 %382 }
 0x130   : > { %v384_v28 = vsel %vm378_vm1, %v383_v27, %v369_v24 }
 0x131   : > { %387 = vrot.lane.b32.xlu1 %v384_v28, %s716_s5 }
 0x19f   : > { %v386_v29 = vpop.permute.xlu0 %385 }
 0x1a0   : > { %v389_v30 = vsel %vm378_vm1, %v386_v29, %v368_v21 }
 0x1a1   : > { %418 = vrot.lane.b32.xlu1 %v389_v30, %s717_s6  ;;  %v406_v31 = vsub.f32 0.0, %v389_v30 }
 0x1a3   : > { %v388_v32 = vpop.permute.xlu1 %387 }
 0x1a4   : > { %v390_v33 = vsel %vm378_vm1, %v388_v32, %v369_v24 }
 0x1a5   : > { %410 = vrot.lane.b32.xlu1 %v406_v31, %s718_s7  ;;  %v407_v34 = vsub.f32 0.0, %v390_v33 }
 0x1a9   : > { %412 = vrot.lane.b32.xlu1 %v407_v34, %s718_s7 }
 0x1ad   : > { %420 = vrot.lane.b32.xlu1 %v390_v33, %s717_s6 }
 0x213   : > { %v419_v39 = vpop.permute.xlu1 %418 }
 0x217   : > { %v411_v43 = vpop.permute.xlu1 %410 }
 0x218   : > { %v424_v44 = vsel %vm795_vm2, %v411_v43, %v419_v39 }
 0x219   : > { %v428_v46 = vmul.f32 %v627_v41, %v424_v44 }
 0x21b   : > { %v430_v47 = vadd.f32 %v428_v46, %v426_v45  ;;  %v413_v48 = vpop.permute.xlu1 %412 }
 0x21d   : > { %v615_v49 = vpack.c.bf16 %v430_v47, %v430_v47 }
 0x21f   : > { %441 = vst.msk [vmem:[%s338_s22] sm:$0xf] %vm440_vm3, %v615_v49  ;;  %v421_v52 = vpop.permute.xlu1 %420 }
 0x220   : > { %v425_v53 = vsel %vm795_vm2, %v413_v48, %v421_v52 }
 0x221   : > { %v429_v55 = vmul.f32 %v628_v51, %v425_v53 }
 0x223   : > { %v431_v56 = vadd.f32 %v429_v55, %v427_v54 }
 0x225   : > { %v616_v57 = vpack.c.bf16 %v431_v56, %v431_v56 }
 0x227   : > { %442 = vst.msk [vmem:[%s338_s22 + $0x4] sm:$0xf] %vm440_vm3, %v616_v57 }
 0x228 PF: > { %s14_s19 = sadd.s32 1, %s714_s19   ;;  %s830_s15 = smov %s706_s17 }
 0x229   : > { %p11_p7 = scmp.ge.s32.totalorder %s14_s19, 6   ;;  %s831_s16 = smov %s710_s18 }
 0x22a   : > { %s832_s17 = smov %s835_s20  ;;  %s833_s18 = smov %s839_s21 }
 0x22b   :  { %13 = sbr.rel (!%p11_p7) target bundleno = 3 (0x3), region = 72 }

// kernel: forward_layer.17
= control target key start
LH: loop header
LB: loop body
LE: loop exit
PB: predicated region body
PF: predicated region fallthrough
CT: control target
= control target key end

     0   :  { %s816_s12 = smov 0   ;;  %s818_s13 = smov 0   ;;  %s890_s0 = inlined_call_operand.vmem [shape: bf16[2,32,64], index: 0, kind: input, shape index: {}]   ;;  %s891_s1 = inlined_call_operand.vmem [shape: bf16[64,192], index: 1, kind: input, shape index: {}]   ;;  %s892_s2 = inlined_call_operand.vmem [shape: bf16[1,192], index: 2, kind: input, shape index: {}]   ;;  %s893_s3 = inlined_call_operand.vmem [shape: bf16[2,32,192], index: 3, kind: output, shape index: {}]  }
   0x1   :  { %s820_s14 = smov 0  }
   0x2 LB: > { %s39_s15 = sadd.s32 1, %s788_s13  ;;  %p693_p0 = scmp.ge.s32.totalorder %s792_s14, 1  ;;  %s792_s14 = sphi %s820_s14, %s13_s14   ;;  %s788_s13 = sphi %s818_s13, %s895_s13   ;;  %s784_s12 = sphi %s816_s12, %s894_s12  }
   0x3   : > { %p41_p1 = scmp.ge.s32.totalorder %s39_s15, 2  ;;  %p208_p2 = scmp.lt.s32.totalorder %s792_s14, 3 }
   0x5   : > { %s897_s15 = smov (%p41_p1, %s39_s15), 0  ;;  %p209_p3 = pnand %p693_p0, %p208_p2 }
   0x6   : > { %p263_p4 = scmp.lt.s32.totalorder (!%p209_p3), %s784_s12, 1 }
   0x7   : > { %212 = sbr.rel (%p209_p3) target bundleno = 245 (0xf5), region = 32 }
   0xc   : > { %v756_v0 = vld [vmem:[%s891_s1 + $0x34] ss:$8 sps:$4 sm:$0xff]   ;;  %v758_v1 = vld [vmem:[%s891_s1 + $0x30] ss:$8 sps:$4 sm:$0xff]   ;;  %v794_v2 = vmov 0   ;;  %vm314_vm0 = vcmask 523264   ;;  %v482_v12 = vlaneseq }
   0xd   : > { %431 = vmatprep.mubr.bf16.mxu0 %v794_v2  ;;  %441 = vmatprep.mubr.bf16.mxu1 %v794_v2  ;;  %v759_v3 = vld [vmem:[%s891_s1 + $0x24] ss:$8 sps:$4 sm:$0xff]   ;;  %s899_s12 = smov (!%p263_p4, %s784_s12), 1  ;;  %v795_v4 = vmov 0.0   ;;  %v761_v5 = vld [vmem:[%s891_s1 + $0x20] ss:$8 sps:$4 sm:$0xff]  }
   0xe   : > { %407 = vmatprep.subr.bf16.mxu0 %v756_v0  ;;  %722 = vmatprep.subr.bf16.mxu1 %v756_v0  ;;  %315 = vst.msk [vmem:[#allocation2 + $0x8] sm:$0xff] %vm314_vm0, %v795_v4  ;;  %317 = vst.msk [vmem:[#allocation2 + $0x18] sm:$0xff] %vm314_vm0, %v795_v4  ;;  %v762_v6 = vld [vmem:[%s891_s1 + $0x14] ss:$8 sps:$4 sm:$0xff]   ;;  %s716_s26 = sshll.u32 %s899_s12, 4  ;;  %v483_v14 = vshrl.u32 %v482_v12, 7 }
   0xf   : > { %319 = vst.msk [vmem:[#allocation2 + $0x28] sm:$0xff] %vm314_vm0, %v795_v4  ;;  %321 = vst.msk [vmem:[#allocation2 + $0x38] sm:$0xff] %vm314_vm0, %v795_v4  ;;  %408 = vmatpush1.bf16.msra.mxu0 %v758_v1  ;;  %726 = vmatpush1.bf16.msra.mxu1 %v758_v1  ;;  %s273_s29 = scalar_lea.vmem %s890_s0, %s716_s26  ;;  %v764_v7 = vld [vmem:[%s891_s1 + $0x10] ss:$8 sps:$4 sm:$0xff]   ;;  %v765_v8 = vld [vmem:[%s891_s1 + $0x4] ss:$8 sps:$4 sm:$0xff]  }
  0x10   : > { %409 = vmatprep.subr.bf16.mxu0 %v759_v3  ;;  %723 = vmatprep.subr.bf16.mxu1 %v759_v3  ;;  %v767_v9 = vld [vmem:[%s891_s1] ss:$8 sps:$4 sm:$0xff]   ;;  %v484_v20 = vsub.s32 0, %v483_v14  ;;  %v488_v21 = vsub.s32 2, %v483_v14  ;;  %s717_s11 = sshll.u32 %s899_s12, 5  ;;  %vm532_vm1 = vcmask 1043456  }
  0x11   : > { %v768_v10 = vld [vmem:[%s273_s29] sm:$0xff]   ;;  %v769_v11 = vld [vmem:[%s273_s29 + $0x8] sm:$0xff]   ;;  %vm533_vm2 = vcmask 523268   ;;  %s305_s18 = scalar_lea.vmem %s893_s3, %s717_s11 }
  0x12   : > { %v479_v13 = vld [vmem:[%s892_s2] sm:$0x3]  ;;  %vm534_vm3 = vmor %vm533_vm2, %vm532_vm1 }
  0x13   : > { %410 = vmatpush1.bf16.msra.mxu0 %v761_v5  ;;  %727 = vmatpush1.bf16.msra.mxu1 %v761_v5  ;;  %v480_v16 = vunpack.c.l.bf16 %v479_v13 }
  0x14   : > { %411 = vmatprep.subr.bf16.mxu0 %v762_v6  ;;  %724 = vmatprep.subr.bf16.mxu1 %v762_v6 }
  0x15   : > { %v323_v18 = vld [vmem:[#allocation2 + $0x8] sm:$0xff]  ;;  %v325_v28 = vld [vmem:[#allocation2 + $0x18] sm:$0xff]  ;;  %v485_v30 = vrot.slane %v480_v16, %v484_v20  ;;  %v489_v31 = vrot.slane %v480_v16, %v488_v21 }
  0x16   : > { %v327_v19 = vld [vmem:[#allocation2 + $0x28] sm:$0xff]  ;;  %v329_v29 = vld [vmem:[#allocation2 + $0x38] sm:$0xff] }
  0x17   : > { %412 = vmatpush1.bf16.msra.mxu0 %v764_v7  ;;  %728 = vmatpush1.bf16.msra.mxu1 %v764_v7  ;;  %v495_v36 = vrot.slane %v485_v30, %v484_v20  ;;  %v499_v37 = vrot.slane %v489_v31, %v484_v20 }
  0x18   : > { %413 = vmatprep.subr.bf16.mxu0 %v765_v8  ;;  %725 = vmatprep.subr.bf16.mxu1 %v765_v8 }
  0x1b   : > { %414 = vmatpush1.bf16.msra.mxu0 %v767_v9  ;;  %729 = vmatpush1.bf16.msra.mxu1 %v767_v9 }
  0x1e   : > { %708 = vmatmul.mubr.msk.bf16.vlgmr.msra.gmra.mxu0 %vm314_vm0, %v768_v10  ;;  %709 = vmatmul.mubr.msk.bf16.vlgmr.msra.gmra.mxu1 %vm314_vm0, %v769_v11 }
  0xde   : > { %v433_v15 = vpop.f32.mrf.mxu0  ;;  %v443_v17 = vpop.f32.mrf.mxu1 }
  0xdf   : > { %v500_v40 = vadd.f32 %v495_v36, %v433_v15  ;;  %v504_v41 = vadd.f32 %v495_v36, %v443_v17 }
  0xe0   : > { %v435_v22 = vpop.f32.mrf.mxu0  ;;  %v445_v23 = vpop.f32.mrf.mxu1 }
  0xe1   : > { %v453_v24 = vadd.f32 %v435_v22, %v323_v18  ;;  %v457_v25 = vadd.f32 %v445_v23, %v327_v19 }
  0xe2   : > { %v437_v26 = vpop.f32.mrf.mxu0  ;;  %v447_v27 = vpop.f32.mrf.mxu1 }
  0xe3   : > { %461 = vst.msk [vmem:[#allocation2 + $0x8] sm:$0xff] %vm314_vm0, %v453_v24  ;;  %465 = vst.msk [vmem:[#allocation2 + $0x28] sm:$0xff] %vm314_vm0, %v457_v25  ;;  %v502_v48 = vadd.f32 %v495_v36, %v437_v26  ;;  %v506_v49 = vadd.f32 %v495_v36, %v447_v27 }
  0xe4   : > { %v439_v32 = vpop.f32.mrf.mxu0  ;;  %v449_v33 = vpop.f32.mrf.mxu1 }
  0xe5   : > { %v455_v34 = vadd.f32 %v439_v32, %v325_v28  ;;  %v459_v35 = vadd.f32 %v449_v33, %v329_v29 }
  0xe7   : > { %463 = vst.msk [vmem:[#allocation2 + $0x18] sm:$0xff] %vm314_vm0, %v455_v34  ;;  %467 = vst.msk [vmem:[#allocation2 + $0x38] sm:$0xff] %vm314_vm0, %v459_v35 }
  0xea   : > { %v472_v38 = vld [vmem:[#allocation2 + $0x8] sm:$0xff] }
  0xeb   : > { %v476_v39 = vld [vmem:[#allocation2 + $0x28] sm:$0xff]  ;;  %v501_v42 = vadd.f32 %v499_v37, %v472_v38 }
  0xec   : > { %v505_v43 = vadd.f32 %v499_v37, %v476_v39 }
  0xed   : > { %v718_v44 = vpack.c.bf16 %v501_v42, %v500_v40 }
  0xee   : > { %v720_v45 = vpack.c.bf16 %v505_v43, %v504_v41  ;;  %v474_v46 = vld [vmem:[#allocation2 + $0x18] sm:$0xff] }
  0xef   : > { %v478_v47 = vld [vmem:[#allocation2 + $0x38] sm:$0xff]  ;;  %535 = vst.msk [vmem:[%s305_s18] sm:$0xff] %vm534_vm3, %v718_v44  ;;  %v503_v50 = vadd.f32 %v499_v37, %v474_v46 }
  0xf0   : > { %537 = vst.msk [vmem:[%s305_s18 + $0x10] sm:$0xff] %vm534_vm3, %v720_v45  ;;  %v507_v51 = vadd.f32 %v499_v37, %v478_v47 }
  0xf1   : > { %v719_v52 = vpack.c.bf16 %v503_v50, %v502_v48 }
  0xf2   : > { %v721_v53 = vpack.c.bf16 %v507_v51, %v506_v49 }
  0xf3   : > { %536 = vst.msk [vmem:[%s305_s18 + $0x8] sm:$0xff] %vm534_vm3, %v719_v52 }
  0xf4   : > { %538 = vst.msk [vmem:[%s305_s18 + $0x18] sm:$0xff] %vm534_vm3, %v721_v53 }
  0xf5 PF: > { %s13_s14 = sadd.s32 1, %s792_s14   ;;  %s894_s12 = smov %s788_s13 }
  0xf6   : > { %p10_p5 = scmp.ge.s32.totalorder %s13_s14, 4   ;;  %s895_s13 = smov %s897_s15 }
  0xf8   :  { %12 = sbr.rel (!%p10_p5) target bundleno = 2 (0x2), region = 76 }

// kernel: forward_layer.15
= control target key start
LH: loop header
LB: loop body
LE: loop exit
PB: predicated region body
PF: predicated region fallthrough
CT: control target
= control target key end

     0   :  { %s553_s12 = smov 0   ;;  %s555_s13 = smov 0   ;;  %s613_s0 = inlined_call_operand.vmem [shape: bf16[2,32,64], index: 0, kind: input, shape index: {}]   ;;  %s614_s1 = inlined_call_operand.vmem [shape: bf16[2,1,64], index: 1, kind: input, shape index: {}]   ;;  %s615_s2 = inlined_call_operand.vmem [shape: bf16[2,1,64], index: 2, kind: input, shape index: {}]   ;;  %s616_s3 = inlined_call_operand.vmem [shape: bf16[2,32,64], index: 3, kind: output, shape index: {}]  }
   0x1   :  { %s557_s14 = smov 0  }
   0x2 LB: > { %s25_s15 = sadd.s32 1, %s527_s13  ;;  %p451_p0 = scmp.ge.s32.totalorder %s531_s14, 1  ;;  %s531_s14 = sphi %s557_s14, %s13_s14   ;;  %s527_s13 = sphi %s555_s13, %s618_s13   ;;  %s523_s12 = sphi %s553_s12, %s617_s12  }
   0x3   : > { %p27_p1 = scmp.ge.s32.totalorder %s25_s15, 2  ;;  %p174_p2 = scmp.lt.s32.totalorder %s531_s14, 3 }
   0x5   : > { %s620_s15 = smov (%p27_p1, %s25_s15), 0  ;;  %p175_p3 = pnand %p451_p0, %p174_p2 }
   0x6   : > { %p213_p4 = scmp.lt.s32.totalorder (!%p175_p3), %s523_s12, 1 }
   0x7   : > { %178 = sbr.rel (%p175_p3) target bundleno = 337 (0x151), region = 32 }
   0xc   : > { %s622_s12 = smov (!%p213_p4, %s523_s12), 1  ;;  %vm246_vm0 = vcmask 523264   ;;  %v303_v35 = vlaneseq  ;;  %vm337_vm1 = vcmask 519168  }
   0xd   : > { %s462_s16 = sshll.u32 %s622_s12, 4  ;;  %s227_s22 = scalar_lea.vmem %s615_s2, %s622_s12 }
   0xe   : > { %s220_s19 = scalar_lea.vmem %s613_s0, %s462_s16  ;;  %v300_v38 = vld [vmem:[%s227_s22] sm:$0x1]  ;;  %s224_s25 = scalar_lea.vmem %s614_s1, %s622_s12  ;;  %v304_v43 = vshrl.u32 %v303_v35, 7 }
   0xf   : > { %v469_v0 = vld [vmem:[%s220_s19] sm:$0xff]   ;;  %v476_v1 = vld [vmem:[%s220_s19 + $0x8] sm:$0xff]   ;;  %v301_v42 = vunpack.c.l.bf16 %v300_v38  ;;  %s236_s28 = scalar_lea.vmem %s616_s3, %s462_s16 }
  0x10   : > { %v470_v2 = vunpack.c.l.bf16 %v469_v0  ;;  %v474_v3 = vunpack.c.l.bf16 %v476_v1  ;;  %v471_v4 = vunpack.c.h.bf16 %v469_v0  ;;  %v475_v5 = vunpack.c.h.bf16 %v476_v1  ;;  %v311_v46 = vld [vmem:[%s224_s25] sm:$0x1] }
  0x11   : > { %v302_v47 = vadd.f32 1.0, %v301_v42  ;;  %v305_v48 = vsub.s32 0, %v304_v43  ;;  %v312_v49 = vunpack.c.l.bf16 %v311_v46 }
  0x12   : > { %v247_v6 = vsel %vm246_vm0, %v470_v2, 0.0  ;;  %v253_v7 = vsel %vm246_vm0, %v474_v3, 0.0  ;;  %v250_v8 = vsel %vm246_vm0, %v471_v4, 0.0  ;;  %v256_v9 = vsel %vm246_vm0, %v475_v5, 0.0 }
  0x13   : > { %248 = vadd.xlane.f32.xlu0 %v247_v6  ;;  %254 = vadd.xlane.f32.xlu1 %v253_v7  ;;  %v306_v50 = vrot.slane %v302_v47, %v305_v48  ;;  %v316_v52 = vrot.slane %v312_v49, %v305_v48 }
  0x17   : > { %251 = vadd.xlane.f32.xlu0 %v250_v8  ;;  %257 = vadd.xlane.f32.xlu1 %v256_v9 }
  0x9c   : > { %v249_v10 = vpop.xlane.xlu0 %248  ;;  %v255_v11 = vpop.xlane.xlu1 %254 }
  0x9d   : > { %v260_v12 = vmul.f32 0.015625, %v249_v10  ;;  %v262_v13 = vmul.f32 0.015625, %v255_v11 }
  0x9f   : > { %v264_v14 = vsub.f32 %v470_v2, %v260_v12  ;;  %v266_v15 = vsub.f32 %v474_v3, %v262_v13 }
  0xa0   : > { %v252_v16 = vpop.xlane.xlu0 %251  ;;  %v258_v17 = vpop.xlane.xlu1 %257 }
  0xa1   : > { %v261_v18 = vmul.f32 0.015625, %v252_v16  ;;  %v263_v19 = vmul.f32 0.015625, %v258_v17  ;;  %v268_v20 = vmul.f32 %v264_v14, %v264_v14  ;;  %v270_v21 = vmul.f32 %v266_v15, %v266_v15 }
  0xa3   : > { %v265_v22 = vsub.f32 %v471_v4, %v261_v18  ;;  %v267_v23 = vsub.f32 %v475_v5, %v263_v19  ;;  %v272_v24 = vsel %vm246_vm0, %v268_v20, 0.0  ;;  %v278_v25 = vsel %vm246_vm0, %v270_v21, 0.0 }
  0xa4   : > { %273 = vadd.xlane.f32.xlu0 %v272_v24 }
  0xa5   : > { %v269_v26 = vmul.f32 %v265_v22, %v265_v22  ;;  %v271_v27 = vmul.f32 %v267_v23, %v267_v23 }
  0xa7   : > { %v275_v28 = vsel %vm246_vm0, %v269_v26, 0.0  ;;  %v281_v29 = vsel %vm246_vm0, %v271_v27, 0.0 }
  0xa8   : > { %279 = vadd.xlane.f32.xlu0 %v278_v25  ;;  %276 = vadd.xlane.f32.xlu1 %v275_v28 }
  0xac   : > { %282 = vadd.xlane.f32.xlu1 %v281_v29 }
 0x12d   : > { %v274_v30 = vpop.xlane.xlu0 %273 }
 0x12e   : > { %v284_v31 = vmul.f32 0.015625, %v274_v30 }
 0x130   : > { %v288_v32 = vadd.f32 1e-06, %v284_v31 }
 0x131   : > { %v277_v33 = vpop.xlane.xlu1 %276  ;;  %v280_v34 = vpop.xlane.xlu0 %279 }
 0x132   : > { %501 = vrsqrt.f32 %v288_v32  ;;  %v285_v36 = vmul.f32 0.015625, %v277_v33  ;;  %v286_v37 = vmul.f32 0.015625, %v280_v34 }
 0x134   : > { %v289_v39 = vadd.f32 1e-06, %v285_v36  ;;  %v290_v40 = vadd.f32 1e-06, %v286_v37 }
 0x135   : > { %v283_v41 = vpop.xlane.xlu1 %282 }
 0x136   : > { %503 = vrsqrt.f32 %v289_v39  ;;  %v287_v44 = vmul.f32 0.015625, %v283_v41 }
 0x137   : > { %505 = vrsqrt.f32 %v290_v40 }
 0x138   : > { %v291_v45 = vadd.f32 1e-06, %v287_v44 }
 0x13a   : > { %507 = vrsqrt.f32 %v291_v45 }
 0x13f   : > { %v502_v51 = vpop.eup %501 }
 0x140   : > { %v296_v53 = vmul.f32 %v502_v51, %v264_v14 }
 0x142   : > { %v307_v54 = vmul.f32 %v306_v50, %v296_v53 }
 0x143   : > { %v504_v55 = vpop.eup %503 }
 0x144   : > { %v506_v56 = vpop.eup %505  ;;  %v317_v57 = vadd.f32 %v316_v52, %v307_v54  ;;  %v297_v58 = vmul.f32 %v504_v55, %v265_v22 }
 0x145   : > { %v298_v59 = vmul.f32 %v506_v56, %v266_v15 }
 0x146   : > { %v464_v60 = vpack.c.bf16 %v317_v57, %v317_v57  ;;  %v308_v61 = vmul.f32 %v306_v50, %v297_v58 }
 0x147   : > { %v508_v62 = vpop.eup %507  ;;  %v309_v63 = vmul.f32 %v306_v50, %v298_v59 }
 0x148   : > { %338 = vst.msk [vmem:[%s236_s28] sm:$0xf] %vm337_vm1, %v464_v60  ;;  %v318_v0 = vadd.f32 %v316_v52, %v308_v61  ;;  %v299_v1 = vmul.f32 %v508_v62, %v267_v23 }
 0x149   : > { %v319_v2 = vadd.f32 %v316_v52, %v309_v63 }
 0x14a   : > { %v465_v3 = vpack.c.bf16 %v318_v0, %v318_v0  ;;  %v310_v4 = vmul.f32 %v306_v50, %v299_v1 }
 0x14b   : > { %v466_v5 = vpack.c.bf16 %v319_v2, %v319_v2 }
 0x14c   : > { %339 = vst.msk [vmem:[%s236_s28 + $0x4] sm:$0xf] %vm337_vm1, %v465_v3  ;;  %v320_v6 = vadd.f32 %v316_v52, %v310_v4 }
 0x14d   : > { %340 = vst.msk [vmem:[%s236_s28 + $0x8] sm:$0xf] %vm337_vm1, %v466_v5 }
 0x14e   : > { %v467_v7 = vpack.c.bf16 %v320_v6, %v320_v6 }
 0x150   : > { %341 = vst.msk [vmem:[%s236_s28 + $0xc] sm:$0xf] %vm337_vm1, %v467_v7 }
 0x151 PF: > { %s13_s14 = sadd.s32 1, %s531_s14   ;;  %s617_s12 = smov %s527_s13 }
 0x152   : > { %p10_p5 = scmp.ge.s32.totalorder %s13_s14, 4   ;;  %s618_s13 = smov %s620_s15 }
 0x154   :  { %12 = sbr.rel (!%p10_p5) target bundleno = 2 (0x2), region = 68 }

// kernel: forward_layer.20
= control target key start
LH: loop header
LB: loop body
LE: loop exit
PB: predicated region body
PF: predicated region fallthrough
CT: control target
= control target key end

     0   :  { %s845_s15 = smov 0   ;;  %s847_s16 = smov 0   ;;  %s972_s0 = inlined_call_operand.vmem [shape: bf16[2,2,32,32], index: 0, kind: input, shape index: {}]   ;;  %s973_s1 = inlined_call_operand.vmem [shape: bf16[1,32], index: 1, kind: input, shape index: {}]   ;;  %s974_s2 = inlined_call_operand.vmem [shape: bf16[2,32,32], index: 2, kind: input, shape index: {}]   ;;  %s975_s3 = inlined_call_operand.vmem [shape: bf16[2,32,32], index: 3, kind: input, shape index: {}]   ;;  %s976_s4 = inlined_call_operand.vmem [shape: bf16[2,2,32,32], index: 4, kind: output, shape index: {}]  }
   0x1   :  { %s849_s17 = smov 0   ;;  %s851_s18 = smov 0  }
   0x2   :  { %s853_s19 = smov 0  }
   0x3 LB: > { %s29_s20 = sadd.s32 1, %s807_s17  ;;  %s33_s21 = sadd.s32 1, %s811_s18  ;;  %s815_s19 = sphi %s853_s19, %s14_s19   ;;  %s811_s18 = sphi %s851_s18, %s982_s18   ;;  %s807_s17 = sphi %s849_s17, %s981_s17   ;;  %s803_s16 = sphi %s847_s16, %s980_s16   ;;  %s799_s15 = sphi %s845_s15, %s979_s15  }
   0x4   : > { %p31_p0 = scmp.ge.s32.totalorder %s29_s20, 2  ;;  %p676_p1 = scmp.ge.s32.totalorder %s815_s19, 1 }
   0x5   : > { %p232_p2 = scmp.lt.s32.totalorder %s815_s19, 5 }
   0x6   : > { %s984_s20 = smov (%p31_p0, %s29_s20), 0  ;;  %s986_s21 = smov (!%p31_p0, %s33_s21), %s811_s18 }
   0x7   : > { %p233_p3 = pnand %p676_p1, %p232_p2  ;;  %p35_p4 = scmp.ge.s32.totalorder %s986_s21, 2 }
   0x8   : > { %p293_p5 = scmp.lt.s32.totalorder (!%p233_p3), %s803_s16, 1  ;;  %p295_p6 = scmp.lt.s32.totalorder (!%p233_p3), %s799_s15, 1 }
   0x9   : > { %s988_s21 = smov (%p35_p4, %s986_s21), 0  ;;  %236 = sbr.rel (%p233_p3) target bundleno = 558 (0x22e), region = 36 }
   0xa   : > { %s817_s5 = smov (!%p233_p3), 32   ;;  %s818_s6 = smov (!%p233_p3), 97  }
   0xb   : > { %s819_s7 = smov (!%p233_p3), 127  }
   0xe   : > { %s990_s16 = smov (!%p293_p5, %s803_s16), 1  ;;  %s992_s15 = smov (!%p295_p6, %s799_s15), 1  ;;  %vm352_vm0 = vcmask 261120   ;;  %v384_v24 = vlaneseq  ;;  %v382_v28 = vld [vmem:[%s973_s1] sm:$0x1]  ;;  %vm408_vm1 = vcmask 1047808  }
   0xf   : > { %s678_s22 = sshll.u32 %s990_s16, 3  ;;  %s677_s23 = sshll.u32 %s992_s15, 2  ;;  %v383_v29 = vunpack.c.l.bf16 %v382_v28  ;;  %vm516_vm3 = vcmask 257024  }
  0x10   : > { %s878_s24 = sadd.s32 %s678_s22, %s677_s23  ;;  %v385_v27 = vshrl.u32 %v384_v24, 7  ;;  %s693_s8 = sshll.u32 %s990_s16, 4 }
  0x11   : > { %s679_s25 = sshll.u32 %s878_s24, 2  ;;  %s314_s11 = scalar_lea.vmem %s974_s2, %s693_s8 }
  0x12   : > { %s304_s28 = scalar_lea.vmem %s972_s0, %s679_s25  ;;  %v386_v30 = vsub.s32 0, %v385_v27  ;;  %s324_s14 = scalar_lea.vmem %s975_s3, %s693_s8 }
  0x13   : > { %v700_v0 = vld [vmem:[%s304_s28] sm:$0xff]   ;;  %v723_v1 = vld [vmem:[%s304_s28 + $0x8] sm:$0xff]   ;;  %s938_s22 = scalar_lea.vmem %s976_s4, %s679_s25 }
  0x14   : > { %v701_v2 = vunpack.c.l.bf16 %v700_v0  ;;  %v702_v3 = vunpack.c.h.bf16 %v700_v0  ;;  %v705_v4 = vunpack.c.l.bf16 %v723_v1  ;;  %v706_v5 = vunpack.c.h.bf16 %v723_v1 }
  0x15   : > { %v387_v31 = vrot.slane %v383_v29, %v386_v30  ;;  %v434_v0 = vand.u32 127, %v384_v24 }
  0x16   : > { %v348_v6 = vmul.f32 %v701_v2, %v701_v2  ;;  %v349_v7 = vmul.f32 %v702_v3, %v702_v3  ;;  %v350_v8 = vmul.f32 %v705_v4, %v705_v4  ;;  %v351_v9 = vmul.f32 %v706_v5, %v706_v5 }
  0x17   : > { %v439_v1 = vand.u32 1, %v434_v0 }
  0x18   : > { %v353_v10 = vsel %vm352_vm0, %v348_v6, 0.0  ;;  %v359_v11 = vsel %vm352_vm0, %v350_v8, 0.0  ;;  %v356_v12 = vsel %vm352_vm0, %v349_v7, 0.0  ;;  %v362_v13 = vsel %vm352_vm0, %v351_v9, 0.0 }
  0x19   : > { %354 = vadd.xlane.f32.xlu0 %v353_v10  ;;  %360 = vadd.xlane.f32.xlu1 %v359_v11  ;;  %vm926_vm2 = vcmp.eq.s32.totalorder %v439_v1, 0 }
  0x1d   : > { %357 = vadd.xlane.f32.xlu0 %v356_v12  ;;  %363 = vadd.xlane.f32.xlu1 %v362_v13 }
  0xa2   : > { %v355_v14 = vpop.xlane.xlu0 %354  ;;  %v361_v15 = vpop.xlane.xlu1 %360 }
  0xa3   : > { %v366_v16 = vmul.f32 0.03125, %v355_v14  ;;  %v368_v17 = vmul.f32 0.03125, %v361_v15 }
  0xa5   : > { %v370_v18 = vadd.f32 1e-06, %v366_v16  ;;  %v372_v19 = vadd.f32 1e-06, %v368_v17 }
  0xa6   : > { %v358_v20 = vpop.xlane.xlu0 %357  ;;  %v364_v21 = vpop.xlane.xlu1 %363 }
  0xa7   : > { %769 = vrsqrt.f32 %v370_v18  ;;  %v367_v22 = vmul.f32 0.03125, %v358_v20  ;;  %v369_v23 = vmul.f32 0.03125, %v364_v21  ;;  %v724_v18 = vld [vmem:[%s314_s11 + $0x8] sm:$0xff]  }
  0xa8   : > { %771 = vrsqrt.f32 %v372_v19  ;;  %v725_v19 = vld [vmem:[%s324_s14 + $0x8] sm:$0xff]  }
  0xa9   : > { %v371_v25 = vadd.f32 1e-06, %v367_v22  ;;  %v373_v26 = vadd.f32 1e-06, %v369_v23 }
  0xab   : > { %773 = vrsqrt.f32 %v371_v25  ;;  %v713_v25 = vunpack.c.l.bf16 %v724_v18 }
  0xac   : > { %775 = vrsqrt.f32 %v373_v26  ;;  %v721_v26 = vunpack.c.l.bf16 %v725_v19 }
  0xb4   : > { %v770_v32 = vpop.eup %769 }
  0xb5   : > { %v378_v33 = vmul.f32 %v770_v32, %v701_v2  ;;  %v772_v34 = vpop.eup %771  ;;  %v708_v2 = vld [vmem:[%s314_s11] sm:$0xff]  }
  0xb6   : > { %v380_v38 = vmul.f32 %v772_v34, %v705_v4  ;;  %v710_v13 = vunpack.c.h.bf16 %v708_v2  ;;  %v722_v34 = vunpack.c.h.bf16 %v725_v19 }
  0xb7   : > { %v890_v35 = vmul.f32 %v387_v31, %v378_v33  ;;  %v714_v33 = vunpack.c.h.bf16 %v724_v18 }
  0xb8   : > { %v774_v36 = vpop.eup %773  ;;  %v896_v41 = vmul.f32 %v387_v31, %v380_v38 }
  0xb9   : > { %409 = vrot.lane.b32.xlu0 %v890_v35, %s817_s5  ;;  %v379_v37 = vmul.f32 %v774_v36, %v702_v3  ;;  %v776_v39 = vpop.eup %775  ;;  %v716_v3 = vld [vmem:[%s324_s14] sm:$0xff]  }
  0xba   : > { %v381_v42 = vmul.f32 %v776_v39, %v706_v5  ;;  %v709_v5 = vunpack.c.l.bf16 %v708_v2  ;;  %v717_v6 = vunpack.c.l.bf16 %v716_v3  ;;  %v718_v14 = vunpack.c.h.bf16 %v716_v3 }
  0xbb   : > { %v893_v40 = vmul.f32 %v387_v31, %v379_v37 }
  0xbc   : > { %v899_v43 = vmul.f32 %v387_v31, %v381_v42  ;;  %v488_v11 = vmul.f32 %v709_v5, %v890_v35  ;;  %v490_v31 = vmul.f32 %v713_v25, %v896_v41 }
  0xbd   : > { %412 = vrot.lane.b32.xlu1 %v893_v40, %s817_s5  ;;  %v489_v21 = vmul.f32 %v710_v13, %v893_v40 }
  0xbe   : > { %v491_v39 = vmul.f32 %v714_v33, %v899_v43 }
  0xc1   : > { %415 = vrot.lane.b32.xlu1 %v896_v41, %s817_s5 }
  0xc5   : > { %418 = vrot.lane.b32.xlu1 %v899_v43, %s817_s5 }
 0x12b   : > { %v410_v44 = vpop.permute.xlu0 %409 }
 0x12c   : > { %v411_v45 = vsel %vm408_vm1, %v410_v44, %v890_v35 }
 0x12d   : > { %421 = vrot.lane.b32.xlu0 %v411_v45, %s817_s5 }
 0x12f   : > { %v413_v46 = vpop.permute.xlu1 %412 }
 0x130   : > { %v414_v47 = vsel %vm408_vm1, %v413_v46, %v893_v40 }
 0x131   : > { %423 = vrot.lane.b32.xlu1 %v414_v47, %s817_s5 }
 0x133   : > { %v416_v48 = vpop.permute.xlu1 %415 }
 0x134   : > { %v417_v49 = vsel %vm408_vm1, %v416_v48, %v896_v41 }
 0x135   : > { %425 = vrot.lane.b32.xlu0 %v417_v49, %s817_s5 }
 0x137   : > { %v419_v50 = vpop.permute.xlu1 %418 }
 0x138   : > { %v420_v51 = vsel %vm408_vm1, %v419_v50, %v899_v43 }
 0x139   : > { %427 = vrot.lane.b32.xlu1 %v420_v51, %s817_s5 }
 0x19f   : > { %v422_v52 = vpop.permute.xlu0 %421 }
 0x1a0   : > { %v429_v53 = vsel %vm408_vm1, %v422_v52, %v890_v35 }
 0x1a1   : > { %472 = vrot.lane.b32.xlu0 %v429_v53, %s818_s6  ;;  %v448_v54 = vsub.f32 0.0, %v429_v53 }
 0x1a3   : > { %v424_v55 = vpop.permute.xlu1 %423 }
 0x1a4   : > { %v430_v56 = vsel %vm408_vm1, %v424_v55, %v893_v40 }
 0x1a5   : > { %474 = vrot.lane.b32.xlu1 %v430_v56, %s818_s6  ;;  %456 = vrot.lane.b32.xlu0 %v448_v54, %s819_s7  ;;  %v449_v57 = vsub.f32 0.0, %v430_v56 }
 0x1a7   : > { %v426_v58 = vpop.permute.xlu0 %425 }
 0x1a8   : > { %v431_v59 = vsel %vm408_vm1, %v426_v58, %v896_v41 }
 0x1a9   : > { %v450_v60 = vsub.f32 0.0, %v431_v59  ;;  %458 = vrot.lane.b32.xlu1 %v449_v57, %s819_s7 }
 0x1ab   : > { %v428_v61 = vpop.permute.xlu1 %427  ;;  %460 = vrot.lane.b32.xlu0 %v450_v60, %s819_s7 }
 0x1ac   : > { %v432_v62 = vsel %vm408_vm1, %v428_v61, %v899_v43 }
 0x1ad   : > { %v451_v63 = vsub.f32 0.0, %v432_v62 }
 0x1af   : > { %462 = vrot.lane.b32.xlu1 %v451_v63, %s819_s7  ;;  %476 = vrot.lane.b32.xlu0 %v431_v59, %s818_s6 }
 0x1b3   : > { %478 = vrot.lane.b32.xlu1 %v432_v62, %s818_s6 }
 0x213   : > { %v473_v4 = vpop.permute.xlu0 %472 }
 0x217   : > { %v475_v8 = vpop.permute.xlu1 %474  ;;  %v457_v9 = vpop.permute.xlu0 %456 }
 0x218   : > { %v484_v10 = vsel %vm926_vm2, %v457_v9, %v473_v4 }
 0x219   : > { %v492_v12 = vmul.f32 %v717_v6, %v484_v10 }
 0x21b   : > { %v496_v15 = vadd.f32 %v492_v12, %v488_v11  ;;  %v459_v16 = vpop.permute.xlu1 %458 }
 0x21c   : > { %v485_v17 = vsel %vm926_vm2, %v459_v16, %v475_v8 }
 0x21d   : > { %v695_v20 = vpack.c.bf16 %v496_v15, %v496_v15  ;;  %v493_v22 = vmul.f32 %v718_v14, %v485_v17  ;;  %v461_v23 = vpop.permute.xlu0 %460 }
 0x21f   : > { %517 = vst.msk [vmem:[%s938_s22] sm:$0xf] %vm516_vm3, %v695_v20  ;;  %v497_v24 = vadd.f32 %v493_v22, %v489_v21 }
 0x221   : > { %v696_v27 = vpack.c.bf16 %v497_v24, %v497_v24  ;;  %v463_v28 = vpop.permute.xlu1 %462  ;;  %v477_v29 = vpop.permute.xlu0 %476 }
 0x222   : > { %v486_v30 = vsel %vm926_vm2, %v461_v23, %v477_v29 }
 0x223   : > { %518 = vst.msk [vmem:[%s938_s22 + $0x4] sm:$0xf] %vm516_vm3, %v696_v27  ;;  %v494_v32 = vmul.f32 %v721_v26, %v486_v30 }
 0x225   : > { %v498_v35 = vadd.f32 %v494_v32, %v490_v31  ;;  %v479_v36 = vpop.permute.xlu1 %478 }
 0x226   : > { %v487_v37 = vsel %vm926_vm2, %v463_v28, %v479_v36 }
 0x227   : > { %v697_v38 = vpack.c.bf16 %v498_v35, %v498_v35  ;;  %v495_v40 = vmul.f32 %v722_v34, %v487_v37 }
 0x229   : > { %519 = vst.msk [vmem:[%s938_s22 + $0x8] sm:$0xf] %vm516_vm3, %v697_v38  ;;  %v499_v42 = vadd.f32 %v495_v40, %v491_v39 }
 0x22b   : > { %v698_v44 = vpack.c.bf16 %v499_v42, %v499_v42 }
 0x22d   : > { %520 = vst.msk [vmem:[%s938_s22 + $0xc] sm:$0xf] %vm516_vm3, %v698_v44 }
 0x22e PF: > { %s14_s19 = sadd.s32 1, %s815_s19   ;;  %s979_s15 = smov %s807_s17 }
 0x22f   : > { %p11_p7 = scmp.ge.s32.totalorder %s14_s19, 6   ;;  %s980_s16 = smov %s811_s18 }
 0x230   : > { %s981_s17 = smov %s984_s20  ;;  %s982_s18 = smov %s988_s21 }
 0x231   :  { %13 = sbr.rel (!%p11_p7) target bundleno = 3 (0x3), region = 72 }

// kernel: forward_layer.25
= control target key start
LH: loop header
LB: loop body
LE: loop exit
PB: predicated region body
PF: predicated region fallthrough
CT: control target
= control target key end

     0   :  { %s857_s18 = smov 0   ;;  %s859_s19 = smov 0   ;;  %s921_s0 = inlined_call_operand.vmem [shape: bf16[2,16,64], index: 0, kind: input, shape index: {}]   ;;  %s922_s1 = inlined_call_operand.vmem [shape: bf16[64,64], index: 1, kind: input, shape index: {}]   ;;  %s923_s2 = inlined_call_operand.vmem [shape: bf16[1,64], index: 2, kind: input, shape index: {}]   ;;  %s924_s3 = inlined_call_operand.vmem [shape: bf16[2,1,64], index: 3, kind: input, shape index: {}]   ;;  %s925_s4 = inlined_call_operand.vmem [shape: bf16[2,16,64], index: 4, kind: input, shape index: {}]   ;;  %s926_s5 = inlined_call_operand.vmem [shape: bf16[2,16,64], index: 5, kind: output, shape index: {}]  }
   0x1   :  { %s861_s20 = smov 0  }
   0x2 LB: > { %s41_s21 = sadd.s32 1, %s819_s19  ;;  %p727_p0 = scmp.ge.s32.totalorder %s823_s20, 1  ;;  %s823_s20 = sphi %s861_s20, %s15_s20   ;;  %s819_s19 = sphi %s859_s19, %s928_s19   ;;  %s815_s18 = sphi %s857_s18, %s927_s18  }
   0x3   : > { %p43_p1 = scmp.ge.s32.totalorder %s41_s21, 2  ;;  %p288_p2 = scmp.lt.s32.totalorder %s823_s20, 3 }
   0x5   : > { %s930_s21 = smov (%p43_p1, %s41_s21), 0  ;;  %p289_p3 = pnand %p727_p0, %p288_p2 }
   0x6   : > { %p360_p4 = scmp.lt.s32.totalorder (!%p289_p3), %s815_s18, 1 }
   0x7   : > { %292 = sbr.rel (%p289_p3) target bundleno = 245 (0xf5), region = 40 }
   0xc   : > { %v796_v0 = vld [vmem:[%s922_s1 + $0x18] sm:$0xff]   ;;  %v825_v1 = vmov 0.0   ;;  %v797_v2 = vld [vmem:[%s922_s1 + $0x10] sm:$0xff]   ;;  %vm826_vm0 = vmmov 0   ;;  %vm421_vm1 = vcmask 523264   ;;  %s932_s18 = smov (!%p360_p4, %s815_s18), 1  ;;  %v521_v6 = vlaneseq }
   0xd   : > { %758 = vmatprep.subr.bf16.mxu0 %v825_v1  ;;  %766 = vmatprep.mubr.msk.bf16.mxu0 %vm826_vm0, %v825_v1  ;;  %422 = vst.msk [vmem:[#allocation2] sm:$0xff] %vm421_vm1, %v825_v1  ;;  %423 = vst.msk [vmem:[#allocation2 + $0x8] sm:$0xff] %vm421_vm1, %v825_v1  ;;  %v798_v3 = vld [vmem:[%s922_s1 + $0x8] sm:$0xff]   ;;  %s886_s28 = sshll.u32 %s932_s18, 3  ;;  %v799_v4 = vld [vmem:[%s922_s1] sm:$0xff]   ;;  %s389_s11 = scalar_lea.vmem %s924_s3, %s932_s18  ;;  %vm549_vm2 = vcmask 519168  }
   0xe   : > { %759 = vmatpush3.bf16.msra.mxu0 %v796_v0  ;;  %s370_s6 = scalar_lea.vmem %s921_s0, %s886_s28  ;;  %v522_v8 = vshrl.u32 %v521_v6, 7  ;;  %v519_v9 = vld [vmem:[%s923_s2] sm:$0x1]  ;;  %s401_s16 = scalar_lea.vmem %s925_s4, %s886_s28 }
   0xf   : > { %760 = vmatprep.subr.bf16.mxu0 %v825_v1  ;;  %v800_v5 = vld [vmem:[%s370_s6] sm:$0xff]   ;;  %v520_v15 = vunpack.c.l.bf16 %v519_v9  ;;  %s414_s22 = scalar_lea.vmem %s926_s5, %s886_s28 }
  0x10   : > { %v527_v12 = vld [vmem:[%s389_s11] sm:$0x1]  ;;  %v523_v16 = vsub.s32 0, %v522_v8 }
  0x11   : > { %v528_v18 = vunpack.c.l.bf16 %v527_v12  ;;  %v750_v22 = vld [vmem:[%s401_s16] sm:$0xff]  }
  0x12   : > { %761 = vmatpush3.bf16.msra.mxu0 %v797_v2  ;;  %v524_v21 = vrot.slane %v520_v15, %v523_v16  ;;  %v751_v25 = vunpack.c.l.bf16 %v750_v22  ;;  %v752_v29 = vunpack.c.h.bf16 %v750_v22 }
  0x13   : > { %762 = vmatprep.subr.bf16.mxu0 %v825_v1  ;;  %v532_v23 = vrot.slane %v528_v18, %v523_v16 }
  0x14   : > { %v424_v7 = vld [vmem:[#allocation2] sm:$0xff]  ;;  %v425_v14 = vld [vmem:[#allocation2 + $0x8] sm:$0xff] }
  0x16   : > { %763 = vmatpush3.bf16.msra.mxu0 %v798_v3 }
  0x17   : > { %764 = vmatprep.subr.bf16.mxu0 %v825_v1 }
  0x1a   : > { %765 = vmatpush3.bf16.msra.mxu0 %v799_v4 }
  0x1d   : > { %767 = vmatmul.mubr.msk.bf16.vlgmr.msra.gmra.mxu0 %vm421_vm1, %v800_v5 }
  0xdd   : > { %v503_v10 = vpop.f32.mrf.mxu0 }
  0xde   : > { %v510_v11 = vadd.f32 %v503_v10, %v424_v7 }
  0xdf   : > { %v768_v13 = vpop.f32.mrf.mxu0 }
  0xe0   : > { %512 = vst.msk [vmem:[#allocation2] sm:$0xff] %vm421_vm1, %v510_v11 }
  0xe1   : > { %v506_v17 = vpop.f32.mrf.mxu0 }
  0xe2   : > { %v511_v19 = vadd.f32 %v506_v17, %v425_v14 }
  0xe3   : > { %v769_v20 = vpop.f32.mrf.mxu0 }
  0xe4   : > { %513 = vst.msk [vmem:[#allocation2 + $0x8] sm:$0xff] %vm421_vm1, %v511_v19 }
  0xe7   : > { %v517_v24 = vld [vmem:[#allocation2] sm:$0xff] }
  0xe8   : > { %v525_v26 = vadd.f32 %v524_v21, %v517_v24 }
  0xea   : > { %v533_v27 = vmul.f32 %v532_v23, %v525_v26 }
  0xeb   : > { %v518_v28 = vld [vmem:[#allocation2 + $0x8] sm:$0xff] }
  0xec   : > { %v539_v30 = vadd.f32 %v751_v25, %v533_v27  ;;  %v526_v31 = vadd.f32 %v524_v21, %v518_v28 }
  0xee   : > { %v747_v32 = vpack.c.bf16 %v539_v30, %v539_v30  ;;  %v534_v33 = vmul.f32 %v532_v23, %v526_v31 }
  0xf0   : > { %550 = vst.msk [vmem:[%s414_s22] sm:$0xf] %vm549_vm2, %v747_v32  ;;  %v540_v34 = vadd.f32 %v752_v29, %v534_v33 }
  0xf2   : > { %v748_v35 = vpack.c.bf16 %v540_v34, %v540_v34 }
  0xf4   : > { %551 = vst.msk [vmem:[%s414_s22 + $0x4] sm:$0xf] %vm549_vm2, %v748_v35 }
  0xf5 PF: > { %s15_s20 = sadd.s32 1, %s823_s20   ;;  %s927_s18 = smov %s819_s19 }
  0xf6   : > { %p12_p5 = scmp.ge.s32.totalorder %s15_s20, 4   ;;  %s928_s19 = smov %s930_s21 }
  0xf8   :  { %14 = sbr.rel (!%p12_p5) target bundleno = 2 (0x2), region = 90 }

// kernel: forward_layer.23
= control target key start
LH: loop header
LB: loop body
LE: loop exit
PB: predicated region body
PF: predicated region fallthrough
CT: control target
= control target key end

     0   :  { %s1155_s12 = smov 0   ;;  %s1157_s13 = smov 0   ;;  %s1386_s0 = inlined_call_operand.vmem [shape: bf16[4,48,32], index: 0, kind: input, shape index: {}]   ;;  %s1387_s1 = inlined_call_operand.vmem [shape: bf16[4,48,32], index: 1, kind: input, shape index: {}]   ;;  %s1388_s2 = inlined_call_operand.vmem [shape: bf16[4,48,32], index: 2, kind: input, shape index: {}]   ;;  %s1389_s3 = inlined_call_operand.vmem [shape: bf16[4,48,32], index: 3, kind: output, shape index: {}]  }
   0x1   :  { %s1159_s14 = smov 0  }
   0x2 LB: > { %s32_s15 = sadd.s32 1, %s1125_s13  ;;  %p949_p0 = scmp.ge.s32.totalorder %s1129_s14, 1  ;;  %s1129_s14 = sphi %s1159_s14, %s13_s14   ;;  %s1125_s13 = sphi %s1157_s13, %s1391_s13   ;;  %s1121_s12 = sphi %s1155_s12, %s1390_s12  }
   0x3   : > { %p34_p1 = scmp.ge.s32.totalorder %s32_s15, 4  ;;  %p199_p2 = scmp.lt.s32.totalorder %s1129_s14, 5 }
   0x5   : > { %s1393_s15 = smov (%p34_p1, %s32_s15), 0  ;;  %p200_p3 = pnand %p949_p0, %p199_p2 }
   0x6   : > { %p250_p4 = scmp.lt.s32.totalorder (!%p200_p3), %s1121_s12, 3 }
   0x7   : > { %203 = sbr.rel (%p200_p3) target bundleno = 831 (0x33f), region = 32 }
   0xc   : > { %vm307_vm0 = vcmask 261120   ;;  %v1131_v0 = vmov 0.0   ;;  %vm1132_vm1 = vmmov 0   ;;  %s1395_s12 = smov (!%p250_p4, %s1121_s12), 3  ;;  %vm294_vm2 = vcmask 7168  }
   0xd   : > { %995 = vmatprep.subr.bf16.mxu0 %v1131_v0  ;;  %308 = vst.msk [vmem:[#allocation4] sm:$0xff] %vm307_vm0, %v1131_v0  ;;  %309 = vst.msk [vmem:[#allocation4 + $0x8] sm:$0xff] %vm307_vm0, %v1131_v0  ;;  %1001 = vmatprep.mubr.msk.bf16.mxu0 %vm1132_vm1, %v1131_v0  ;;  %s1191_s16 = smul.u32 24, %s1395_s12  ;;  %v1133_v10 = vmov -inf   ;;  %vm450_vm3 = vcmask 392192   ;;  %v1134_v27 = vmov 0  }
   0xe   : > { %310 = vst.msk [vmem:[#allocation4 + $0x10] sm:$0xff] %vm307_vm0, %v1131_v0  ;;  %311 = vst.msk [vmem:[#allocation4 + $0x18] sm:$0xff] %vm307_vm0, %v1131_v0  ;;  %1013 = vmatprep.subr.bf16.mxu1 %v1131_v0  ;;  %1019 = vmatprep.mubr.msk.bf16.mxu1 %vm1132_vm1, %v1131_v0  ;;  %vm812_vm4 = vcmask 257024  }
   0xf   : > { %312 = vst.msk [vmem:[#allocation4 + $0x20] sm:$0xff] %vm307_vm0, %v1131_v0  ;;  %313 = vst.msk [vmem:[#allocation4 + $0x28] sm:$0xff] %vm307_vm0, %v1131_v0  ;;  %s267_s19 = scalar_lea.vmem %s1387_s1, %s1191_s16  ;;  %s257_s22 = scalar_lea.vmem %s1386_s0, %s1191_s16  ;;  %1060 = vset.pattern.permute.xlu0 %v1134_v27  ;;  %1061 = vset.pattern.permute.xlu1 %v1134_v27 }
  0x10   : > { %v1062_v1 = vld [vmem:[%s267_s19 + $0x10] sm:$0xff]   ;;  %v1063_v3 = vld [vmem:[%s267_s19 + $0x8] sm:$0xff]   ;;  %v1064_v5 = vld [vmem:[%s267_s19] sm:$0xff]   ;;  %295 = vst.msk [vmem:[#allocation2] sm:$0xff] %vm294_vm2, %v1133_v10  ;;  %s277_s25 = scalar_lea.vmem %s1388_s2, %s1191_s16  ;;  %s287_s28 = scalar_lea.vmem %s1389_s3, %s1191_s16 }
  0x11   : > { %v379_v2 = vsel %vm307_vm0, %v1062_v1, 0  ;;  %v376_v4 = vsel %vm307_vm0, %v1063_v3, 0  ;;  %v373_v6 = vsel %vm307_vm0, %v1064_v5, 0  ;;  %v1065_v7 = vld [vmem:[%s257_s22] sm:$0xff]   ;;  %v1066_v8 = vld [vmem:[%s257_s22 + $0x8] sm:$0xff]   ;;  %v1067_v9 = vld [vmem:[%s257_s22 + $0x10] sm:$0xff]  }
  0x12   : > { %996 = vmatpush3.bf16.xpose.msra.mxu0 %v379_v2  ;;  %296 = vst.msk [vmem:[#allocation2 + $0x8] sm:$0xff] %vm294_vm2, %v1133_v10  ;;  %297 = vst.msk [vmem:[#allocation2 + $0x10] sm:$0xff] %vm294_vm2, %v1133_v10  ;;  %v1068_v48 = vld [vmem:[%s277_s25 + $0x10] sm:$0xff]   ;;  %v1069_v53 = vld [vmem:[%s277_s25 + $0x8] sm:$0xff]  }
  0x13   : > { %997 = vmatprep.subr.bf16.mxu0 %v1131_v0  ;;  %298 = vst.msk [vmem:[#allocation2 + $0x18] sm:$0xff] %vm294_vm2, %v1133_v10  ;;  %299 = vst.msk [vmem:[#allocation2 + $0x20] sm:$0xff] %vm294_vm2, %v1133_v10  ;;  %1014 = vmatpush3.bf16.msra.mxu1 %v1068_v48  ;;  %v1070_v58 = vld [vmem:[%s277_s25] sm:$0xff]  }
  0x14   : > { %300 = vst.msk [vmem:[#allocation2 + $0x28] sm:$0xff] %vm294_vm2, %v1133_v10  ;;  %301 = vst.msk [vmem:[#allocation3] sm:$0xff] %vm294_vm2, %v1131_v0  ;;  %1015 = vmatprep.subr.bf16.mxu1 %v1131_v0 }
  0x15   : > { %302 = vst.msk [vmem:[#allocation3 + $0x8] sm:$0xff] %vm294_vm2, %v1131_v0  ;;  %303 = vst.msk [vmem:[#allocation3 + $0x10] sm:$0xff] %vm294_vm2, %v1131_v0 }
  0x16   : > { %304 = vst.msk [vmem:[#allocation3 + $0x18] sm:$0xff] %vm294_vm2, %v1131_v0  ;;  %305 = vst.msk [vmem:[#allocation3 + $0x20] sm:$0xff] %vm294_vm2, %v1131_v0 }
  0x17   : > { %306 = vst.msk [vmem:[#allocation3 + $0x28] sm:$0xff] %vm294_vm2, %v1131_v0  ;;  %v1255_v36 = vld [vmem:[#allocation2] sm:$0xff]  ;;  %1016 = vmatpush3.bf16.msra.mxu1 %v1069_v53 }
  0x18   : > { %1017 = vmatprep.subr.bf16.mxu1 %v1131_v0 }
  0x19   : > { %v1260_v39 = vld [vmem:[#allocation2 + $0x8] sm:$0xff]  ;;  %v1270_v43 = vld [vmem:[#allocation2 + $0x10] sm:$0xff] }
  0x1a   : > { %998 = vmatpush3.bf16.xpose.msra.mxu0 %v376_v4  ;;  %v1280_v47 = vld [vmem:[#allocation2 + $0x18] sm:$0xff]  ;;  %v1295_v52 = vld [vmem:[#allocation2 + $0x20] sm:$0xff] }
  0x1b   : > { %999 = vmatprep.subr.bf16.mxu0 %v1131_v0  ;;  %v1306_v57 = vld [vmem:[#allocation2 + $0x28] sm:$0xff]  ;;  %1018 = vmatpush3.bf16.msra.mxu1 %v1070_v58 }
  0x22   : > { %1000 = vmatpush3.bf16.xpose.msra.mxu0 %v373_v6 }
  0x29   : > { %1002 = vmatmul.mubr.msk.bf16.vlgmr.msra.gmra.mxu0 %vm307_vm0, %v1065_v7 }
  0x2a   : > { %1005 = vmatprep.mubr.msk.bf16.mxu0 %vm1132_vm1, %v1131_v0 }
  0x31   : > { %1006 = vmatmul.mubr.msk.bf16.gmra.mxu0 %vm307_vm0, %v1066_v8 }
  0x32   : > { %1009 = vmatprep.mubr.msk.bf16.mxu0 %vm1132_vm1, %v1131_v0 }
  0x39   : > { %1010 = vmatmul.mubr.msk.bf16.gmra.mxu0 %vm307_vm0, %v1067_v9 }
  0xe9   : > { %v415_v11 = vpop.f32.mrf.mxu0 }
  0xea   : > { %v1231_v12 = vmul.f32 0.17677669, %v415_v11 }
  0xeb   : > { %v1003_v13 = vpop.f32.mrf.mxu0 }
  0xec   : > { %v451_v14 = vsel %vm450_vm3, %v1231_v12, -inf }
  0xed   : > { %452 = vmax.xlane.f32.xlu0 %v451_v14  ;;  %v418_v15 = vpop.f32.mrf.mxu0 }
  0xee   : > { %v1235_v16 = vmul.f32 0.17677669, %v418_v15 }
  0xef   : > { %v1004_v17 = vpop.f32.mrf.mxu0 }
  0xf0   : > { %v454_v18 = vsel %vm450_vm3, %v1235_v16, -inf }
  0xf1   : > { %455 = vmax.xlane.f32.xlu0 %v454_v18  ;;  %v423_v19 = vpop.f32.mrf.mxu0 }
  0xf2   : > { %v1239_v20 = vmul.f32 0.17677669, %v423_v19 }
  0xf3   : > { %v1007_v21 = vpop.f32.mrf.mxu0 }
  0xf4   : > { %v457_v22 = vsel %vm450_vm3, %v1239_v20, -inf }
  0xf5   : > { %458 = vmax.xlane.f32.xlu1 %v457_v22  ;;  %v426_v23 = vpop.f32.mrf.mxu0 }
  0xf6   : > { %v1243_v24 = vmul.f32 0.17677669, %v426_v23 }
  0xf7   : > { %v1008_v25 = vpop.f32.mrf.mxu0 }
  0xf8   : > { %v460_v26 = vsel %vm450_vm3, %v1243_v24, -inf }
  0xf9   : > { %461 = vmax.xlane.f32.xlu1 %v460_v26  ;;  %v431_v28 = vpop.f32.mrf.mxu0 }
  0xfa   : > { %v1247_v29 = vmul.f32 0.17677669, %v431_v28 }
  0xfb   : > { %v1011_v30 = vpop.f32.mrf.mxu0 }
  0xfc   : > { %v463_v31 = vsel %vm450_vm3, %v1247_v29, -inf }
  0xfd   : > { %464 = vmax.xlane.f32.xlu0 %v463_v31  ;;  %v434_v32 = vpop.f32.mrf.mxu0 }
  0xfe   : > { %v1251_v33 = vmul.f32 0.17677669, %v434_v32 }
  0xff   : > { %v1012_v34 = vpop.f32.mrf.mxu0 }
 0x100   : > { %v466_v35 = vsel %vm450_vm3, %v1251_v33, -inf }
 0x101   : > { %467 = vmax.xlane.f32.xlu1 %v466_v35 }
 0x176   : > { %v453_v37 = vpop.xlane.xlu0 %452 }
 0x177   : > { %v1258_v38 = vmax.f32 %v1255_v36, %v453_v37 }
 0x179   : > { %v475_v40 = vsub.f32 %v1255_v36, %v1258_v38  ;;  %725 = vst.msk [vmem:[#allocation2] sm:$0xff] %vm294_vm2, %v1258_v38  ;;  %495 = vperm.xlu0 %1060, %v1258_v38  }
 0x17a   : > { %v456_v41 = vpop.xlane.xlu0 %455 }
 0x17b   : > { %v1268_v42 = vmax.f32 %v1260_v39, %v456_v41  ;;  %v481_v34 = vmul.f32 1.442695, %v475_v40 }
 0x17d   : > { %v476_v44 = vsub.f32 %v1260_v39, %v1268_v42  ;;  %726 = vst.msk [vmem:[#allocation2 + $0x8] sm:$0xff] %vm294_vm2, %v1268_v42  ;;  %500 = vperm.xlu1 %1061, %v1268_v42  }
 0x17e   : > { %v459_v45 = vpop.xlane.xlu1 %458 }
 0x17f   : > { %v1278_v46 = vmax.f32 %v1270_v43, %v459_v45  ;;  %v483_v31 = vmul.f32 1.442695, %v476_v44  ;;  %v541_v44 = vld [vmem:[#allocation3] sm:$0xff] }
 0x181   : > { %v477_v49 = vsub.f32 %v1270_v43, %v1278_v46  ;;  %727 = vst.msk [vmem:[#allocation2 + $0x10] sm:$0xff] %vm294_vm2, %v1278_v46  ;;  %505 = vperm.xlu1 %1061, %v1278_v46  }
 0x182   : > { %v462_v50 = vpop.xlane.xlu1 %461 }
 0x183   : > { %v1292_v51 = vmax.f32 %v1280_v47, %v462_v50 }
 0x185   : > { %v478_v54 = vsub.f32 %v1280_v47, %v1292_v51  ;;  %728 = vst.msk [vmem:[#allocation2 + $0x18] sm:$0xff] %vm294_vm2, %v1292_v51  ;;  %510 = vperm.xlu1 %1061, %v1292_v51   ;;  %v542_v47 = vld [vmem:[#allocation3 + $0x8] sm:$0xff]  ;;  %v543_v51 = vld [vmem:[#allocation3 + $0x10] sm:$0xff] }
 0x186   : > { %v465_v55 = vpop.xlane.xlu0 %464 }
 0x187   : > { %v1303_v56 = vmax.f32 %v1295_v52, %v465_v55  ;;  %v487_v35 = vmul.f32 1.442695, %v478_v54  ;;  %v544_v55 = vld [vmem:[#allocation3 + $0x18] sm:$0xff] }
 0x189   : > { %v479_v59 = vsub.f32 %v1295_v52, %v1303_v56  ;;  %729 = vst.msk [vmem:[#allocation2 + $0x20] sm:$0xff] %vm294_vm2, %v1303_v56  ;;  %515 = vperm.xlu1 %1061, %v1303_v56  }
 0x18a   : > { %v468_v60 = vpop.xlane.xlu1 %467 }
 0x18b   : > { %v1314_v61 = vmax.f32 %v1306_v57, %v468_v60  ;;  %v489_v37 = vmul.f32 1.442695, %v479_v59  ;;  %v545_v60 = vld [vmem:[#allocation3 + $0x20] sm:$0xff] }
 0x18d   : > { %v480_v62 = vsub.f32 %v1306_v57, %v1314_v61  ;;  %730 = vst.msk [vmem:[#allocation2 + $0x28] sm:$0xff] %vm294_vm2, %v1314_v61  ;;  %520 = vperm.xlu1 %1061, %v1314_v61  }
 0x18f   : > { %v491_v36 = vmul.f32 1.442695, %v480_v62 }
 0x1f4   : > { %v496_v63 = vpop.permute.xlu0 %495 }
 0x1f5   : > { %v523_v1 = vsub.f32 %v1231_v12, %v496_v63 }
 0x1f7   : > { %v529_v2 = vmul.f32 1.442695, %v523_v1 }
 0x1f8   : > { %v501_v3 = vpop.permute.xlu1 %500 }
 0x1f9   : > { %1071 = vpow2.f32 %v529_v2  ;;  %v524_v4 = vsub.f32 %v1235_v16, %v501_v3  ;;  %v546_v2 = vld [vmem:[#allocation3 + $0x28] sm:$0xff] }
 0x1fb   : > { %v531_v5 = vmul.f32 1.442695, %v524_v4 }
 0x1fc   : > { %v506_v6 = vpop.permute.xlu1 %505 }
 0x1fd   : > { %1073 = vpow2.f32 %v531_v5  ;;  %v525_v7 = vsub.f32 %v1239_v20, %v506_v6 }
 0x1ff   : > { %v533_v8 = vmul.f32 1.442695, %v525_v7 }
 0x200   : > { %v511_v9 = vpop.permute.xlu1 %510 }
 0x201   : > { %1075 = vpow2.f32 %v533_v8  ;;  %v526_v10 = vsub.f32 %v1243_v24, %v511_v9 }
 0x203   : > { %v535_v11 = vmul.f32 1.442695, %v526_v10 }
 0x204   : > { %v516_v13 = vpop.permute.xlu1 %515 }
 0x205   : > { %1077 = vpow2.f32 %v535_v11  ;;  %v527_v12 = vsub.f32 %v1247_v29, %v516_v13 }
 0x206   : > { %v1072_v14 = vpop.eup %1071 }
 0x207   : > { %v537_v15 = vmul.f32 1.442695, %v527_v12  ;;  %v553_v17 = vsel %vm450_vm3, %v1072_v14, 0.0 }
 0x208   : > { %554 = vadd.xlane.f32.xlu1 %v553_v17  ;;  %v521_v16 = vpop.permute.xlu1 %520 }
 0x209   : > { %1079 = vpow2.f32 %v537_v15  ;;  %v528_v18 = vsub.f32 %v1251_v33, %v521_v16  ;;  %v584_v16 = vld [vmem:[#allocation4] sm:$0xff] }
 0x20a   : > { %v1074_v19 = vpop.eup %1073 }
 0x20b   : > { %v539_v20 = vmul.f32 1.442695, %v528_v18  ;;  %v556_v21 = vsel %vm450_vm3, %v1074_v19, 0.0  ;;  %v626_v22 = vpack.c.bf16 %v1074_v19, %v1072_v14 }
 0x20c   : > { %557 = vadd.xlane.f32.xlu0 %v556_v21  ;;  %v585_v21 = vld [vmem:[#allocation4 + $0x8] sm:$0xff] }
 0x20d   : > { %1081 = vpow2.f32 %v539_v20  ;;  %1020 = vmatmul.mubr.msk.bf16.vlgmr.msra.gmra.mxu1 %vm450_vm3, %v626_v22 }
 0x20e   : > { %v1076_v23 = vpop.eup %1075  ;;  %1023 = vmatprep.mubr.msk.bf16.mxu1 %vm1132_vm1, %v1131_v0  ;;  %1083 = vpow2.f32 %v483_v31 }
 0x20f   : > { %v559_v24 = vsel %vm450_vm3, %v1076_v23, 0.0  ;;  %1085 = vpow2.f32 %v481_v34 }
 0x210   : > { %560 = vadd.xlane.f32.xlu1 %v559_v24 }
 0x212   : > { %v1078_v25 = vpop.eup %1077 }
 0x213   : > { %v562_v26 = vsel %vm450_vm3, %v1078_v25, 0.0  ;;  %v627_v27 = vpack.c.bf16 %v1078_v25, %v1076_v23 }
 0x214   : > { %563 = vadd.xlane.f32.xlu1 %v562_v26  ;;  %v586_v26 = vld [vmem:[#allocation4 + $0x10] sm:$0xff] }
 0x215   : > { %1024 = vmatmul.mubr.msk.bf16.gmra.mxu1 %vm450_vm3, %v627_v27 }
 0x216   : > { %v1080_v28 = vpop.eup %1079  ;;  %1027 = vmatprep.mubr.msk.bf16.mxu1 %vm1132_vm1, %v1131_v0  ;;  %v485_v0 = vmul.f32 1.442695, %v477_v49 }
 0x217   : > { %v565_v29 = vsel %vm450_vm3, %v1080_v28, 0.0 }
 0x218   : > { %566 = vadd.xlane.f32.xlu0 %v565_v29  ;;  %1087 = vpow2.f32 %v485_v0 }
 0x219   : > { %1089 = vpow2.f32 %v487_v35 }
 0x21a   : > { %v1082_v30 = vpop.eup %1081  ;;  %1091 = vpow2.f32 %v489_v37 }
 0x21b   : > { %v568_v32 = vsel %vm450_vm3, %v1082_v30, 0.0  ;;  %v628_v33 = vpack.c.bf16 %v1082_v30, %v1080_v28  ;;  %1093 = vpow2.f32 %v491_v36  ;;  %v1084_v38 = vpop.eup %1083  ;;  %v588_v36 = vld [vmem:[#allocation4 + $0x20] sm:$0xff] }
 0x21c   : > { %569 = vadd.xlane.f32.xlu1 %v568_v32  ;;  %v1086_v39 = vpop.eup %1085  ;;  %v548_v49 = vmul.f32 %v1084_v38, %v542_v47  ;;  %v587_v32 = vld [vmem:[#allocation4 + $0x18] sm:$0xff] }
 0x21d   : > { %1028 = vmatmul.mubr.msk.bf16.gmra.mxu1 %vm450_vm3, %v628_v33  ;;  %v547_v45 = vmul.f32 %v1086_v39, %v541_v44 }
 0x225   : > { %v1088_v40 = vpop.eup %1087 }
 0x226   : > { %v1090_v41 = vpop.eup %1089  ;;  %v549_v53 = vmul.f32 %v1088_v40, %v543_v51 }
 0x227   : > { %v1092_v42 = vpop.eup %1091  ;;  %v550_v58 = vmul.f32 %v1090_v41, %v544_v55 }
 0x228   : > { %v1094_v43 = vpop.eup %1093  ;;  %v551_v63 = vmul.f32 %v1092_v42, %v545_v60 }
 0x229   : > { %v552_v5 = vmul.f32 %v1094_v43, %v546_v2 }
 0x22d   : > { %597 = vperm.xlu1 %1061, %v1084_v38  }
 0x22e   : > { %592 = vperm.xlu0 %1060, %v1086_v39  }
 0x231   : > { %602 = vperm.xlu1 %1061, %v1088_v40  }
 0x232   : > { %607 = vperm.xlu0 %1060, %v1090_v41  }
 0x235   : > { %612 = vperm.xlu1 %1061, %v1092_v42  }
 0x236   : > { %617 = vperm.xlu0 %1060, %v1094_v43   ;;  %v589_v43 = vld [vmem:[#allocation4 + $0x28] sm:$0xff] }
 0x291   : > { %v555_v46 = vpop.xlane.xlu1 %554 }
 0x292   : > { %v571_v48 = vadd.f32 %v555_v46, %v547_v45 }
 0x294   : > { %578 = vst.msk [vmem:[#allocation3] sm:$0xff] %vm294_vm2, %v571_v48 }
 0x295   : > { %v558_v50 = vpop.xlane.xlu0 %557 }
 0x296   : > { %v572_v52 = vadd.f32 %v558_v50, %v548_v49 }
 0x298   : > { %579 = vst.msk [vmem:[#allocation3 + $0x8] sm:$0xff] %vm294_vm2, %v572_v52 }
 0x299   : > { %v561_v54 = vpop.xlane.xlu1 %560 }
 0x29a   : > { %v573_v56 = vadd.f32 %v561_v54, %v549_v53 }
 0x29b   : > { %v734_v57 = vld [vmem:[#allocation3] sm:$0xff] }
 0x29c   : > { %580 = vst.msk [vmem:[#allocation3 + $0x10] sm:$0xff] %vm294_vm2, %v573_v56  ;;  %1095 = vrcp.f32 %v734_v57 }
 0x29d   : > { %v564_v59 = vpop.xlane.xlu1 %563 }
 0x29e   : > { %v574_v61 = vadd.f32 %v564_v59, %v550_v58 }
 0x29f   : > { %v735_v62 = vld [vmem:[#allocation3 + $0x8] sm:$0xff] }
 0x2a0   : > { %581 = vst.msk [vmem:[#allocation3 + $0x18] sm:$0xff] %vm294_vm2, %v574_v61  ;;  %1097 = vrcp.f32 %v735_v62 }
 0x2a1   : > { %v567_v1 = vpop.xlane.xlu0 %566 }
 0x2a2   : > { %v575_v3 = vadd.f32 %v567_v1, %v551_v63 }
 0x2a3   : > { %v736_v4 = vld [vmem:[#allocation3 + $0x10] sm:$0xff] }
 0x2a4   : > { %582 = vst.msk [vmem:[#allocation3 + $0x20] sm:$0xff] %vm294_vm2, %v575_v3  ;;  %1099 = vrcp.f32 %v736_v4 }
 0x2a5   : > { %v570_v6 = vpop.xlane.xlu1 %569 }
 0x2a6   : > { %v576_v7 = vadd.f32 %v570_v6, %v552_v5 }
 0x2a7   : > { %v737_v8 = vld [vmem:[#allocation3 + $0x18] sm:$0xff] }
 0x2a8   : > { %583 = vst.msk [vmem:[#allocation3 + $0x28] sm:$0xff] %vm294_vm2, %v576_v7  ;;  %1101 = vrcp.f32 %v737_v8 }
 0x2a9   : > { %v1096_v9 = vpop.eup %1095  ;;  %v593_v18 = vpop.permute.xlu0 %592 }
 0x2aa   : > { %754 = vperm.xlu1 %1061, %v1096_v9   ;;  %v598_v19 = vpop.permute.xlu1 %597  ;;  %v620_v20 = vmul.f32 %v593_v18, %v584_v16 }
 0x2ab   : > { %v738_v10 = vld [vmem:[#allocation3 + $0x20] sm:$0xff]  ;;  %v621_v25 = vmul.f32 %v598_v19, %v585_v21 }
 0x2ac   : > { %1103 = vrcp.f32 %v738_v10 }
 0x2ad   : > { %v1098_v11 = vpop.eup %1097  ;;  %v608_v33 = vpop.permute.xlu0 %607 }
 0x2ae   : > { %759 = vperm.xlu0 %1060, %v1098_v11   ;;  %v603_v27 = vpop.permute.xlu1 %602  ;;  %v623_v37 = vmul.f32 %v608_v33, %v587_v32 }
 0x2af   : > { %v739_v13 = vld [vmem:[#allocation3 + $0x28] sm:$0xff]  ;;  %v622_v31 = vmul.f32 %v603_v27, %v586_v26 }
 0x2b0   : > { %1105 = vrcp.f32 %v739_v13 }
 0x2b1   : > { %v1100_v12 = vpop.eup %1099  ;;  %v618_v44 = vpop.permute.xlu0 %617 }
 0x2b2   : > { %764 = vperm.xlu1 %1061, %v1100_v12   ;;  %v613_v38 = vpop.permute.xlu1 %612  ;;  %v625_v48 = vmul.f32 %v618_v44, %v589_v43 }
 0x2b3   : > { %v624_v42 = vmul.f32 %v613_v38, %v588_v36 }
 0x2b5   : > { %v1102_v14 = vpop.eup %1101 }
 0x2b6   : > { %769 = vperm.xlu0 %1060, %v1102_v14  }
 0x2b9   : > { %v1104_v15 = vpop.eup %1103 }
 0x2ba   : > { %774 = vperm.xlu1 %1061, %v1104_v15  }
 0x2bd   : > { %v1106_v17 = vpop.eup %1105 }
 0x2be   : > { %779 = vperm.xlu0 %1060, %v1106_v17  }
 0x2cd   : > { %v690_v22 = vpop.f32.mrf.mxu1 }
 0x2ce   : > { %v713_v23 = vadd.f32 %v690_v22, %v620_v20 }
 0x2cf   : > { %v1021_v24 = vpop.f32.mrf.mxu1 }
 0x2d0   : > { %719 = vst.msk [vmem:[#allocation4] sm:$0xff] %vm307_vm0, %v713_v23 }
 0x2d1   : > { %v693_v28 = vpop.f32.mrf.mxu1 }
 0x2d2   : > { %v714_v29 = vadd.f32 %v693_v28, %v621_v25 }
 0x2d3   : > { %v1022_v30 = vpop.f32.mrf.mxu1 }
 0x2d4   : > { %720 = vst.msk [vmem:[#allocation4 + $0x8] sm:$0xff] %vm307_vm0, %v714_v29 }
 0x2d5   : > { %v698_v34 = vpop.f32.mrf.mxu1 }
 0x2d6   : > { %v715_v0 = vadd.f32 %v698_v34, %v622_v31 }
 0x2d7   : > { %v1025_v35 = vpop.f32.mrf.mxu1  ;;  %v746_v52 = vld [vmem:[#allocation4] sm:$0xff] }
 0x2d8   : > { %721 = vst.msk [vmem:[#allocation4 + $0x10] sm:$0xff] %vm307_vm0, %v715_v0 }
 0x2d9   : > { %v701_v39 = vpop.f32.mrf.mxu1 }
 0x2da   : > { %v716_v40 = vadd.f32 %v701_v39, %v623_v37 }
 0x2db   : > { %v1026_v41 = vpop.f32.mrf.mxu1  ;;  %v747_v57 = vld [vmem:[#allocation4 + $0x8] sm:$0xff] }
 0x2dc   : > { %722 = vst.msk [vmem:[#allocation4 + $0x18] sm:$0xff] %vm307_vm0, %v716_v40 }
 0x2dd   : > { %v706_v45 = vpop.f32.mrf.mxu1 }
 0x2de   : > { %v717_v46 = vadd.f32 %v706_v45, %v624_v42 }
 0x2df   : > { %v1029_v47 = vpop.f32.mrf.mxu1  ;;  %v748_v60 = vld [vmem:[#allocation4 + $0x10] sm:$0xff] }
 0x2e0   : > { %723 = vst.msk [vmem:[#allocation4 + $0x20] sm:$0xff] %vm307_vm0, %v717_v46 }
 0x2e1   : > { %v709_v49 = vpop.f32.mrf.mxu1 }
 0x2e2   : > { %v718_v50 = vadd.f32 %v709_v49, %v625_v48 }
 0x2e3   : > { %v1030_v51 = vpop.f32.mrf.mxu1  ;;  %v749_v1 = vld [vmem:[#allocation4 + $0x18] sm:$0xff] }
 0x2e4   : > { %724 = vst.msk [vmem:[#allocation4 + $0x28] sm:$0xff] %vm307_vm0, %v718_v50 }
 0x2e7   : > { %v750_v5 = vld [vmem:[#allocation4 + $0x20] sm:$0xff] }
 0x2eb   : > { %v751_v9 = vld [vmem:[#allocation4 + $0x28] sm:$0xff] }
 0x325   : > { %v755_v53 = vpop.permute.xlu1 %754 }
 0x326   : > { %v782_v54 = vmul.f32 %v755_v53, %v746_v52 }
 0x328   : > { %v977_v55 = vpack.c.bf16 %v782_v54, %v782_v54 }
 0x329   : > { %v760_v56 = vpop.permute.xlu0 %759 }
 0x32a   : > { %813 = vst.msk [vmem:[%s287_s28] sm:$0xf] %vm812_vm4, %v977_v55  ;;  %v783_v58 = vmul.f32 %v760_v56, %v747_v57 }
 0x32c   : > { %v978_v59 = vpack.c.bf16 %v783_v58, %v783_v58 }
 0x32d   : > { %v765_v61 = vpop.permute.xlu1 %764 }
 0x32e   : > { %814 = vst.msk [vmem:[%s287_s28 + $0x4] sm:$0xf] %vm812_vm4, %v978_v59  ;;  %v784_v62 = vmul.f32 %v765_v61, %v748_v60 }
 0x330   : > { %v979_v63 = vpack.c.bf16 %v784_v62, %v784_v62 }
 0x331   : > { %v770_v2 = vpop.permute.xlu0 %769 }
 0x332   : > { %815 = vst.msk [vmem:[%s287_s28 + $0x8] sm:$0xf] %vm812_vm4, %v979_v63  ;;  %v785_v3 = vmul.f32 %v770_v2, %v749_v1 }
 0x334   : > { %v980_v4 = vpack.c.bf16 %v785_v3, %v785_v3 }
 0x335   : > { %v775_v6 = vpop.permute.xlu1 %774 }
 0x336   : > { %816 = vst.msk [vmem:[%s287_s28 + $0xc] sm:$0xf] %vm812_vm4, %v980_v4  ;;  %v786_v7 = vmul.f32 %v775_v6, %v750_v5 }
 0x338   : > { %v981_v8 = vpack.c.bf16 %v786_v7, %v786_v7 }
 0x339   : > { %v780_v10 = vpop.permute.xlu0 %779 }
 0x33a   : > { %817 = vst.msk [vmem:[%s287_s28 + $0x10] sm:$0xf] %vm812_vm4, %v981_v8  ;;  %v787_v11 = vmul.f32 %v780_v10, %v751_v9 }
 0x33c   : > { %v982_v13 = vpack.c.bf16 %v787_v11, %v787_v11 }
 0x33e   : > { %818 = vst.msk [vmem:[%s287_s28 + $0x14] sm:$0xf] %vm812_vm4, %v982_v13 }
 0x33f PF: > { %s13_s14 = sadd.s32 1, %s1129_s14   ;;  %s1390_s12 = smov %s1125_s13 }
 0x340   : > { %p10_p5 = scmp.ge.s32.totalorder %s13_s14, 6   ;;  %s1391_s13 = smov %s1393_s15 }
 0x342   :  { %12 = sbr.rel (!%p10_p5) target bundleno = 2 (0x2), region = 76 }

// kernel: forward_layer.29
= control target key start
LH: loop header
LB: loop body
LE: loop exit
PB: predicated region body
PF: predicated region fallthrough
CT: control target
= control target key end

     0   :  { %12 = vsyncpa [#allocation4], 0  ;;  %s1491_s0 = inlined_call_operand.vmem [shape: bf16[2,16,64], index: 0, kind: input, shape index: {}]   ;;  %s1492_s1 = inlined_call_operand.vmem [shape: bf16[64,256], index: 1, kind: input, shape index: {}]   ;;  %s1493_s2 = inlined_call_operand.vmem [shape: bf16[1,256], index: 2, kind: input, shape index: {}]   ;;  %s1494_s3 = inlined_call_operand.vmem [shape: bf16[256,64], index: 3, kind: input, shape index: {}]   ;;  %s1495_s4 = inlined_call_operand.vmem [shape: bf16[1,64], index: 4, kind: input, shape index: {}]   ;;  %s1496_s5 = inlined_call_operand.vmem [shape: bf16[2,1,64], index: 5, kind: input, shape index: {}]   ;;  %s1497_s6 = inlined_call_operand.vmem [shape: bf16[2,16,64], index: 6, kind: input, shape index: {}]   ;;  %s1498_s7 = inlined_call_operand.hbm [shape: bf16[2,16,64], index: 7, kind: output, shape index: {}]  }
   0x1   :  { %14 = vsyncpa [#allocation4 + $0x1], 0  ;;  %s1273_s24 = smov 0   ;;  %s1275_s25 = smov 0  }
   0x2   :  { %s1277_s26 = smov 0   ;;  %s1279_s27 = smov 0  }
   0x3   :  { %s1281_s28 = smov 0   ;;  %s1283_s29 = smov 0  }
   0x4 LB: > { %s977_s30 = sadd.s32 4294967295, %s1226_s29   ;;  %s978_s8 = sadd.s32 4294967294, %s1226_s29   ;;  %s1226_s29 = sphi %s1283_s29, %s20_s29   ;;  %s1222_s28 = sphi %s1281_s28, %s1505_s28   ;;  %s1218_s27 = sphi %s1279_s27, %s1504_s27   ;;  %s1214_s26 = sphi %s1277_s26, %s1503_s26   ;;  %s1210_s25 = sphi %s1275_s25, %s1502_s25   ;;  %s1206_s24 = sphi %s1273_s24, %s1501_s24  }
   0x5   : > { %s39_s9 = sadd.s32 1, %s1222_s28  ;;  %s229_s10 = sadd.s32 1, %s1214_s26 }
   0x6   : > { %p41_p0 = scmp.ge.s32.totalorder %s39_s9, 2  ;;  %p239_p1 = scmp.ne.s32.totalorder %s1214_s26, %s1210_s25 }
   0x7   : > { %p240_p2 = scmp.eq.s32.totalorder %s977_s30, 1  ;;  %p245_p3 = scmp.ne.s32.totalorder %s1210_s25, %s1206_s24 }
   0x8   : > { %s1507_s9 = smov (%p41_p0, %s39_s9), 0  ;;  %p246_p5 = scmp.eq.s32.totalorder %s978_s8, 1 }
   0x9   : > { %p1313_p4 = por %p240_p2, %p239_p1  ;;  %s224_s12 = ssub.s32 %s1222_s28, %s1507_s9 }
   0xa   : > { %p984_p6 = scmp.ge.s32.totalorder %s1226_s29, 1  ;;  %p227_p7 = scmp.eq.s32.totalorder %s224_s12, 0 }
   0xb   : > { %p1320_p8 = por %p246_p5, %p245_p3  ;;  %p325_p9 = scmp.lt.s32.totalorder %s1226_s29, 3 }
   0xc   : > { %s1326_s14 = scalar_select %p227_p7, %s1214_s26, %s229_s10  }
   0xd   : > { %p326_p10 = pnand %p984_p6, %p325_p9 }
   0xe   : > { %p388_p11 = scmp.lt.s32.totalorder (!%p326_p10), %s1218_s27, 1  ;;  %s384_s22 = sand.u32 (!%p326_p10), 1, %s1210_s25  }
   0xf   : > { %329 = sbr.rel (%p326_p10) target bundleno = 504 (0x1f8), region = 48  ;;  %s985_s23 = sshll.u32 (!%p326_p10), %s384_s22, 3 }
  0x10   : > { %s1446_s17 = scalar_lea.sflag (!%p326_p10), [#allocation4], %s384_s22 }
  0x14   : > { %v1113_v0 = vld [vmem:[%s1492_s1 + $0x34] ss:$8 sps:$4 sm:$0xff]   ;;  %v1115_v1 = vld [vmem:[%s1492_s1 + $0x30] ss:$8 sps:$4 sm:$0xff]   ;;  %v1228_v2 = vmov 0   ;;  %s1339_s21 = scalar_select %p388_p11, %s1218_s27, 1  ;;  %v449_v26 = vlaneseq }
  0x15   : > { %548 = vmatprep.mubr.bf16.mxu0 %v1228_v2  ;;  %524 = vmatprep.subr.bf16.mxu0 %v1113_v0  ;;  %v1116_v3 = vld [vmem:[%s1492_s1 + $0x24] ss:$8 sps:$4 sm:$0xff]   ;;  %v1118_v4 = vld [vmem:[%s1492_s1 + $0x20] ss:$8 sps:$4 sm:$0xff]   ;;  %v1119_v5 = vld [vmem:[%s1492_s1 + $0x14] ss:$8 sps:$4 sm:$0xff]  }
  0x16   : > { %525 = vmatpush1.bf16.msra.mxu0 %v1115_v1  ;;  %s1023_s10 = sshll.u32 %s1339_s21, 3  ;;  %v1121_v6 = vld [vmem:[%s1492_s1 + $0x10] ss:$8 sps:$4 sm:$0xff]   ;;  %v1122_v7 = vld [vmem:[%s1492_s1 + $0x4] ss:$8 sps:$4 sm:$0xff]   ;;  %vm433_vm0 = vcmask 523264   ;;  %s416_s15 = scalar_lea.vmem %s1496_s5, %s1339_s21 }
  0x17   : > { %526 = vmatprep.subr.bf16.mxu0 %v1116_v3  ;;  %s395_s16 = scalar_lea.vmem %s1491_s0, %s1023_s10  ;;  %v1124_v8 = vld [vmem:[%s1492_s1] ss:$8 sps:$4 sm:$0xff]   ;;  %v1126_v10 = vld [vmem:[%s1494_s3 + $0x78] sm:$0xff]   ;;  %v1128_v12 = vld [vmem:[%s1494_s3 + $0x70] sm:$0xff]   ;;  %v450_v27 = vshrl.u32 %v449_v26, 7  ;;  %vm807_vm1 = vcmask 519168  }
  0x18   : > { %v1125_v9 = vld [vmem:[%s395_s16] sm:$0xff]   ;;  %v1127_v11 = vld [vmem:[%s1494_s3 + $0x38] sm:$0xff]   ;;  %1032 = vmatprep.subr.bf16.mxu1 %v1126_v10  ;;  %v1129_v13 = vld [vmem:[%s1494_s3 + $0x30] sm:$0xff]   ;;  %s425_s16 = scalar_lea.vmem %s1497_s6, %s1023_s10  ;;  %s1027_s21 = sshll.u32 %s1218_s27, 7 }
  0x19   : > { %1033 = vmatpush3.bf16.msra.mxu1 %v1127_v11  ;;  %v1130_v14 = vld [vmem:[%s1494_s3 + $0x68] sm:$0xff]   ;;  %v1132_v16 = vld [vmem:[%s1494_s3 + $0x60] sm:$0xff]   ;;  %v1134_v18 = vld [vmem:[%s1494_s3 + $0x58] sm:$0xff]   ;;  %v1414_v30 = vsub.s32 0, %v450_v27  ;;  %v455_v31 = vsub.s32 2, %v450_v27  ;;  %s386_s10 = scalar_lea.vmem [#allocation3], %s985_s23 }
  0x1a   : > { %527 = vmatpush1.bf16.msra.mxu0 %v1118_v4  ;;  %1034 = vmatprep.subr.bf16.mxu1 %v1128_v12  ;;  %v1131_v15 = vld [vmem:[%s1494_s3 + $0x28] sm:$0xff]   ;;  %v1133_v17 = vld [vmem:[%s1494_s3 + $0x20] sm:$0xff]   ;;  %v1135_v19 = vld [vmem:[%s1494_s3 + $0x18] sm:$0xff]   ;;  %s826_s30 = sshll.u32 %s386_s10, 4  ;;  %s1230_s27 = smov [#allocation3]   ;;  %s1444_s30 = int_to_ptr.vmem [resolvable:$true] %s826_s30 }
  0x1b   : > { %528 = vmatprep.subr.bf16.mxu0 %v1119_v5  ;;  %v1136_v20 = vld [vmem:[%s1494_s3 + $0x50] sm:$0xff]   ;;  %v1138_v22 = vld [vmem:[%s1494_s3 + $0x48] sm:$0xff]   ;;  %v1140_v24 = vld [vmem:[%s1494_s3 + $0x40] sm:$0xff]   ;;  %s1150_s18 = scalar_lea.vmem %s1444_s30, 128  ;;  %s1154_s19 = sshll.u32 %s1230_s27, 4  ;;  %s1155_s19 = int_to_ptr.vmem [resolvable:$false] %s1154_s19 }
  0x1c   : > { %v1137_v21 = vld [vmem:[%s1494_s3 + $0x10] sm:$0xff]   ;;  %v1139_v23 = vld [vmem:[%s1494_s3 + $0x8] sm:$0xff]   ;;  %v1141_v25 = vld [vmem:[%s1494_s3] sm:$0xff]   ;;  %p1151_p12 = scmp.ne.s32.totalorder %s1444_s30, %s1150_s18  ;;  %s1156_s20 = scalar_lea.vmem %s1155_s19, 256 }
  0x1d   : > { %1035 = vmatpush3.bf16.msra.mxu1 %v1129_v13  ;;  %v446_v28 = vld [vmem:[%s1493_s2] sm:$0x3]  ;;  %p1157_p1 = scmp.lt.s32.totalorder %s1444_s30, %s1155_s19  ;;  %p1158_p2 = scmp.lt.s32.totalorder %s1156_s20, %s1150_s18 }
  0x1e   : > { %529 = vmatpush1.bf16.msra.mxu0 %v1121_v6  ;;  %1036 = vmatprep.subr.bf16.mxu1 %v1130_v14  ;;  %v447_v29 = vunpack.c.l.bf16 %v446_v28  ;;  %v785_v26 = vld [vmem:[%s416_s15] sm:$0x1]  ;;  %s1442_s15 = scalar_lea.hbm %s1498_s7, %s1027_s21  ;;  %p1152_p13 = pnand %p1151_p12, %p1313_p4 }
  0x1f   : > { %530 = vmatprep.subr.bf16.mxu0 %v1122_v7  ;;  %p1159_p3 = por %p1158_p2, %p1157_p1 }
  0x20   : > { %v452_v32 = vrot.slane %v447_v29, %v1414_v30  ;;  %v456_v33 = vrot.slane %v447_v29, %v455_v31  ;;  %p1153_p0 = pneg %p1152_p13 }
  0x21   : > { %1037 = vmatpush3.bf16.msra.mxu1 %v1131_v15 }
  0x22   : > { %531 = vmatpush1.bf16.msra.mxu0 %v1124_v8  ;;  %1038 = vmatprep.subr.bf16.mxu1 %v1132_v16  ;;  %v462_v34 = vrot.slane %v452_v32, %v1414_v30  ;;  %v466_v35 = vrot.slane %v456_v33, %v1414_v30  ;;  %v786_v32 = vunpack.c.l.bf16 %v785_v26  ;;  %p1160_p5 = pnand %p1159_p3, %p1153_p0 }
  0x25   : > { %999 = vmatmul.mubr.msk.bf16.vlgmr.msra.gmra.mxu0 %vm433_vm0, %v1125_v9  ;;  %1039 = vmatpush3.bf16.msra.mxu1 %v1133_v17 }
  0x26   : > { %1040 = vmatprep.subr.bf16.mxu1 %v1134_v18  ;;  %v1229_v18 = vmov 0.0  }
  0x27   : > { %434 = vst.msk [vmem:[#allocation2] sm:$0xff] %vm433_vm0, %v1229_v18  ;;  %435 = vst.msk [vmem:[#allocation2 + $0x8] sm:$0xff] %vm433_vm0, %v1229_v18 }
  0x29   : > { %1041 = vmatpush3.bf16.msra.mxu1 %v1135_v19 }
  0x2a   : > { %1042 = vmatprep.subr.bf16.mxu1 %v1136_v20 }
  0x2d   : > { %1043 = vmatpush3.bf16.msra.mxu1 %v1137_v21 }
  0x2e   : > { %1044 = vmatprep.subr.bf16.mxu1 %v1138_v22  ;;  %v595_v20 = vld [vmem:[#allocation2] sm:$0xff]  ;;  %v596_v27 = vld [vmem:[#allocation2 + $0x8] sm:$0xff] }
  0x31   : > { %1045 = vmatpush3.bf16.msra.mxu1 %v1139_v23 }
  0x32   : > { %1046 = vmatprep.subr.bf16.mxu1 %v1140_v24  ;;  %v777_v24 = vld [vmem:[%s1495_s4] sm:$0x1] }
  0x33   : > { %v778_v31 = vunpack.c.l.bf16 %v777_v24 }
  0x35   : > { %1047 = vmatpush3.bf16.msra.mxu1 %v1141_v25 }
  0xe5   : > { %v550_v36 = vpop.f32.mrf.mxu0 }
  0xe6   : > { %v551_v37 = vadd.f32 %v550_v36, %v462_v34  ;;  %v790_v36 = vrot.slane %v786_v32, %v1414_v30 }
  0xe7   : > { %v552_v38 = vpop.f32.mrf.mxu0 }
  0xe8   : > { %v559_v39 = vmul.f32 %v551_v37, %v551_v37  ;;  %v553_v40 = vadd.f32 %v552_v38, %v466_v35 }
  0xe9   : > { %v554_v41 = vpop.f32.mrf.mxu0 }
  0xea   : > { %v563_v42 = vmul.f32 %v559_v39, %v551_v37  ;;  %v560_v43 = vmul.f32 %v553_v40, %v553_v40  ;;  %v555_v44 = vadd.f32 %v554_v41, %v462_v34  ;;  %v782_v34 = vrot.slane %v778_v31, %v1414_v30 }
  0xeb   : > { %v556_v45 = vpop.f32.mrf.mxu0 }
  0xec   : > { %v567_v46 = vmul.f32 0.044715, %v563_v42  ;;  %v564_v47 = vmul.f32 %v560_v43, %v553_v40  ;;  %v561_v48 = vmul.f32 %v555_v44, %v555_v44  ;;  %v557_v49 = vadd.f32 %v556_v45, %v466_v35  ;;  %v1029_v35 = vld [vmem:[%s425_s16] sm:$0xff]  }
  0xed   : > { %v1030_v38 = vunpack.c.l.bf16 %v1029_v35  ;;  %v1031_v42 = vunpack.c.h.bf16 %v1029_v35 }
  0xee   : > { %v571_v50 = vadd.f32 %v567_v46, %v551_v37  ;;  %v568_v51 = vmul.f32 0.044715, %v564_v47  ;;  %v565_v52 = vmul.f32 %v561_v48, %v555_v44  ;;  %v562_v53 = vmul.f32 %v557_v49, %v557_v49 }
  0xf0   : > { %v575_v54 = vmul.f32 0.7978846, %v571_v50  ;;  %v572_v55 = vadd.f32 %v568_v51, %v553_v40  ;;  %v569_v56 = vmul.f32 0.044715, %v565_v52  ;;  %v566_v57 = vmul.f32 %v562_v53, %v557_v49 }
  0xf2   : > { %v573_v58 = vadd.f32 %v569_v56, %v555_v44  ;;  %v570_v59 = vmul.f32 0.044715, %v566_v57  ;;  %v576_v60 = vmul.f32 0.7978846, %v572_v55  ;;  %1142 = vtanh.f32 %v575_v54 }
  0xf4   : > { %v577_v61 = vmul.f32 0.7978846, %v573_v58  ;;  %v574_v62 = vadd.f32 %v570_v59, %v557_v49  ;;  %1144 = vtanh.f32 %v576_v60 }
  0xf6   : > { %1146 = vtanh.f32 %v577_v61  ;;  %v578_v63 = vmul.f32 0.7978846, %v574_v62 }
  0xf8   : > { %1148 = vtanh.f32 %v578_v63 }
  0xff   : > { %v1143_v0 = vpop.eup %1142 }
 0x100   : > { %v583_v4 = vadd.f32 1.0, %v1143_v0 }
 0x101   : > { %v1145_v1 = vpop.eup %1144 }
 0x102   : > { %v584_v2 = vadd.f32 1.0, %v1145_v1  ;;  %v587_v10 = vmul.f32 0.5, %v583_v4 }
 0x103   : > { %v1147_v3 = vpop.eup %1146 }
 0x104   : > { %v585_v5 = vadd.f32 1.0, %v1147_v3  ;;  %v588_v8 = vmul.f32 0.5, %v584_v2  ;;  %v591_v15 = vmul.f32 %v587_v10, %v551_v37 }
 0x105   : > { %v1149_v6 = vpop.eup %1148 }
 0x106   : > { %v586_v7 = vadd.f32 1.0, %v1149_v6  ;;  %v589_v9 = vmul.f32 0.5, %v585_v5  ;;  %v592_v13 = vmul.f32 %v588_v8, %v553_v40 }
 0x108   : > { %v590_v11 = vmul.f32 0.5, %v586_v7  ;;  %v593_v12 = vmul.f32 %v589_v9, %v555_v44 }
 0x10a   : > { %v594_v14 = vmul.f32 %v590_v11, %v557_v49  ;;  %v597_v17 = vpack.c.bf16 %v593_v12, %v591_v15 }
 0x10c   : > { %v598_v16 = vpack.c.bf16 %v594_v14, %v592_v13 }
 0x10e   : > { %759 = vmatprep.mubr.bf16.mxu1 %v598_v16 }
 0x10f   : > { %760 = vmatmul.mubr.bf16.vlgmr.msra.gmra.mxu1 %v597_v17 }
 0x1cf   : > { %v1048_v19 = vpop.f32.mrf.mxu1 }
 0x1d1   : > { %v1049_v21 = vpop.f32.mrf.mxu1 }
 0x1d2   : > { %v1050_v22 = vadd.f32 %v1049_v21, %v1048_v19 }
 0x1d3   : > { %v1051_v23 = vpop.f32.mrf.mxu1 }
 0x1d4   : > { %v768_v25 = vadd.f32 %v1050_v22, %v595_v20 }
 0x1d5   : > { %v1052_v28 = vpop.f32.mrf.mxu1 }
 0x1d6   : > { %770 = vst.msk [vmem:[#allocation2] sm:$0xff] %vm433_vm0, %v768_v25  ;;  %v1053_v29 = vadd.f32 %v1052_v28, %v1051_v23 }
 0x1d8   : > { %v769_v33 = vadd.f32 %v1053_v29, %v596_v27 }
 0x1da   : > { %771 = vst.msk [vmem:[#allocation2 + $0x8] sm:$0xff] %vm433_vm0, %v769_v33 }
 0x1dd   : > { %v775_v37 = vld [vmem:[#allocation2] sm:$0xff] }
 0x1de   : > { %v783_v39 = vadd.f32 %v782_v34, %v775_v37 }
 0x1e0   : > { %v791_v40 = vmul.f32 %v790_v36, %v783_v39 }
 0x1e1   : > { %v776_v41 = vld [vmem:[#allocation2 + $0x8] sm:$0xff] }
 0x1e2   : > { %v784_v43 = vadd.f32 %v782_v34, %v776_v41  ;;  %v797_v44 = vadd.f32 %v1030_v38, %v791_v40 }
 0x1e4   : > { %v792_v45 = vmul.f32 %v790_v36, %v784_v43  ;;  %v1025_v46 = vpack.c.bf16 %v797_v44, %v797_v44 }
 0x1e6   : > { %v798_v47 = vadd.f32 %v1031_v42, %v792_v45  ;;  %808 = vst.msk [vmem:[%s386_s10] sm:$0xf] %vm807_vm1, %v1025_v46 }
 0x1e8   : > { %v1026_v30 = vpack.c.bf16 %v798_v47, %v798_v47 }
 0x1ea   : > { %809 = vst.msk [vmem:[%s386_s10 + $0x4] sm:$0xf] %vm807_vm1, %v1026_v30 }
 0x1eb   : > { %1163 = shalt.err (!%p1160_p5)
}
 0x1ec   : > { %s1164_s16 = scalar_lea.hbm %s1442_s15, 128  ;;  %s1168_s21 = scalar_lea.hbm %s1498_s7, 256 }
 0x1ed   : > { %p1165_p6 = scmp.ne.s32.totalorder %s1442_s15, %s1164_s16  ;;  %p1169_p10 = scmp.lt.s32.totalorder %s1442_s15, %s1498_s7 }
 0x1ee   : > { %p1170_p11 = scmp.lt.s32.totalorder %s1168_s21, %s1164_s16 }
 0x1ef   : > { %p1166_p7 = pnand %p1165_p6, %p1313_p4 }
 0x1f0   : > { %p1171_p12 = por %p1170_p11, %p1169_p10 }
 0x1f1   : > { %p1167_p9 = pneg %p1166_p7 }
 0x1f3   : > { %p1172_p13 = pnand %p1171_p12, %p1167_p9 }
 0x1f5   : > { %1175 = shalt.err (!%p1172_p13)
}
 0x1f6   : > { %s1231_s12 = smov 64   ;;  %s1232_s18 = smov 4  }
 0x1f7   : > { %1054 = dma.vmem_to_hbm [thread:$0]  (%p1313_p4), %s1444_s30, 128, %s1442_s15, %s1446_s17, %s1231_s12, %s1231_s12, %s1232_s18  }
 0x1f8 PF: > { %p1060_p0 = scmp.ge.s32.totalorder %s1226_s29, 2  ;;  %s841_s27 = sand.u32 1, %s1206_s24  }
 0x1f9   : > { %s842_s19 = scalar_lea.sflag [#allocation4], %s841_s27 }
 0x1fa   : > { %p1057_p1 = pnand %p1060_p0, %p1320_p8 }
 0x1fc   : > { %p1058_p2 = pneg %p1057_p1 }
 0x1fe   : > { %1201 = dma.done.wait (%p1058_p2), %s842_s19, 128  }
 0x1ff   : > { %1203 = vsyncadd (%p1058_p2), %s842_s19, 4294967168  ;;  %s20_s29 = sadd.s32 1, %s1226_s29   ;;  %s1501_s24 = smov %s1210_s25 }
 0x200   : > { %p17_p3 = scmp.ge.s32.totalorder %s20_s29, 4   ;;  %s1502_s25 = smov %s1214_s26 }
 0x201   : > { %s1503_s26 = smov %s1326_s14  ;;  %s1504_s27 = smov %s1222_s28 }
 0x202   : > { %s1505_s28 = smov %s1507_s9  ;;  %19 = sbr.rel (!%p17_p3) target bundleno = 4 (0x4), region = 106 }
 0x207   :  { %847 = vsyncpa [#allocation4], 1 }
 0x208   :  { %849 = vsyncpa [#allocation4 + $0x1], 1 }

// kernel: forward_layer.24
= control target key start
LH: loop header
LB: loop body
LE: loop exit
PB: predicated region body
PF: predicated region fallthrough
CT: control target
= control target key end

     0   :  { %s916_s18 = smov 0   ;;  %s918_s19 = smov 0   ;;  %s989_s0 = inlined_call_operand.vmem [shape: bf16[2,32,64], index: 0, kind: input, shape index: {}]   ;;  %s990_s1 = inlined_call_operand.vmem [shape: bf16[64,64], index: 1, kind: input, shape index: {}]   ;;  %s991_s2 = inlined_call_operand.vmem [shape: bf16[1,64], index: 2, kind: input, shape index: {}]   ;;  %s992_s3 = inlined_call_operand.vmem [shape: bf16[2,1,64], index: 3, kind: input, shape index: {}]   ;;  %s993_s4 = inlined_call_operand.vmem [shape: bf16[2,32,64], index: 4, kind: input, shape index: {}]   ;;  %s994_s5 = inlined_call_operand.vmem [shape: bf16[2,32,64], index: 5, kind: output, shape index: {}]  }
   0x1   :  { %s920_s20 = smov 0  }
   0x2 LB: > { %s41_s21 = sadd.s32 1, %s879_s19  ;;  %p775_p0 = scmp.ge.s32.totalorder %s883_s20, 1  ;;  %s883_s20 = sphi %s920_s20, %s15_s20   ;;  %s879_s19 = sphi %s918_s19, %s996_s19   ;;  %s875_s18 = sphi %s916_s18, %s995_s18  }
   0x3   : > { %p43_p1 = scmp.ge.s32.totalorder %s41_s21, 2  ;;  %p288_p2 = scmp.lt.s32.totalorder %s883_s20, 3 }
   0x5   : > { %s998_s21 = smov (%p43_p1, %s41_s21), 0  ;;  %p289_p3 = pnand %p775_p0, %p288_p2 }
   0x6   : > { %p360_p4 = scmp.lt.s32.totalorder (!%p289_p3), %s875_s18, 1 }
   0x7   : > { %292 = sbr.rel (%p289_p3) target bundleno = 247 (0xf7), region = 40 }
   0xc   : > { %v855_v0 = vld [vmem:[%s990_s1 + $0x18] sm:$0xff]   ;;  %v856_v1 = vld [vmem:[%s990_s1 + $0x10] sm:$0xff]   ;;  %s1000_s18 = smov (!%p360_p4, %s875_s18), 1  ;;  %v857_v2 = vld [vmem:[%s990_s1 + $0x8] sm:$0xff]   ;;  %vm421_vm0 = vcmask 523264   ;;  %v885_v3 = vmov 0.0   ;;  %v549_v7 = vlaneseq }
   0xd   : > { %818 = vmatprep.subr.bf16.mxu0 %v855_v0  ;;  %s946_s28 = sshll.u32 %s1000_s18, 4  ;;  %424 = vst.msk [vmem:[#allocation2 + $0x10] sm:$0xff] %vm421_vm0, %v885_v3  ;;  %422 = vst.msk [vmem:[#allocation2] sm:$0xff] %vm421_vm0, %v885_v3  ;;  %v858_v5 = vld [vmem:[%s990_s1] sm:$0xff]   ;;  %s389_s11 = scalar_lea.vmem %s992_s3, %s1000_s18  ;;  %vm595_vm1 = vcmask 519168  }
   0xe   : > { %819 = vmatpush3.bf16.msra.mxu0 %v855_v0  ;;  %s370_s6 = scalar_lea.vmem %s989_s0, %s946_s28  ;;  %423 = vst.msk [vmem:[#allocation2 + $0x8] sm:$0xff] %vm421_vm0, %v885_v3  ;;  %425 = vst.msk [vmem:[#allocation2 + $0x18] sm:$0xff] %vm421_vm0, %v885_v3  ;;  %v550_v9 = vshrl.u32 %v549_v7, 7  ;;  %v547_v10 = vld [vmem:[%s991_s2] sm:$0x1]  ;;  %s401_s16 = scalar_lea.vmem %s993_s4, %s946_s28 }
   0xf   : > { %820 = vmatprep.subr.bf16.mxu0 %v856_v1  ;;  %v859_v4 = vld [vmem:[%s370_s6] sm:$0xff]   ;;  %v860_v6 = vld [vmem:[%s370_s6 + $0x8] sm:$0xff]   ;;  %v548_v17 = vunpack.c.l.bf16 %v547_v10  ;;  %s414_s22 = scalar_lea.vmem %s994_s5, %s946_s28 }
  0x10   : > { %826 = vmatprep.mubr.msk.bf16.mxu0 %vm421_vm0, %v859_v4  ;;  %v557_v14 = vld [vmem:[%s389_s11] sm:$0x1]  ;;  %v551_v18 = vsub.s32 0, %v550_v9  ;;  %v811_v27 = vld [vmem:[%s401_s16 + $0x8] sm:$0xff]  }
  0x11   : > { %v558_v22 = vunpack.c.l.bf16 %v557_v14  ;;  %v804_v29 = vld [vmem:[%s401_s16] sm:$0xff]   ;;  %v809_v31 = vunpack.c.l.bf16 %v811_v27  ;;  %v810_v38 = vunpack.c.h.bf16 %v811_v27 }
  0x12   : > { %821 = vmatpush3.bf16.msra.mxu0 %v856_v1  ;;  %v552_v25 = vrot.slane %v548_v17, %v551_v18  ;;  %v805_v34 = vunpack.c.l.bf16 %v804_v29  ;;  %v806_v42 = vunpack.c.h.bf16 %v804_v29 }
  0x13   : > { %822 = vmatprep.subr.bf16.mxu0 %v857_v2  ;;  %v562_v28 = vrot.slane %v558_v22, %v551_v18 }
  0x14   : > { %v428_v8 = vld [vmem:[#allocation2 + $0x10] sm:$0xff]  ;;  %v426_v12 = vld [vmem:[#allocation2] sm:$0xff] }
  0x15   : > { %v429_v16 = vld [vmem:[#allocation2 + $0x18] sm:$0xff]  ;;  %v427_v21 = vld [vmem:[#allocation2 + $0x8] sm:$0xff] }
  0x16   : > { %823 = vmatpush3.bf16.msra.mxu0 %v857_v2 }
  0x17   : > { %824 = vmatprep.subr.bf16.mxu0 %v858_v5 }
  0x1a   : > { %825 = vmatpush3.bf16.msra.mxu0 %v858_v5 }
  0x1d   : > { %827 = vmatmul.mubr.msk.bf16.vlgmr.msra.gmra.mxu0 %vm421_vm0, %v860_v6 }
  0xdd   : > { %v828_v11 = vpop.f32.mrf.mxu0 }
  0xde   : > { %v534_v13 = vadd.f32 %v828_v11, %v428_v8 }
  0xdf   : > { %v517_v15 = vpop.f32.mrf.mxu0 }
  0xe0   : > { %538 = vst.msk [vmem:[#allocation2 + $0x10] sm:$0xff] %vm421_vm0, %v534_v13  ;;  %v532_v19 = vadd.f32 %v517_v15, %v426_v12 }
  0xe1   : > { %v829_v20 = vpop.f32.mrf.mxu0 }
  0xe2   : > { %536 = vst.msk [vmem:[#allocation2] sm:$0xff] %vm421_vm0, %v532_v19  ;;  %v535_v23 = vadd.f32 %v829_v20, %v429_v16 }
  0xe3   : > { %v520_v24 = vpop.f32.mrf.mxu0 }
  0xe4   : > { %539 = vst.msk [vmem:[#allocation2 + $0x18] sm:$0xff] %vm421_vm0, %v535_v23  ;;  %v533_v26 = vadd.f32 %v520_v24, %v427_v21 }
  0xe6   : > { %537 = vst.msk [vmem:[#allocation2 + $0x8] sm:$0xff] %vm421_vm0, %v533_v26 }
  0xe7   : > { %v545_v30 = vld [vmem:[#allocation2 + $0x10] sm:$0xff] }
  0xe8   : > { %v555_v32 = vadd.f32 %v552_v25, %v545_v30 }
  0xe9   : > { %v543_v33 = vld [vmem:[#allocation2] sm:$0xff] }
  0xea   : > { %v565_v35 = vmul.f32 %v562_v28, %v555_v32  ;;  %v553_v36 = vadd.f32 %v552_v25, %v543_v33 }
  0xeb   : > { %v546_v37 = vld [vmem:[#allocation2 + $0x18] sm:$0xff] }
  0xec   : > { %v577_v39 = vadd.f32 %v809_v31, %v565_v35  ;;  %v563_v40 = vmul.f32 %v562_v28, %v553_v36  ;;  %v556_v41 = vadd.f32 %v552_v25, %v546_v37 }
  0xed   : > { %v544_v43 = vld [vmem:[#allocation2 + $0x8] sm:$0xff] }
  0xee   : > { %v801_v44 = vpack.c.bf16 %v577_v39, %v577_v39  ;;  %v575_v45 = vadd.f32 %v805_v34, %v563_v40  ;;  %v566_v46 = vmul.f32 %v562_v28, %v556_v41  ;;  %v554_v47 = vadd.f32 %v552_v25, %v544_v43 }
  0xf0   : > { %598 = vst.msk [vmem:[%s414_s22 + $0x8] sm:$0xf] %vm595_vm1, %v801_v44  ;;  %v799_v48 = vpack.c.bf16 %v575_v45, %v575_v45  ;;  %v578_v49 = vadd.f32 %v810_v38, %v566_v46  ;;  %v564_v50 = vmul.f32 %v562_v28, %v554_v47 }
  0xf2   : > { %596 = vst.msk [vmem:[%s414_s22] sm:$0xf] %vm595_vm1, %v799_v48  ;;  %v802_v51 = vpack.c.bf16 %v578_v49, %v578_v49  ;;  %v576_v52 = vadd.f32 %v806_v42, %v564_v50 }
  0xf4   : > { %599 = vst.msk [vmem:[%s414_s22 + $0xc] sm:$0xf] %vm595_vm1, %v802_v51  ;;  %v800_v53 = vpack.c.bf16 %v576_v52, %v576_v52 }
  0xf6   : > { %597 = vst.msk [vmem:[%s414_s22 + $0x4] sm:$0xf] %vm595_vm1, %v800_v53 }
  0xf7 PF: > { %s15_s20 = sadd.s32 1, %s883_s20   ;;  %s995_s18 = smov %s879_s19 }
  0xf8   : > { %p12_p5 = scmp.ge.s32.totalorder %s15_s20, 4   ;;  %s996_s19 = smov %s998_s21 }
  0xfa   :  { %14 = sbr.rel (!%p12_p5) target bundleno = 2 (0x2), region = 90 }

// kernel: forward_layer.27
= control target key start
LH: loop header
LB: loop body
LE: loop exit
PB: predicated region body
PF: predicated region fallthrough
CT: control target
= control target key end

     0   :  { %12 = vsyncpa [#allocation4], 0  ;;  %s1675_s0 = inlined_call_operand.vmem [shape: bf16[2,32,64], index: 0, kind: input, shape index: {}]   ;;  %s1676_s1 = inlined_call_operand.vmem [shape: bf16[64,256], index: 1, kind: input, shape index: {}]   ;;  %s1677_s2 = inlined_call_operand.vmem [shape: bf16[1,256], index: 2, kind: input, shape index: {}]   ;;  %s1678_s3 = inlined_call_operand.vmem [shape: bf16[256,64], index: 3, kind: input, shape index: {}]   ;;  %s1679_s4 = inlined_call_operand.vmem [shape: bf16[1,64], index: 4, kind: input, shape index: {}]   ;;  %s1680_s5 = inlined_call_operand.vmem [shape: bf16[2,1,64], index: 5, kind: input, shape index: {}]   ;;  %s1681_s6 = inlined_call_operand.vmem [shape: bf16[2,32,64], index: 6, kind: input, shape index: {}]   ;;  %s1682_s7 = inlined_call_operand.hbm [shape: bf16[2,32,64], index: 7, kind: output, shape index: {}]  }
   0x1   :  { %14 = vsyncpa [#allocation4 + $0x1], 0  ;;  %s1395_s24 = smov 0   ;;  %s1397_s25 = smov 0  }
   0x2   :  { %s1399_s26 = smov 0   ;;  %s1401_s27 = smov 0  }
   0x3   :  { %s1403_s28 = smov 0   ;;  %s1405_s29 = smov 0  }
   0x4 LB: > { %s1073_s30 = sadd.s32 4294967295, %s1348_s29   ;;  %s1074_s8 = sadd.s32 4294967294, %s1348_s29   ;;  %s1348_s29 = sphi %s1405_s29, %s20_s29   ;;  %s1344_s28 = sphi %s1403_s28, %s1689_s28   ;;  %s1340_s27 = sphi %s1401_s27, %s1688_s27   ;;  %s1336_s26 = sphi %s1399_s26, %s1687_s26   ;;  %s1332_s25 = sphi %s1397_s25, %s1686_s25   ;;  %s1328_s24 = sphi %s1395_s24, %s1685_s24  }
   0x5   : > { %s39_s9 = sadd.s32 1, %s1344_s28  ;;  %s229_s10 = sadd.s32 1, %s1336_s26 }
   0x6   : > { %p41_p0 = scmp.ge.s32.totalorder %s39_s9, 2  ;;  %p239_p1 = scmp.ne.s32.totalorder %s1336_s26, %s1332_s25 }
   0x7   : > { %p240_p2 = scmp.eq.s32.totalorder %s1073_s30, 1  ;;  %p245_p3 = scmp.ne.s32.totalorder %s1332_s25, %s1328_s24 }
   0x8   : > { %s1691_s9 = smov (%p41_p0, %s39_s9), 0  ;;  %p246_p5 = scmp.eq.s32.totalorder %s1074_s8, 1 }
   0x9   : > { %p1435_p4 = por %p240_p2, %p239_p1  ;;  %s224_s12 = ssub.s32 %s1344_s28, %s1691_s9 }
   0xa   : > { %p1080_p6 = scmp.ge.s32.totalorder %s1348_s29, 1  ;;  %p227_p7 = scmp.eq.s32.totalorder %s224_s12, 0 }
   0xb   : > { %p1442_p8 = por %p246_p5, %p245_p3  ;;  %p325_p9 = scmp.lt.s32.totalorder %s1348_s29, 3 }
   0xc   : > { %s1448_s14 = scalar_select %p227_p7, %s1336_s26, %s229_s10  }
   0xd   : > { %p326_p10 = pnand %p1080_p6, %p325_p9 }
   0xe   : > { %p388_p11 = scmp.lt.s32.totalorder (!%p326_p10), %s1340_s27, 1  ;;  %s1129_s23 = sshll.u32 (!%p326_p10), %s1340_s27, 8 }
   0xf   : > { %329 = sbr.rel (%p326_p10) target bundleno = 512 (0x200), region = 48  ;;  %s1352_s18 = smov (!%p326_p10), [#allocation3]  }
  0x10   : > { %s1276_s19 = sshll.u32 (!%p326_p10), %s1352_s18, 4  ;;  %s1277_s19 = int_to_ptr.vmem [resolvable:$false] %s1276_s19 }
  0x11   : > { %s1278_s20 = scalar_lea.vmem (!%p326_p10), %s1277_s19, 512 }
  0x14   : > { %v1226_v0 = vld [vmem:[%s1676_s1 + $0x34] ss:$8 sps:$4 sm:$0xff]   ;;  %v1228_v1 = vld [vmem:[%s1676_s1 + $0x30] ss:$8 sps:$4 sm:$0xff]   ;;  %v1350_v2 = vmov 0   ;;  %s1461_s21 = scalar_select %p388_p11, %s1340_s27, 1  ;;  %v453_v27 = vlaneseq }
  0x15   : > { %560 = vmatprep.mubr.bf16.mxu0 %v1350_v2  ;;  %536 = vmatprep.subr.bf16.mxu0 %v1226_v0  ;;  %v1229_v3 = vld [vmem:[%s1676_s1 + $0x24] ss:$8 sps:$4 sm:$0xff]   ;;  %v1231_v4 = vld [vmem:[%s1676_s1 + $0x20] ss:$8 sps:$4 sm:$0xff]   ;;  %v1232_v5 = vld [vmem:[%s1676_s1 + $0x14] ss:$8 sps:$4 sm:$0xff]  }
  0x16   : > { %537 = vmatpush1.bf16.msra.mxu0 %v1228_v1  ;;  %s1123_s10 = sshll.u32 %s1461_s21, 4  ;;  %v1234_v6 = vld [vmem:[%s1676_s1 + $0x10] ss:$8 sps:$4 sm:$0xff]   ;;  %vm433_vm0 = vcmask 523264   ;;  %v1235_v7 = vld [vmem:[%s1676_s1 + $0x4] ss:$8 sps:$4 sm:$0xff]   ;;  %s416_s15 = scalar_lea.vmem %s1680_s5, %s1461_s21 }
  0x17   : > { %538 = vmatprep.subr.bf16.mxu0 %v1229_v3  ;;  %s395_s16 = scalar_lea.vmem %s1675_s0, %s1123_s10  ;;  %v1237_v8 = vld [vmem:[%s1676_s1] ss:$8 sps:$4 sm:$0xff]   ;;  %v1240_v11 = vld [vmem:[%s1678_s3 + $0x78] sm:$0xff]   ;;  %v1242_v13 = vld [vmem:[%s1678_s3 + $0x70] sm:$0xff]   ;;  %v454_v28 = vshrl.u32 %v453_v27, 7  ;;  %s384_s21 = sand.u32 1, %s1332_s25  }
  0x18   : > { %v1238_v9 = vld [vmem:[%s395_s16] sm:$0xff]   ;;  %v1239_v10 = vld [vmem:[%s395_s16 + $0x8] sm:$0xff]   ;;  %v1241_v12 = vld [vmem:[%s1678_s3 + $0x38] sm:$0xff]   ;;  %1139 = vmatprep.subr.bf16.mxu1 %v1240_v11  ;;  %s425_s16 = scalar_lea.vmem %s1681_s6, %s1123_s10  ;;  %s1081_s10 = sshll.u32 %s384_s21, 4  ;;  %vm901_vm1 = vcmask 519168  }
  0x19   : > { %1140 = vmatpush3.bf16.msra.mxu1 %v1241_v12  ;;  %v1243_v14 = vld [vmem:[%s1678_s3 + $0x30] sm:$0xff]   ;;  %v1244_v15 = vld [vmem:[%s1678_s3 + $0x68] sm:$0xff]   ;;  %v1246_v17 = vld [vmem:[%s1678_s3 + $0x60] sm:$0xff]   ;;  %v1537_v31 = vsub.s32 0, %v454_v28  ;;  %v459_v32 = vsub.s32 2, %v454_v28  ;;  %s386_s22 = scalar_lea.vmem [#allocation3], %s1081_s10 }
  0x1a   : > { %539 = vmatpush1.bf16.msra.mxu0 %v1231_v4  ;;  %1141 = vmatprep.subr.bf16.mxu1 %v1242_v13  ;;  %v1245_v16 = vld [vmem:[%s1678_s3 + $0x28] sm:$0xff]   ;;  %v1247_v18 = vld [vmem:[%s1678_s3 + $0x20] sm:$0xff]   ;;  %v1248_v19 = vld [vmem:[%s1678_s3 + $0x58] sm:$0xff]   ;;  %s922_s30 = sshll.u32 %s386_s22, 4  ;;  %s1630_s17 = scalar_lea.sflag [#allocation4], %s384_s21  ;;  %s1625_s30 = int_to_ptr.vmem [resolvable:$true] %s922_s30 }
  0x1b   : > { %540 = vmatprep.subr.bf16.mxu0 %v1232_v5  ;;  %v1249_v20 = vld [vmem:[%s1678_s3 + $0x18] sm:$0xff]   ;;  %v1250_v21 = vld [vmem:[%s1678_s3 + $0x50] sm:$0xff]   ;;  %v1252_v23 = vld [vmem:[%s1678_s3 + $0x48] sm:$0xff]   ;;  %s1272_s27 = scalar_lea.vmem %s1625_s30, 256  ;;  %p1279_p1 = scmp.lt.s32.totalorder %s1625_s30, %s1277_s19 }
  0x1c   : > { %v1251_v22 = vld [vmem:[%s1678_s3 + $0x10] sm:$0xff]   ;;  %v1253_v24 = vld [vmem:[%s1678_s3 + $0x8] sm:$0xff]   ;;  %v1254_v25 = vld [vmem:[%s1678_s3 + $0x40] sm:$0xff]   ;;  %p1273_p12 = scmp.ne.s32.totalorder %s1625_s30, %s1272_s27  ;;  %p1280_p2 = scmp.lt.s32.totalorder %s1278_s20, %s1272_s27 }
  0x1d   : > { %1142 = vmatpush3.bf16.msra.mxu1 %v1243_v14  ;;  %v1255_v26 = vld [vmem:[%s1678_s3] sm:$0xff]  }
  0x1e   : > { %541 = vmatpush1.bf16.msra.mxu0 %v1234_v6  ;;  %1143 = vmatprep.subr.bf16.mxu1 %v1244_v15  ;;  %v450_v29 = vld [vmem:[%s1677_s2] sm:$0x3]  ;;  %p1274_p13 = pnand %p1273_p12, %p1435_p4  ;;  %p1281_p3 = por %p1280_p2, %p1279_p1 }
  0x1f   : > { %542 = vmatprep.subr.bf16.mxu0 %v1235_v7  ;;  %v451_v30 = vunpack.c.l.bf16 %v450_v29 }
  0x20   : > { %p1275_p0 = pneg %p1274_p13 }
  0x21   : > { %1144 = vmatpush3.bf16.msra.mxu1 %v1245_v16  ;;  %v456_v33 = vrot.slane %v451_v30, %v1537_v31  ;;  %v460_v34 = vrot.slane %v451_v30, %v459_v32 }
  0x22   : > { %543 = vmatpush1.bf16.msra.mxu0 %v1237_v8  ;;  %1145 = vmatprep.subr.bf16.mxu1 %v1246_v17  ;;  %p1282_p5 = pnand %p1281_p3, %p1275_p0 }
  0x23   : > { %v466_v35 = vrot.slane %v456_v33, %v1537_v31  ;;  %v470_v36 = vrot.slane %v460_v34, %v1537_v31 }
  0x25   : > { %1096 = vmatmul.mubr.msk.bf16.vlgmr.msra.gmra.mxu0 %vm433_vm0, %v1238_v9  ;;  %1146 = vmatpush3.bf16.msra.mxu1 %v1247_v18 }
  0x26   : > { %570 = vmatprep.mubr.bf16.mxu0 %v1350_v2  ;;  %1147 = vmatprep.subr.bf16.mxu1 %v1248_v19 }
  0x29   : > { %1148 = vmatpush3.bf16.msra.mxu1 %v1249_v20 }
  0x2a   : > { %1149 = vmatprep.subr.bf16.mxu1 %v1250_v21 }
  0x2d   : > { %1097 = vmatmul.mubr.msk.bf16.gmra.mxu0 %vm433_vm0, %v1239_v10  ;;  %1150 = vmatpush3.bf16.msra.mxu1 %v1251_v22 }
  0x2e   : > { %1151 = vmatprep.subr.bf16.mxu1 %v1252_v23 }
  0x31   : > { %1152 = vmatpush3.bf16.msra.mxu1 %v1253_v24 }
  0x32   : > { %1153 = vmatprep.subr.bf16.mxu1 %v1254_v25 }
  0x35   : > { %1154 = vmatpush3.bf16.msra.mxu1 %v1255_v26 }
  0xe5   : > { %v562_v37 = vpop.f32.mrf.mxu0 }
  0xe6   : > { %v1542_v38 = vadd.f32 %v562_v37, %v466_v35 }
  0xe7   : > { %v564_v39 = vpop.f32.mrf.mxu0 }
  0xe8   : > { %v581_v40 = vmul.f32 %v1542_v38, %v1542_v38  ;;  %v1546_v41 = vadd.f32 %v564_v39, %v470_v36 }
  0xe9   : > { %v566_v42 = vpop.f32.mrf.mxu0 }
  0xea   : > { %v589_v43 = vmul.f32 %v581_v40, %v1542_v38  ;;  %v582_v44 = vmul.f32 %v1546_v41, %v1546_v41  ;;  %v1551_v45 = vadd.f32 %v566_v42, %v466_v35 }
  0xeb   : > { %v568_v46 = vpop.f32.mrf.mxu0 }
  0xec   : > { %v597_v47 = vmul.f32 0.044715, %v589_v43  ;;  %v590_v48 = vmul.f32 %v582_v44, %v1546_v41  ;;  %v583_v49 = vmul.f32 %v1551_v45, %v1551_v45  ;;  %v1556_v50 = vadd.f32 %v568_v46, %v470_v36 }
  0xed   : > { %v572_v51 = vpop.f32.mrf.mxu0 }
  0xee   : > { %v605_v52 = vadd.f32 %v597_v47, %v1542_v38  ;;  %v598_v53 = vmul.f32 0.044715, %v590_v48  ;;  %v591_v54 = vmul.f32 %v583_v49, %v1551_v45  ;;  %v584_v55 = vmul.f32 %v1556_v50, %v1556_v50 }
  0xef   : > { %v1562_v56 = vadd.f32 %v572_v51, %v466_v35  ;;  %v574_v57 = vpop.f32.mrf.mxu0 }
  0xf0   : > { %v613_v58 = vmul.f32 0.7978846, %v605_v52  ;;  %v606_v59 = vadd.f32 %v598_v53, %v1546_v41  ;;  %v599_v60 = vmul.f32 0.044715, %v591_v54  ;;  %v592_v61 = vmul.f32 %v584_v55, %v1556_v50 }
  0xf1   : > { %v585_v62 = vmul.f32 %v1562_v56, %v1562_v56  ;;  %v1568_v63 = vadd.f32 %v574_v57, %v470_v36  ;;  %v576_v0 = vpop.f32.mrf.mxu0 }
  0xf2   : > { %v607_v1 = vadd.f32 %v599_v60, %v1551_v45  ;;  %v600_v2 = vmul.f32 0.044715, %v592_v61  ;;  %v1571_v3 = vadd.f32 %v576_v0, %v466_v35  ;;  %1256 = vtanh.f32 %v613_v58 }
  0xf3   : > { %v593_v4 = vmul.f32 %v585_v62, %v1562_v56  ;;  %v586_v5 = vmul.f32 %v1568_v63, %v1568_v63  ;;  %v578_v6 = vpop.f32.mrf.mxu0  ;;  %v614_v7 = vmul.f32 0.7978846, %v606_v59 }
  0xf4   : > { %v615_v8 = vmul.f32 0.7978846, %v607_v1  ;;  %v608_v9 = vadd.f32 %v600_v2, %v1556_v50  ;;  %v587_v10 = vmul.f32 %v1571_v3, %v1571_v3  ;;  %v579_v11 = vadd.f32 %v578_v6, %v470_v36 }
  0xf5   : > { %v601_v12 = vmul.f32 0.044715, %v593_v4  ;;  %v594_v13 = vmul.f32 %v586_v5, %v1568_v63  ;;  %1258 = vtanh.f32 %v614_v7  ;;  %v1351_v5 = vmov 0.0   ;;  %v853_v7 = vld [vmem:[%s1679_s4] sm:$0x1] }
  0xf6   : > { %1260 = vtanh.f32 %v615_v8  ;;  %v595_v14 = vmul.f32 %v587_v10, %v1571_v3  ;;  %v588_v15 = vmul.f32 %v579_v11, %v579_v11  ;;  %v616_v16 = vmul.f32 0.7978846, %v608_v9  ;;  %434 = vst.msk [vmem:[#allocation2] sm:$0xff] %vm433_vm0, %v1351_v5  ;;  %435 = vst.msk [vmem:[#allocation2 + $0x8] sm:$0xff] %vm433_vm0, %v1351_v5  ;;  %v863_v10 = vld [vmem:[%s416_s15] sm:$0x1]  ;;  %s1623_s15 = scalar_lea.hbm %s1682_s7, %s1129_s23 }
  0xf7   : > { %v609_v17 = vadd.f32 %v601_v12, %v1562_v56  ;;  %v602_v18 = vmul.f32 0.044715, %v594_v13  ;;  %436 = vst.msk [vmem:[#allocation2 + $0x10] sm:$0xff] %vm433_vm0, %v1351_v5  ;;  %437 = vst.msk [vmem:[#allocation2 + $0x18] sm:$0xff] %vm433_vm0, %v1351_v5  ;;  %v854_v13 = vunpack.c.l.bf16 %v853_v7 }
  0xf8   : > { %v603_v19 = vmul.f32 0.044715, %v595_v14  ;;  %v596_v20 = vmul.f32 %v588_v15, %v579_v11  ;;  %1262 = vtanh.f32 %v616_v16  ;;  %v864_v16 = vunpack.c.l.bf16 %v863_v10 }
  0xf9   : > { %v617_v21 = vmul.f32 0.7978846, %v609_v17  ;;  %v610_v22 = vadd.f32 %v602_v18, %v1568_v63 }
  0xfa   : > { %v611_v23 = vadd.f32 %v603_v19, %v1571_v3  ;;  %v604_v24 = vmul.f32 0.044715, %v596_v20  ;;  %v858_v20 = vrot.slane %v854_v13, %v1537_v31 }
  0xfb   : > { %1264 = vtanh.f32 %v617_v21  ;;  %v618_v25 = vmul.f32 0.7978846, %v610_v22  ;;  %v1131_v22 = vld [vmem:[%s425_s16] sm:$0xff]  }
  0xfc   : > { %v619_v26 = vmul.f32 0.7978846, %v611_v23  ;;  %v612_v27 = vadd.f32 %v604_v24, %v579_v11  ;;  %v868_v24 = vrot.slane %v864_v16, %v1537_v31 }
  0xfd   : > { %1266 = vtanh.f32 %v618_v25  ;;  %v653_v6 = vld [vmem:[#allocation2] sm:$0xff] }
  0xfe   : > { %1268 = vtanh.f32 %v619_v26  ;;  %v620_v28 = vmul.f32 0.7978846, %v612_v27  ;;  %v655_v18 = vld [vmem:[#allocation2 + $0x10] sm:$0xff]  ;;  %v656_v26 = vld [vmem:[#allocation2 + $0x18] sm:$0xff] }
  0xff   : > { %v1257_v29 = vpop.eup %1256 }
 0x100   : > { %1270 = vtanh.f32 %v620_v28  ;;  %v629_v34 = vadd.f32 1.0, %v1257_v29  ;;  %v1132_v29 = vunpack.c.l.bf16 %v1131_v22 }
 0x102   : > { %v1259_v30 = vpop.eup %1258  ;;  %v637_v42 = vmul.f32 0.5, %v629_v34 }
 0x103   : > { %v1261_v32 = vpop.eup %1260  ;;  %v630_v33 = vadd.f32 1.0, %v1259_v30 }
 0x104   : > { %v631_v35 = vadd.f32 1.0, %v1261_v32  ;;  %v645_v52 = vmul.f32 %v637_v42, %v1542_v38 }
 0x105   : > { %v1263_v36 = vpop.eup %1262  ;;  %v638_v39 = vmul.f32 0.5, %v630_v33 }
 0x106   : > { %v632_v37 = vadd.f32 1.0, %v1263_v36  ;;  %v639_v40 = vmul.f32 0.5, %v631_v35  ;;  %v1133_v36 = vunpack.c.h.bf16 %v1131_v22 }
 0x107   : > { %v646_v48 = vmul.f32 %v638_v39, %v1546_v41  ;;  %v1138_v39 = vld [vmem:[%s425_s16 + $0x8] sm:$0xff]  }
 0x108   : > { %v1265_v43 = vpop.eup %1264  ;;  %v640_v44 = vmul.f32 0.5, %v632_v37  ;;  %v647_v46 = vmul.f32 %v639_v40, %v1551_v45 }
 0x109   : > { %v633_v54 = vadd.f32 1.0, %v1265_v43 }
 0x10a   : > { %v1267_v47 = vpop.eup %1266  ;;  %v648_v49 = vmul.f32 %v640_v44, %v1556_v50  ;;  %v657_v59 = vpack.c.bf16 %v647_v46, %v645_v52  ;;  %v1136_v44 = vunpack.c.l.bf16 %v1138_v39  ;;  %v1137_v52 = vunpack.c.h.bf16 %v1138_v39 }
 0x10b   : > { %v1269_v51 = vpop.eup %1268  ;;  %v634_v53 = vadd.f32 1.0, %v1267_v47  ;;  %v641_v45 = vmul.f32 0.5, %v633_v54 }
 0x10c   : > { %v658_v55 = vpack.c.bf16 %v648_v49, %v646_v48  ;;  %v635_v57 = vadd.f32 1.0, %v1269_v51 }
 0x10d   : > { %v1271_v58 = vpop.eup %1270  ;;  %v642_v61 = vmul.f32 0.5, %v634_v53  ;;  %v649_v38 = vmul.f32 %v641_v45, %v1562_v56 }
 0x10e   : > { %821 = vmatprep.mubr.bf16.mxu1 %v658_v55  ;;  %v636_v60 = vadd.f32 1.0, %v1271_v58  ;;  %v643_v62 = vmul.f32 0.5, %v635_v57 }
 0x10f   : > { %822 = vmatmul.mubr.bf16.vlgmr.msra.gmra.mxu1 %v657_v59  ;;  %v650_v50 = vmul.f32 %v642_v61, %v1568_v63 }
 0x110   : > { %v644_v0 = vmul.f32 0.5, %v636_v60  ;;  %v651_v41 = vmul.f32 %v643_v62, %v1571_v3 }
 0x112   : > { %v652_v1 = vmul.f32 %v644_v0, %v579_v11  ;;  %v659_v4 = vpack.c.bf16 %v651_v41, %v649_v38  ;;  %v654_v11 = vld [vmem:[#allocation2 + $0x8] sm:$0xff] }
 0x114   : > { %v660_v2 = vpack.c.bf16 %v652_v1, %v650_v50 }
 0x116   : > { %829 = vmatprep.mubr.bf16.mxu1 %v660_v2 }
 0x117   : > { %830 = vmatmul.mubr.bf16.gmra.mxu1 %v659_v4 }
 0x1cf   : > { %v1155_v3 = vpop.f32.mrf.mxu1 }
 0x1d1   : > { %v1156_v63 = vpop.f32.mrf.mxu1 }
 0x1d2   : > { %v1157_v56 = vadd.f32 %v1156_v63, %v1155_v3 }
 0x1d3   : > { %v1158_v8 = vpop.f32.mrf.mxu1 }
 0x1d4   : > { %v838_v9 = vadd.f32 %v1157_v56, %v653_v6 }
 0x1d5   : > { %v1159_v12 = vpop.f32.mrf.mxu1 }
 0x1d6   : > { %842 = vst.msk [vmem:[#allocation2] sm:$0xff] %vm433_vm0, %v838_v9  ;;  %v1160_v14 = vadd.f32 %v1159_v12, %v1158_v8 }
 0x1d7   : > { %v1161_v15 = vpop.f32.mrf.mxu1 }
 0x1d8   : > { %v839_v17 = vadd.f32 %v1160_v14, %v654_v11 }
 0x1d9   : > { %v1162_v19 = vpop.f32.mrf.mxu1 }
 0x1da   : > { %843 = vst.msk [vmem:[#allocation2 + $0x8] sm:$0xff] %vm433_vm0, %v839_v17  ;;  %v1163_v21 = vadd.f32 %v1162_v19, %v1161_v15 }
 0x1db   : > { %v1164_v23 = vpop.f32.mrf.mxu1 }
 0x1dc   : > { %v840_v25 = vadd.f32 %v1163_v21, %v655_v18 }
 0x1dd   : > { %v1165_v27 = vpop.f32.mrf.mxu1  ;;  %v849_v28 = vld [vmem:[#allocation2] sm:$0xff] }
 0x1de   : > { %844 = vst.msk [vmem:[#allocation2 + $0x10] sm:$0xff] %vm433_vm0, %v840_v25  ;;  %v1166_v30 = vadd.f32 %v1165_v27, %v1164_v23  ;;  %v859_v32 = vadd.f32 %v858_v20, %v849_v28 }
 0x1e0   : > { %v841_v33 = vadd.f32 %v1166_v30, %v656_v26  ;;  %v869_v34 = vmul.f32 %v868_v24, %v859_v32 }
 0x1e1   : > { %v850_v35 = vld [vmem:[#allocation2 + $0x8] sm:$0xff] }
 0x1e2   : > { %845 = vst.msk [vmem:[#allocation2 + $0x18] sm:$0xff] %vm433_vm0, %v841_v33  ;;  %v860_v37 = vadd.f32 %v858_v20, %v850_v35  ;;  %v881_v31 = vadd.f32 %v1132_v29, %v869_v34 }
 0x1e4   : > { %v870_v40 = vmul.f32 %v868_v24, %v860_v37  ;;  %v1125_v42 = vpack.c.bf16 %v881_v31, %v881_v31 }
 0x1e5   : > { %v851_v43 = vld [vmem:[#allocation2 + $0x10] sm:$0xff] }
 0x1e6   : > { %v861_v46 = vadd.f32 %v858_v20, %v851_v43  ;;  %v882_v47 = vadd.f32 %v1133_v36, %v870_v40  ;;  %902 = vst.msk [vmem:[%s386_s22] sm:$0xf] %vm901_vm1, %v1125_v42 }
 0x1e8   : > { %v871_v48 = vmul.f32 %v868_v24, %v861_v46  ;;  %v1126_v49 = vpack.c.bf16 %v882_v47, %v882_v47 }
 0x1e9   : > { %v852_v51 = vld [vmem:[#allocation2 + $0x18] sm:$0xff] }
 0x1ea   : > { %v862_v53 = vadd.f32 %v858_v20, %v852_v51  ;;  %v883_v54 = vadd.f32 %v1136_v44, %v871_v48  ;;  %903 = vst.msk [vmem:[%s386_s22 + $0x4] sm:$0xf] %vm901_vm1, %v1126_v49 }
 0x1ec   : > { %v872_v55 = vmul.f32 %v868_v24, %v862_v53  ;;  %v1127_v57 = vpack.c.bf16 %v883_v54, %v883_v54 }
 0x1ee   : > { %v884_v58 = vadd.f32 %v1137_v52, %v872_v55  ;;  %904 = vst.msk [vmem:[%s386_s22 + $0x8] sm:$0xf] %vm901_vm1, %v1127_v57 }
 0x1f0   : > { %v1128_v59 = vpack.c.bf16 %v884_v58, %v884_v58 }
 0x1f2   : > { %905 = vst.msk [vmem:[%s386_s22 + $0xc] sm:$0xf] %vm901_vm1, %v1128_v59 }
 0x1f3   : > { %1285 = shalt.err (!%p1282_p5)
}
 0x1f4   : > { %s1286_s16 = scalar_lea.hbm %s1623_s15, 256  ;;  %s1290_s22 = scalar_lea.hbm %s1682_s7, 512 }
 0x1f5   : > { %p1287_p6 = scmp.ne.s32.totalorder %s1623_s15, %s1286_s16  ;;  %p1291_p10 = scmp.lt.s32.totalorder %s1623_s15, %s1682_s7 }
 0x1f6   : > { %p1292_p11 = scmp.lt.s32.totalorder %s1290_s22, %s1286_s16 }
 0x1f7   : > { %p1288_p7 = pnand %p1287_p6, %p1435_p4 }
 0x1f8   : > { %p1293_p12 = por %p1292_p11, %p1291_p10 }
 0x1f9   : > { %p1289_p9 = pneg %p1288_p7 }
 0x1fb   : > { %p1294_p13 = pnand %p1293_p12, %p1289_p9 }
 0x1fd   : > { %1297 = shalt.err (!%p1294_p13)
}
 0x1fe   : > { %s1353_s12 = smov 64   ;;  %s1354_s27 = smov 4  }
 0x1ff   : > { %1167 = dma.vmem_to_hbm [thread:$0]  (%p1435_p4), %s1625_s30, 256, %s1623_s15, %s1630_s17, %s1353_s12, %s1353_s12, %s1354_s27  }
 0x200 PF: > { %p1173_p0 = scmp.ge.s32.totalorder %s1348_s29, 2  ;;  %s937_s18 = sand.u32 1, %s1328_s24  }
 0x201   : > { %s938_s19 = scalar_lea.sflag [#allocation4], %s937_s18 }
 0x202   : > { %p1170_p1 = pnand %p1173_p0, %p1442_p8 }
 0x204   : > { %p1171_p2 = pneg %p1170_p1 }
 0x206   : > { %1323 = dma.done.wait (%p1171_p2), %s938_s19, 256  }
 0x207   : > { %1325 = vsyncadd (%p1171_p2), %s938_s19, 4294967040  ;;  %s20_s29 = sadd.s32 1, %s1348_s29   ;;  %s1685_s24 = smov %s1332_s25 }
 0x208   : > { %p17_p3 = scmp.ge.s32.totalorder %s20_s29, 4   ;;  %s1686_s25 = smov %s1336_s26 }
 0x209   : > { %s1687_s26 = smov %s1448_s14  ;;  %s1688_s27 = smov %s1344_s28 }
 0x20a   : > { %s1689_s28 = smov %s1691_s9  ;;  %19 = sbr.rel (!%p17_p3) target bundleno = 4 (0x4), region = 106 }
 0x20f   :  { %943 = vsyncpa [#allocation4], 1 }
 0x210   :  { %945 = vsyncpa [#allocation4 + $0x1], 1 }

</bundles_post_ra>
